<compile_context>
chip_gen: v5e
topology: v5e:2x2
jax: 0.10.0
libtpu: 0.0.40
codegen_flags: <defaults>
</compile_context>

<pallas_src>
import functools

import jax
import jax.numpy as jnp
import numpy as np
from jax import lax
from jax.experimental import pallas as pl
from jax.experimental.pallas import tpu as pltpu


def _caa_kernel(x_ref, hidx_ref, widx_ref,
                w1_ref, b1_ref, wh_ref, bh_ref, wv_ref, bv_ref, w2_ref, b2_ref,
                out_ref, *, H, W, Kh, Kv):
    HW = H * W
    x = x_ref[0].astype(jnp.float32)          # (C, H*W), lane-dense
    h_idx = hidx_ref[...]                     # (1, H*W) int32 row index per flat pos
    w_idx = widx_ref[...]                     # (1, H*W) int32 col index per flat pos

    # ---- memoized boundary masks (one materialization per distinct offset) -
    h_masks, w_masks = {}, {}

    def h_ok(dh):
        if dh not in h_masks:
            h_masks[dh] = (h_idx + dh >= 0) & (h_idx + dh < H)
        return h_masks[dh]

    def w_ok(dw):
        if dw not in w_masks:
            w_masks[dw] = (w_idx + dw >= 0) & (w_idx + dw < W)
        return w_masks[dw]

    def roll_flat(v, d):
        # out[:, i] = v[:, (i + d) % HW]   (jnp.roll convention: roll by -d)
        return pltpu.roll(v, (-d) % HW, axis=1)

    def shift_h(v, dh):
        # out[c, h, w] = v[c, h + dh, w], zero outside [0, H)
        if dh == 0:
            return v
        return jnp.where(h_ok(dh), roll_flat(v, dh * W), 0.0)

    def shift_w(v, dw):
        # out[c, h, w] = v[c, h, w + dw], zero outside [0, W)
        if dw == 0:
            return v
        return jnp.where(w_ok(dw), roll_flat(v, dw), 0.0)

    def silu(v):
        return v * jax.nn.sigmoid(v)

    def conv3x3(v, w_taps_ref, b_ref):
        # Dense 3x3 'same' conv as 9 per-tap MXU matmuls: (C,C) @ (C, H*W).
        acc = jnp.zeros_like(v)
        for kh in range(3):
            vh = shift_h(v, kh - 1)
            for kw in range(3):
                tap = w_taps_ref[kh * 3 + kw]                # (C, C)
                acc = acc + jnp.dot(tap, shift_w(vh, kw - 1),
                                    preferred_element_type=jnp.float32)
        return acc + b_ref[...]

    # ---- AvgPool2d(7, stride=1, pad=3), count_include_pad=True -------------
    # (the /49 normalization is folded into conv1's weights on the host)
    row = shift_w(x, -3)
    for dw in range(-2, 4):
        row = row + shift_w(x, dw)
    y = shift_h(row, -3)
    for dh in range(-2, 4):
        y = y + shift_h(row, dh)

    # ---- conv1: 3x3 conv (BN + 1/49 folded) + SiLU --------------------------
    y = silu(conv3x3(y, w1_ref, b1_ref))

    # ---- h_conv: depthwise (1 x Kh) conv + bias -----------------------------
    wh = wh_ref[...]                                          # (Kh, C, 1)
    acc = jnp.zeros_like(y)
    for k in range(Kh):
        acc = acc + wh[k] * shift_w(y, k - Kh // 2)
    y = acc + bh_ref[...]

    # ---- v_conv: depthwise (Kv x 1) conv + bias -----------------------------
    wv = wv_ref[...]                                          # (Kv, C, 1)
    acc = jnp.zeros_like(y)
    for k in range(Kv):
        acc = acc + wv[k] * shift_h(y, k - Kv // 2)
    y = acc + bv_ref[...]

    # ---- conv2: 3x3 conv (BN folded) + SiLU, then sigmoid gate --------------
    y = silu(conv3x3(y, w2_ref, b2_ref))
    out_ref[0] = (jax.nn.sigmoid(y) * x).astype(out_ref.dtype)


def _fold_bn(conv_w, gamma, beta, mean, var, *, eps=1e-5):
    """Fold an eval-mode BatchNorm2d into the preceding bias-free conv."""
    scale = gamma / jnp.sqrt(var + eps)
    return conv_w * scale[:, None, None, None], beta - mean * scale


def caa_pallas(x, c1_w, c1_bn, h_w, h_b, v_w, v_b, c2_w, c2_bn,
               *, h_kernel_size=11, v_kernel_size=11, eps=1e-5):
    """CAA forward.  x: (N,C,H,W).  c*_w: (C,C,3,3), c*_bn: (gamma,beta,mean,var),
    h_w: (C,1,1,Kh), v_w: (C,1,Kv,1), h_b/v_b: (C,)."""
    N, C, H, W = x.shape
    HW = H * W
    Kh, Kv = h_kernel_size, v_kernel_size

    w1, b1 = _fold_bn(c1_w, *c1_bn, eps=eps)
    w2, b2 = _fold_bn(c2_w, *c2_bn, eps=eps)

    # Fold the avg-pool 1/49 normalization into conv1 (conv is linear in its
    # input; the BN-folded bias is unaffected).
    w1 = w1 * (1.0 / 49.0)

    # Per-tap (C_out, C_in) matrices for the dense 3x3 convs (tap = kh*3+kw).
    w1_taps = jnp.transpose(w1, (2, 3, 0, 1)).reshape(9, C, C)
    w2_taps = jnp.transpose(w2, (2, 3, 0, 1)).reshape(9, C, C)
    # Depthwise taps as (K, C, 1) so each tap broadcasts over (C, H*W).
    wh_taps = jnp.transpose(h_w.reshape(C, Kh)).reshape(Kh, C, 1)
    wv_taps = jnp.transpose(v_w.reshape(C, Kv)).reshape(Kv, C, 1)

    # Row / column index of every flat position (for shift boundary masking).
    col = jnp.arange(HW, dtype=jnp.int32)
    h_idx = (col // W).reshape(1, HW)
    w_idx = (col % W).reshape(1, HW)

    xf = x.reshape(N, C, HW)                  # lane-dense: last dim = H*W
    const2 = lambda n: (0, 0)
    const3 = lambda n: (0, 0, 0)

    out = pl.pallas_call(
        functools.partial(_caa_kernel, H=H, W=W, Kh=Kh, Kv=Kv),
        out_shape=jax.ShapeDtypeStruct((N, C, HW), x.dtype),
        grid=(N,),
        in_specs=[
            pl.BlockSpec((1, C, HW), lambda n: (n, 0, 0)),     # x (per image)
            pl.BlockSpec((1, HW), const2),                     # h_idx
            pl.BlockSpec((1, HW), const2),                     # w_idx
            pl.BlockSpec((9, C, C), const3),                   # conv1 taps (BN+1/49 folded)
            pl.BlockSpec((C, 1), const2),                      # conv1 bias
            pl.BlockSpec((Kh, C, 1), const3),                  # h_conv taps
            pl.BlockSpec((C, 1), const2),                      # h_conv bias
            pl.BlockSpec((Kv, C, 1), const3),                  # v_conv taps
            pl.BlockSpec((C, 1), const2),                      # v_conv bias
            pl.BlockSpec((9, C, C), const3),                   # conv2 taps
            pl.BlockSpec((C, 1), const2),                      # conv2 bias
        ],
        out_specs=pl.BlockSpec((1, C, HW), lambda n: (n, 0, 0)),
        compiler_params=pltpu.CompilerParams(
            dimension_semantics=("parallel",)),
    )(xf, h_idx, w_idx,
      w1_taps, b1.reshape(C, 1), wh_taps, h_b.reshape(C, 1),
      wv_taps, v_b.reshape(C, 1), w2_taps, b2.reshape(C, 1))
    return out.reshape(N, C, H, W)


def caa_reference(x, c1_w, c1_bn, h_w, h_b, v_w, v_b, c2_w, c2_bn,
                  *, h_kernel_size=11, v_kernel_size=11, eps=1e-5):
    """Pure-JAX reference mirroring the PyTorch CAA forward (eval mode)."""
    N, C, H, W = x.shape

    def conv(v, w, pad, groups=1):
        return lax.conv_general_dilated(
            v, w, (1, 1), [(pad[0], pad[0]), (pad[1], pad[1])],
            dimension_numbers=("NCHW", "OIHW", "NCHW"),
            feature_group_count=groups)

    def bn(v, params):
        gamma, beta, mean, var = params
        inv = gamma / jnp.sqrt(var + eps)
        return ((v - mean[None, :, None, None]) * inv[None, :, None, None]
                + beta[None, :, None, None])

    def silu(v):
        return v * jax.nn.sigmoid(v)

    # AvgPool2d(7,1,3) with count_include_pad=True: zero-pad, sum, divide by 49.
    pooled = lax.reduce_window(x, 0.0, lax.add, (1, 1, 7, 7), (1, 1, 1, 1),
                               [(0, 0), (0, 0), (3, 3), (3, 3)]) / 49.0
    y = silu(bn(conv(pooled, c1_w, (1, 1)), c1_bn))
    y = conv(y, h_w, (0, h_kernel_size // 2), groups=C) + h_b[None, :, None, None]
    y = conv(y, v_w, (v_kernel_size // 2, 0), groups=C) + v_b[None, :, None, None]
    y = silu(bn(conv(y, c2_w, (1, 1)), c2_bn))
    return jax.nn.sigmoid(y) * x


if __name__ == "__main__":
    N, C, H, W = 2, 4, 16, 16
    Kh = Kv = 11

    key = jax.random.PRNGKey(0)
    ks = jax.random.split(key, 9)
    x = jax.random.normal(ks[0], (N, C, H, W), jnp.float32)

    def bn_params(k):
        k1, k2, k3, k4 = jax.random.split(k, 4)
        gamma = 1.0 + 0.1 * jax.random.normal(k1, (C,), jnp.float32)
        beta = 0.1 * jax.random.normal(k2, (C,), jnp.float32)
        mean = 0.1 * jax.random.normal(k3, (C,), jnp.float32)
        var = 0.5 + jnp.abs(jax.random.normal(k4, (C,), jnp.float32))
        return (gamma, beta, mean, var)

    # conv3x3_bn_silu blocks: Conv2d(C, C, 3, 1, 1, bias=False) + BN + SiLU
    c1_w = 0.3 * jax.random.normal(ks[1], (C, C, 3, 3), jnp.float32)
    c1_bn = bn_params(ks[2])
    # h_conv: Conv2d(C, C, (1, 11), 1, (0, 5), groups=C)  (bias=True)
    h_w = 0.2 * jax.random.normal(ks[3], (C, 1, 1, Kh), jnp.float32)
    h_b = 0.1 * jax.random.normal(ks[4], (C,), jnp.float32)
    # v_conv: Conv2d(C, C, (11, 1), 1, (5, 0), groups=C)  (bias=True)
    v_w = 0.2 * jax.random.normal(ks[5], (C, 1, Kv, 1), jnp.float32)
    v_b = 0.1 * jax.random.normal(ks[6], (C,), jnp.float32)
    c2_w = 0.3 * jax.random.normal(ks[7], (C, C, 3, 3), jnp.float32)
    c2_bn = bn_params(ks[8])

    y = jax.block_until_ready(
        caa_pallas(x, c1_w, c1_bn, h_w, h_b, v_w, v_b, c2_w, c2_bn,
                   h_kernel_size=Kh, v_kernel_size=Kv))
    y_ref = caa_reference(x, c1_w, c1_bn, h_w, h_b, v_w, v_b, c2_w, c2_bn,
                          h_kernel_size=Kh, v_kernel_size=Kv)
    np.testing.assert_allclose(np.asarray(y), np.asarray(y_ref),
                               rtol=2e-3, atol=2e-3)
    print("KERNEL_OK")
</pallas_src>

<mosaic_0001>
module attributes {stable_mosaic.version = 11 : i64} {
  func.func @_caa_kernel(%arg0: i32, %arg1: memref<1x4x256xf32, #tpu.memory_space<vmem>>, %arg2: memref<1x256xi32, #tpu.memory_space<vmem>>, %arg3: memref<1x256xi32, #tpu.memory_space<vmem>>, %arg4: memref<9x4x4xf32, #tpu.memory_space<vmem>>, %arg5: memref<4x1xf32, #tpu.memory_space<vmem>>, %arg6: memref<11x4x1xf32, #tpu.memory_space<vmem>>, %arg7: memref<4x1xf32, #tpu.memory_space<vmem>>, %arg8: memref<11x4x1xf32, #tpu.memory_space<vmem>>, %arg9: memref<4x1xf32, #tpu.memory_space<vmem>>, %arg10: memref<9x4x4xf32, #tpu.memory_space<vmem>>, %arg11: memref<4x1xf32, #tpu.memory_space<vmem>>, %arg12: memref<1x4x256xf32, #tpu.memory_space<vmem>>) attributes {dimension_semantics = [#tpu.dimension_semantics<parallel>], iteration_bounds = array<i64: 2>, scalar_prefetch = 0 : i64, scratch_operands = 0 : i64, tpu.core_type = #tpu.core_type<tc>, window_params = [{transform_indices = @transform_0, window_bounds = array<i64: 1, 4, 256>}, {pipeline_mode = #tpu.pipeline_mode<synchronous>, transform_indices = @transform_1, window_bounds = array<i64: 1, 256>}, {pipeline_mode = #tpu.pipeline_mode<synchronous>, transform_indices = @transform_2, window_bounds = array<i64: 1, 256>}, {pipeline_mode = #tpu.pipeline_mode<synchronous>, transform_indices = @transform_3, window_bounds = array<i64: 9, 4, 4>}, {pipeline_mode = #tpu.pipeline_mode<synchronous>, transform_indices = @transform_4, window_bounds = array<i64: 4, 1>}, {pipeline_mode = #tpu.pipeline_mode<synchronous>, transform_indices = @transform_5, window_bounds = array<i64: 11, 4, 1>}, {pipeline_mode = #tpu.pipeline_mode<synchronous>, transform_indices = @transform_6, window_bounds = array<i64: 4, 1>}, {pipeline_mode = #tpu.pipeline_mode<synchronous>, transform_indices = @transform_7, window_bounds = array<i64: 11, 4, 1>}, {pipeline_mode = #tpu.pipeline_mode<synchronous>, transform_indices = @transform_8, window_bounds = array<i64: 4, 1>}, {pipeline_mode = #tpu.pipeline_mode<synchronous>, transform_indices = @transform_9, window_bounds = array<i64: 9, 4, 4>}, {pipeline_mode = #tpu.pipeline_mode<synchronous>, transform_indices = @transform_10, window_bounds = array<i64: 4, 1>}, {transform_indices = @transform_11, window_bounds = array<i64: 1, 4, 256>}]} {
    %c0 = arith.constant 0 : index
    %c0_0 = arith.constant 0 : index
    %c0_1 = arith.constant 0 : index
    %0 = vector.load %arg1[%c0, %c0_0, %c0_1] : memref<1x4x256xf32, #tpu.memory_space<vmem>>, vector<1x4x256xf32>
    %1 = vector.shape_cast %0 : vector<1x4x256xf32> to vector<4x256xf32>
    %c0_2 = arith.constant 0 : index
    %c0_3 = arith.constant 0 : index
    %2 = vector.load %arg2[%c0_2, %c0_3] : memref<1x256xi32, #tpu.memory_space<vmem>>, vector<1x256xi32>
    %c0_4 = arith.constant 0 : index
    %c0_5 = arith.constant 0 : index
    %3 = vector.load %arg3[%c0_4, %c0_5] : memref<1x256xi32, #tpu.memory_space<vmem>>, vector<1x256xi32>
    %c-3_i32 = arith.constant -3 : i32
    %4 = vector.broadcast %c-3_i32 : i32 to vector<1x256xi32>
    %5 = arith.addi %3, %4 : vector<1x256xi32>
    %c0_i32 = arith.constant 0 : i32
    %6 = vector.broadcast %c0_i32 : i32 to vector<1x256xi32>
    %7 = arith.cmpi sge, %5, %6 : vector<1x256xi32>
    %c-3_i32_6 = arith.constant -3 : i32
    %8 = vector.broadcast %c-3_i32_6 : i32 to vector<1x256xi32>
    %9 = arith.addi %3, %8 : vector<1x256xi32>
    %c16_i32 = arith.constant 16 : i32
    %10 = vector.broadcast %c16_i32 : i32 to vector<1x256xi32>
    %11 = arith.cmpi slt, %9, %10 : vector<1x256xi32>
    %12 = arith.andi %7, %11 : vector<1x256xi1>
    %c3_i32 = arith.constant 3 : i32
    %13 = tpu.dynamic_rotate %1 by %c3_i32 dim 1 : vector<4x256xf32>, i32 -> vector<4x256xf32>
    %cst = arith.constant 0.000000e+00 : f32
    %14 = vector.shape_cast %12 : vector<1x256xi1> to vector<1x256xi1>
    %15 = vector.broadcast %14 : vector<1x256xi1> to vector<4x256xi1>
    %16 = vector.broadcast %cst : f32 to vector<4x256xf32>
    %17 = arith.select %15, %13, %16 : vector<4x256xi1>, vector<4x256xf32>
    %c-2_i32 = arith.constant -2 : i32
    %18 = vector.broadcast %c-2_i32 : i32 to vector<1x256xi32>
    %19 = arith.addi %3, %18 : vector<1x256xi32>
    %c0_i32_7 = arith.constant 0 : i32
    %20 = vector.broadcast %c0_i32_7 : i32 to vector<1x256xi32>
    %21 = arith.cmpi sge, %19, %20 : vector<1x256xi32>
    %c-2_i32_8 = arith.constant -2 : i32
    %22 = vector.broadcast %c-2_i32_8 : i32 to vector<1x256xi32>
    %23 = arith.addi %3, %22 : vector<1x256xi32>
    %c16_i32_9 = arith.constant 16 : i32
    %24 = vector.broadcast %c16_i32_9 : i32 to vector<1x256xi32>
    %25 = arith.cmpi slt, %23, %24 : vector<1x256xi32>
    %26 = arith.andi %21, %25 : vector<1x256xi1>
    %c2_i32 = arith.constant 2 : i32
    %27 = tpu.dynamic_rotate %1 by %c2_i32 dim 1 : vector<4x256xf32>, i32 -> vector<4x256xf32>
    %cst_10 = arith.constant 0.000000e+00 : f32
    %28 = vector.shape_cast %26 : vector<1x256xi1> to vector<1x256xi1>
    %29 = vector.broadcast %28 : vector<1x256xi1> to vector<4x256xi1>
    %30 = vector.broadcast %cst_10 : f32 to vector<4x256xf32>
    %31 = arith.select %29, %27, %30 : vector<4x256xi1>, vector<4x256xf32>
    %32 = arith.addf %17, %31 : vector<4x256xf32>
    %c-1_i32 = arith.constant -1 : i32
    %33 = vector.broadcast %c-1_i32 : i32 to vector<1x256xi32>
    %34 = arith.addi %3, %33 : vector<1x256xi32>
    %c0_i32_11 = arith.constant 0 : i32
    %35 = vector.broadcast %c0_i32_11 : i32 to vector<1x256xi32>
    %36 = arith.cmpi sge, %34, %35 : vector<1x256xi32>
    %c-1_i32_12 = arith.constant -1 : i32
    %37 = vector.broadcast %c-1_i32_12 : i32 to vector<1x256xi32>
    %38 = arith.addi %3, %37 : vector<1x256xi32>
    %c16_i32_13 = arith.constant 16 : i32
    %39 = vector.broadcast %c16_i32_13 : i32 to vector<1x256xi32>
    %40 = arith.cmpi slt, %38, %39 : vector<1x256xi32>
    %41 = arith.andi %36, %40 : vector<1x256xi1>
    %c1_i32 = arith.constant 1 : i32
    %42 = tpu.dynamic_rotate %1 by %c1_i32 dim 1 : vector<4x256xf32>, i32 -> vector<4x256xf32>
    %cst_14 = arith.constant 0.000000e+00 : f32
    %43 = vector.shape_cast %41 : vector<1x256xi1> to vector<1x256xi1>
    %44 = vector.broadcast %43 : vector<1x256xi1> to vector<4x256xi1>
    %45 = vector.broadcast %cst_14 : f32 to vector<4x256xf32>
    %46 = arith.select %44, %42, %45 : vector<4x256xi1>, vector<4x256xf32>
    %47 = arith.addf %32, %46 : vector<4x256xf32>
    %48 = arith.addf %47, %1 : vector<4x256xf32>
    %c1_i32_15 = arith.constant 1 : i32
    %49 = vector.broadcast %c1_i32_15 : i32 to vector<1x256xi32>
    %50 = arith.addi %3, %49 : vector<1x256xi32>
    %c0_i32_16 = arith.constant 0 : i32
    %51 = vector.broadcast %c0_i32_16 : i32 to vector<1x256xi32>
    %52 = arith.cmpi sge, %50, %51 : vector<1x256xi32>
    %c1_i32_17 = arith.constant 1 : i32
    %53 = vector.broadcast %c1_i32_17 : i32 to vector<1x256xi32>
    %54 = arith.addi %3, %53 : vector<1x256xi32>
    %c16_i32_18 = arith.constant 16 : i32
    %55 = vector.broadcast %c16_i32_18 : i32 to vector<1x256xi32>
    %56 = arith.cmpi slt, %54, %55 : vector<1x256xi32>
    %57 = arith.andi %52, %56 : vector<1x256xi1>
    %c255_i32 = arith.constant 255 : i32
    %58 = tpu.dynamic_rotate %1 by %c255_i32 dim 1 : vector<4x256xf32>, i32 -> vector<4x256xf32>
    %cst_19 = arith.constant 0.000000e+00 : f32
    %59 = vector.shape_cast %57 : vector<1x256xi1> to vector<1x256xi1>
    %60 = vector.broadcast %59 : vector<1x256xi1> to vector<4x256xi1>
    %61 = vector.broadcast %cst_19 : f32 to vector<4x256xf32>
    %62 = arith.select %60, %58, %61 : vector<4x256xi1>, vector<4x256xf32>
    %63 = arith.addf %48, %62 : vector<4x256xf32>
    %c2_i32_20 = arith.constant 2 : i32
    %64 = vector.broadcast %c2_i32_20 : i32 to vector<1x256xi32>
    %65 = arith.addi %3, %64 : vector<1x256xi32>
    %c0_i32_21 = arith.constant 0 : i32
    %66 = vector.broadcast %c0_i32_21 : i32 to vector<1x256xi32>
    %67 = arith.cmpi sge, %65, %66 : vector<1x256xi32>
    %c2_i32_22 = arith.constant 2 : i32
    %68 = vector.broadcast %c2_i32_22 : i32 to vector<1x256xi32>
    %69 = arith.addi %3, %68 : vector<1x256xi32>
    %c16_i32_23 = arith.constant 16 : i32
    %70 = vector.broadcast %c16_i32_23 : i32 to vector<1x256xi32>
    %71 = arith.cmpi slt, %69, %70 : vector<1x256xi32>
    %72 = arith.andi %67, %71 : vector<1x256xi1>
    %c254_i32 = arith.constant 254 : i32
    %73 = tpu.dynamic_rotate %1 by %c254_i32 dim 1 : vector<4x256xf32>, i32 -> vector<4x256xf32>
    %cst_24 = arith.constant 0.000000e+00 : f32
    %74 = vector.shape_cast %72 : vector<1x256xi1> to vector<1x256xi1>
    %75 = vector.broadcast %74 : vector<1x256xi1> to vector<4x256xi1>
    %76 = vector.broadcast %cst_24 : f32 to vector<4x256xf32>
    %77 = arith.select %75, %73, %76 : vector<4x256xi1>, vector<4x256xf32>
    %78 = arith.addf %63, %77 : vector<4x256xf32>
    %c3_i32_25 = arith.constant 3 : i32
    %79 = vector.broadcast %c3_i32_25 : i32 to vector<1x256xi32>
    %80 = arith.addi %3, %79 : vector<1x256xi32>
    %c0_i32_26 = arith.constant 0 : i32
    %81 = vector.broadcast %c0_i32_26 : i32 to vector<1x256xi32>
    %82 = arith.cmpi sge, %80, %81 : vector<1x256xi32>
    %c3_i32_27 = arith.constant 3 : i32
    %83 = vector.broadcast %c3_i32_27 : i32 to vector<1x256xi32>
    %84 = arith.addi %3, %83 : vector<1x256xi32>
    %c16_i32_28 = arith.constant 16 : i32
    %85 = vector.broadcast %c16_i32_28 : i32 to vector<1x256xi32>
    %86 = arith.cmpi slt, %84, %85 : vector<1x256xi32>
    %87 = arith.andi %82, %86 : vector<1x256xi1>
    %c253_i32 = arith.constant 253 : i32
    %88 = tpu.dynamic_rotate %1 by %c253_i32 dim 1 : vector<4x256xf32>, i32 -> vector<4x256xf32>
    %cst_29 = arith.constant 0.000000e+00 : f32
    %89 = vector.shape_cast %87 : vector<1x256xi1> to vector<1x256xi1>
    %90 = vector.broadcast %89 : vector<1x256xi1> to vector<4x256xi1>
    %91 = vector.broadcast %cst_29 : f32 to vector<4x256xf32>
    %92 = arith.select %90, %88, %91 : vector<4x256xi1>, vector<4x256xf32>
    %93 = arith.addf %78, %92 : vector<4x256xf32>
    %c-3_i32_30 = arith.constant -3 : i32
    %94 = vector.broadcast %c-3_i32_30 : i32 to vector<1x256xi32>
    %95 = arith.addi %2, %94 : vector<1x256xi32>
    %c0_i32_31 = arith.constant 0 : i32
    %96 = vector.broadcast %c0_i32_31 : i32 to vector<1x256xi32>
    %97 = arith.cmpi sge, %95, %96 : vector<1x256xi32>
    %c-3_i32_32 = arith.constant -3 : i32
    %98 = vector.broadcast %c-3_i32_32 : i32 to vector<1x256xi32>
    %99 = arith.addi %2, %98 : vector<1x256xi32>
    %c16_i32_33 = arith.constant 16 : i32
    %100 = vector.broadcast %c16_i32_33 : i32 to vector<1x256xi32>
    %101 = arith.cmpi slt, %99, %100 : vector<1x256xi32>
    %102 = arith.andi %97, %101 : vector<1x256xi1>
    %c48_i32 = arith.constant 48 : i32
    %103 = tpu.dynamic_rotate %93 by %c48_i32 dim 1 : vector<4x256xf32>, i32 -> vector<4x256xf32>
    %cst_34 = arith.constant 0.000000e+00 : f32
    %104 = vector.shape_cast %102 : vector<1x256xi1> to vector<1x256xi1>
    %105 = vector.broadcast %104 : vector<1x256xi1> to vector<4x256xi1>
    %106 = vector.broadcast %cst_34 : f32 to vector<4x256xf32>
    %107 = arith.select %105, %103, %106 : vector<4x256xi1>, vector<4x256xf32>
    %c-2_i32_35 = arith.constant -2 : i32
    %108 = vector.broadcast %c-2_i32_35 : i32 to vector<1x256xi32>
    %109 = arith.addi %2, %108 : vector<1x256xi32>
    %c0_i32_36 = arith.constant 0 : i32
    %110 = vector.broadcast %c0_i32_36 : i32 to vector<1x256xi32>
    %111 = arith.cmpi sge, %109, %110 : vector<1x256xi32>
    %c-2_i32_37 = arith.constant -2 : i32
    %112 = vector.broadcast %c-2_i32_37 : i32 to vector<1x256xi32>
    %113 = arith.addi %2, %112 : vector<1x256xi32>
    %c16_i32_38 = arith.constant 16 : i32
    %114 = vector.broadcast %c16_i32_38 : i32 to vector<1x256xi32>
    %115 = arith.cmpi slt, %113, %114 : vector<1x256xi32>
    %116 = arith.andi %111, %115 : vector<1x256xi1>
    %c32_i32 = arith.constant 32 : i32
    %117 = tpu.dynamic_rotate %93 by %c32_i32 dim 1 : vector<4x256xf32>, i32 -> vector<4x256xf32>
    %cst_39 = arith.constant 0.000000e+00 : f32
    %118 = vector.shape_cast %116 : vector<1x256xi1> to vector<1x256xi1>
    %119 = vector.broadcast %118 : vector<1x256xi1> to vector<4x256xi1>
    %120 = vector.broadcast %cst_39 : f32 to vector<4x256xf32>
    %121 = arith.select %119, %117, %120 : vector<4x256xi1>, vector<4x256xf32>
    %122 = arith.addf %107, %121 : vector<4x256xf32>
    %c-1_i32_40 = arith.constant -1 : i32
    %123 = vector.broadcast %c-1_i32_40 : i32 to vector<1x256xi32>
    %124 = arith.addi %2, %123 : vector<1x256xi32>
    %c0_i32_41 = arith.constant 0 : i32
    %125 = vector.broadcast %c0_i32_41 : i32 to vector<1x256xi32>
    %126 = arith.cmpi sge, %124, %125 : vector<1x256xi32>
    %c-1_i32_42 = arith.constant -1 : i32
    %127 = vector.broadcast %c-1_i32_42 : i32 to vector<1x256xi32>
    %128 = arith.addi %2, %127 : vector<1x256xi32>
    %c16_i32_43 = arith.constant 16 : i32
    %129 = vector.broadcast %c16_i32_43 : i32 to vector<1x256xi32>
    %130 = arith.cmpi slt, %128, %129 : vector<1x256xi32>
    %131 = arith.andi %126, %130 : vector<1x256xi1>
    %c16_i32_44 = arith.constant 16 : i32
    %132 = tpu.dynamic_rotate %93 by %c16_i32_44 dim 1 : vector<4x256xf32>, i32 -> vector<4x256xf32>
    %cst_45 = arith.constant 0.000000e+00 : f32
    %133 = vector.shape_cast %131 : vector<1x256xi1> to vector<1x256xi1>
    %134 = vector.broadcast %133 : vector<1x256xi1> to vector<4x256xi1>
    %135 = vector.broadcast %cst_45 : f32 to vector<4x256xf32>
    %136 = arith.select %134, %132, %135 : vector<4x256xi1>, vector<4x256xf32>
    %137 = arith.addf %122, %136 : vector<4x256xf32>
    %138 = arith.addf %137, %93 : vector<4x256xf32>
    %c1_i32_46 = arith.constant 1 : i32
    %139 = vector.broadcast %c1_i32_46 : i32 to vector<1x256xi32>
    %140 = arith.addi %2, %139 : vector<1x256xi32>
    %c0_i32_47 = arith.constant 0 : i32
    %141 = vector.broadcast %c0_i32_47 : i32 to vector<1x256xi32>
    %142 = arith.cmpi sge, %140, %141 : vector<1x256xi32>
    %c1_i32_48 = arith.constant 1 : i32
    %143 = vector.broadcast %c1_i32_48 : i32 to vector<1x256xi32>
    %144 = arith.addi %2, %143 : vector<1x256xi32>
    %c16_i32_49 = arith.constant 16 : i32
    %145 = vector.broadcast %c16_i32_49 : i32 to vector<1x256xi32>
    %146 = arith.cmpi slt, %144, %145 : vector<1x256xi32>
    %147 = arith.andi %142, %146 : vector<1x256xi1>
    %c240_i32 = arith.constant 240 : i32
    %148 = tpu.dynamic_rotate %93 by %c240_i32 dim 1 : vector<4x256xf32>, i32 -> vector<4x256xf32>
    %cst_50 = arith.constant 0.000000e+00 : f32
    %149 = vector.shape_cast %147 : vector<1x256xi1> to vector<1x256xi1>
    %150 = vector.broadcast %149 : vector<1x256xi1> to vector<4x256xi1>
    %151 = vector.broadcast %cst_50 : f32 to vector<4x256xf32>
    %152 = arith.select %150, %148, %151 : vector<4x256xi1>, vector<4x256xf32>
    %153 = arith.addf %138, %152 : vector<4x256xf32>
    %c2_i32_51 = arith.constant 2 : i32
    %154 = vector.broadcast %c2_i32_51 : i32 to vector<1x256xi32>
    %155 = arith.addi %2, %154 : vector<1x256xi32>
    %c0_i32_52 = arith.constant 0 : i32
    %156 = vector.broadcast %c0_i32_52 : i32 to vector<1x256xi32>
    %157 = arith.cmpi sge, %155, %156 : vector<1x256xi32>
    %c2_i32_53 = arith.constant 2 : i32
    %158 = vector.broadcast %c2_i32_53 : i32 to vector<1x256xi32>
    %159 = arith.addi %2, %158 : vector<1x256xi32>
    %c16_i32_54 = arith.constant 16 : i32
    %160 = vector.broadcast %c16_i32_54 : i32 to vector<1x256xi32>
    %161 = arith.cmpi slt, %159, %160 : vector<1x256xi32>
    %162 = arith.andi %157, %161 : vector<1x256xi1>
    %c224_i32 = arith.constant 224 : i32
    %163 = tpu.dynamic_rotate %93 by %c224_i32 dim 1 : vector<4x256xf32>, i32 -> vector<4x256xf32>
    %cst_55 = arith.constant 0.000000e+00 : f32
    %164 = vector.shape_cast %162 : vector<1x256xi1> to vector<1x256xi1>
    %165 = vector.broadcast %164 : vector<1x256xi1> to vector<4x256xi1>
    %166 = vector.broadcast %cst_55 : f32 to vector<4x256xf32>
    %167 = arith.select %165, %163, %166 : vector<4x256xi1>, vector<4x256xf32>
    %168 = arith.addf %153, %167 : vector<4x256xf32>
    %c3_i32_56 = arith.constant 3 : i32
    %169 = vector.broadcast %c3_i32_56 : i32 to vector<1x256xi32>
    %170 = arith.addi %2, %169 : vector<1x256xi32>
    %c0_i32_57 = arith.constant 0 : i32
    %171 = vector.broadcast %c0_i32_57 : i32 to vector<1x256xi32>
    %172 = arith.cmpi sge, %170, %171 : vector<1x256xi32>
    %c3_i32_58 = arith.constant 3 : i32
    %173 = vector.broadcast %c3_i32_58 : i32 to vector<1x256xi32>
    %174 = arith.addi %2, %173 : vector<1x256xi32>
    %c16_i32_59 = arith.constant 16 : i32
    %175 = vector.broadcast %c16_i32_59 : i32 to vector<1x256xi32>
    %176 = arith.cmpi slt, %174, %175 : vector<1x256xi32>
    %177 = arith.andi %172, %176 : vector<1x256xi1>
    %c208_i32 = arith.constant 208 : i32
    %178 = tpu.dynamic_rotate %93 by %c208_i32 dim 1 : vector<4x256xf32>, i32 -> vector<4x256xf32>
    %cst_60 = arith.constant 0.000000e+00 : f32
    %179 = vector.shape_cast %177 : vector<1x256xi1> to vector<1x256xi1>
    %180 = vector.broadcast %179 : vector<1x256xi1> to vector<4x256xi1>
    %181 = vector.broadcast %cst_60 : f32 to vector<4x256xf32>
    %182 = arith.select %180, %178, %181 : vector<4x256xi1>, vector<4x256xf32>
    %183 = arith.addf %168, %182 : vector<4x256xf32>
    %cst_61 = arith.constant 0.000000e+00 : f32
    %184 = vector.broadcast %cst_61 : f32 to vector<4x256xf32>
    %c16_i32_62 = arith.constant 16 : i32
    %185 = tpu.dynamic_rotate %183 by %c16_i32_62 dim 1 : vector<4x256xf32>, i32 -> vector<4x256xf32>
    %cst_63 = arith.constant 0.000000e+00 : f32
    %186 = vector.shape_cast %131 : vector<1x256xi1> to vector<1x256xi1>
    %187 = vector.broadcast %186 : vector<1x256xi1> to vector<4x256xi1>
    %188 = vector.broadcast %cst_63 : f32 to vector<4x256xf32>
    %189 = arith.select %187, %185, %188 : vector<4x256xi1>, vector<4x256xf32>
    %c0_64 = arith.constant 0 : index
    %c0_65 = arith.constant 0 : index
    %c0_66 = arith.constant 0 : index
    %190 = vector.load %arg4[%c0_64, %c0_65, %c0_66] : memref<9x4x4xf32, #tpu.memory_space<vmem>>, vector<1x4x4xf32>
    %191 = vector.shape_cast %190 : vector<1x4x4xf32> to vector<4x4xf32>
    %c1_i32_67 = arith.constant 1 : i32
    %192 = tpu.dynamic_rotate %189 by %c1_i32_67 dim 1 : vector<4x256xf32>, i32 -> vector<4x256xf32>
    %cst_68 = arith.constant 0.000000e+00 : f32
    %193 = vector.shape_cast %41 : vector<1x256xi1> to vector<1x256xi1>
    %194 = vector.broadcast %193 : vector<1x256xi1> to vector<4x256xi1>
    %195 = vector.broadcast %cst_68 : f32 to vector<4x256xf32>
    %196 = arith.select %194, %192, %195 : vector<4x256xi1>, vector<4x256xf32>
    %cst_69 = arith.constant dense<0.000000e+00> : vector<4x256xf32>
    %197 = tpu.matmul %191, %196, %cst_69 {dimension_numbers = #tpu.dot_dimension_numbers<[1], [0], [0], [1], [0, 0, 1, 1], [], []>} : vector<4x4xf32>, vector<4x256xf32>, vector<4x256xf32> -> vector<4x256xf32>
    %198 = arith.addf %184, %197 : vector<4x256xf32>
    %c1 = arith.constant 1 : index
    %c0_70 = arith.constant 0 : index
    %c0_71 = arith.constant 0 : index
    %199 = vector.load %arg4[%c1, %c0_70, %c0_71] : memref<9x4x4xf32, #tpu.memory_space<vmem>>, vector<1x4x4xf32>
    %200 = vector.shape_cast %199 : vector<1x4x4xf32> to vector<4x4xf32>
    %cst_72 = arith.constant dense<0.000000e+00> : vector<4x256xf32>
    %201 = tpu.matmul %200, %189, %cst_72 {dimension_numbers = #tpu.dot_dimension_numbers<[1], [0], [0], [1], [0, 0, 1, 1], [], []>} : vector<4x4xf32>, vector<4x256xf32>, vector<4x256xf32> -> vector<4x256xf32>
    %202 = arith.addf %198, %201 : vector<4x256xf32>
    %c2 = arith.constant 2 : index
    %c0_73 = arith.constant 0 : index
    %c0_74 = arith.constant 0 : index
    %203 = vector.load %arg4[%c2, %c0_73, %c0_74] : memref<9x4x4xf32, #tpu.memory_space<vmem>>, vector<1x4x4xf32>
    %204 = vector.shape_cast %203 : vector<1x4x4xf32> to vector<4x4xf32>
    %c255_i32_75 = arith.constant 255 : i32
    %205 = tpu.dynamic_rotate %189 by %c255_i32_75 dim 1 : vector<4x256xf32>, i32 -> vector<4x256xf32>
    %cst_76 = arith.constant 0.000000e+00 : f32
    %206 = vector.shape_cast %57 : vector<1x256xi1> to vector<1x256xi1>
    %207 = vector.broadcast %206 : vector<1x256xi1> to vector<4x256xi1>
    %208 = vector.broadcast %cst_76 : f32 to vector<4x256xf32>
    %209 = arith.select %207, %205, %208 : vector<4x256xi1>, vector<4x256xf32>
    %cst_77 = arith.constant dense<0.000000e+00> : vector<4x256xf32>
    %210 = tpu.matmul %204, %209, %cst_77 {dimension_numbers = #tpu.dot_dimension_numbers<[1], [0], [0], [1], [0, 0, 1, 1], [], []>} : vector<4x4xf32>, vector<4x256xf32>, vector<4x256xf32> -> vector<4x256xf32>
    %211 = arith.addf %202, %210 : vector<4x256xf32>
    %c3 = arith.constant 3 : index
    %c0_78 = arith.constant 0 : index
    %c0_79 = arith.constant 0 : index
    %212 = vector.load %arg4[%c3, %c0_78, %c0_79] : memref<9x4x4xf32, #tpu.memory_space<vmem>>, vector<1x4x4xf32>
    %213 = vector.shape_cast %212 : vector<1x4x4xf32> to vector<4x4xf32>
    %c1_i32_80 = arith.constant 1 : i32
    %214 = tpu.dynamic_rotate %183 by %c1_i32_80 dim 1 : vector<4x256xf32>, i32 -> vector<4x256xf32>
    %cst_81 = arith.constant 0.000000e+00 : f32
    %215 = vector.shape_cast %41 : vector<1x256xi1> to vector<1x256xi1>
    %216 = vector.broadcast %215 : vector<1x256xi1> to vector<4x256xi1>
    %217 = vector.broadcast %cst_81 : f32 to vector<4x256xf32>
    %218 = arith.select %216, %214, %217 : vector<4x256xi1>, vector<4x256xf32>
    %cst_82 = arith.constant dense<0.000000e+00> : vector<4x256xf32>
    %219 = tpu.matmul %213, %218, %cst_82 {dimension_numbers = #tpu.dot_dimension_numbers<[1], [0], [0], [1], [0, 0, 1, 1], [], []>} : vector<4x4xf32>, vector<4x256xf32>, vector<4x256xf32> -> vector<4x256xf32>
    %220 = arith.addf %211, %219 : vector<4x256xf32>
    %c4 = arith.constant 4 : index
    %c0_83 = arith.constant 0 : index
    %c0_84 = arith.constant 0 : index
    %221 = vector.load %arg4[%c4, %c0_83, %c0_84] : memref<9x4x4xf32, #tpu.memory_space<vmem>>, vector<1x4x4xf32>
    %222 = vector.shape_cast %221 : vector<1x4x4xf32> to vector<4x4xf32>
    %cst_85 = arith.constant dense<0.000000e+00> : vector<4x256xf32>
    %223 = tpu.matmul %222, %183, %cst_85 {dimension_numbers = #tpu.dot_dimension_numbers<[1], [0], [0], [1], [0, 0, 1, 1], [], []>} : vector<4x4xf32>, vector<4x256xf32>, vector<4x256xf32> -> vector<4x256xf32>
    %224 = arith.addf %220, %223 : vector<4x256xf32>
    %c5 = arith.constant 5 : index
    %c0_86 = arith.constant 0 : index
    %c0_87 = arith.constant 0 : index
    %225 = vector.load %arg4[%c5, %c0_86, %c0_87] : memref<9x4x4xf32, #tpu.memory_space<vmem>>, vector<1x4x4xf32>
    %226 = vector.shape_cast %225 : vector<1x4x4xf32> to vector<4x4xf32>
    %c255_i32_88 = arith.constant 255 : i32
    %227 = tpu.dynamic_rotate %183 by %c255_i32_88 dim 1 : vector<4x256xf32>, i32 -> vector<4x256xf32>
    %cst_89 = arith.constant 0.000000e+00 : f32
    %228 = vector.shape_cast %57 : vector<1x256xi1> to vector<1x256xi1>
    %229 = vector.broadcast %228 : vector<1x256xi1> to vector<4x256xi1>
    %230 = vector.broadcast %cst_89 : f32 to vector<4x256xf32>
    %231 = arith.select %229, %227, %230 : vector<4x256xi1>, vector<4x256xf32>
    %cst_90 = arith.constant dense<0.000000e+00> : vector<4x256xf32>
    %232 = tpu.matmul %226, %231, %cst_90 {dimension_numbers = #tpu.dot_dimension_numbers<[1], [0], [0], [1], [0, 0, 1, 1], [], []>} : vector<4x4xf32>, vector<4x256xf32>, vector<4x256xf32> -> vector<4x256xf32>
    %233 = arith.addf %224, %232 : vector<4x256xf32>
    %c240_i32_91 = arith.constant 240 : i32
    %234 = tpu.dynamic_rotate %183 by %c240_i32_91 dim 1 : vector<4x256xf32>, i32 -> vector<4x256xf32>
    %cst_92 = arith.constant 0.000000e+00 : f32
    %235 = vector.shape_cast %147 : vector<1x256xi1> to vector<1x256xi1>
    %236 = vector.broadcast %235 : vector<1x256xi1> to vector<4x256xi1>
    %237 = vector.broadcast %cst_92 : f32 to vector<4x256xf32>
    %238 = arith.select %236, %234, %237 : vector<4x256xi1>, vector<4x256xf32>
    %c6 = arith.constant 6 : index
    %c0_93 = arith.constant 0 : index
    %c0_94 = arith.constant 0 : index
    %239 = vector.load %arg4[%c6, %c0_93, %c0_94] : memref<9x4x4xf32, #tpu.memory_space<vmem>>, vector<1x4x4xf32>
    %240 = vector.shape_cast %239 : vector<1x4x4xf32> to vector<4x4xf32>
    %c1_i32_95 = arith.constant 1 : i32
    %241 = tpu.dynamic_rotate %238 by %c1_i32_95 dim 1 : vector<4x256xf32>, i32 -> vector<4x256xf32>
    %cst_96 = arith.constant 0.000000e+00 : f32
    %242 = vector.shape_cast %41 : vector<1x256xi1> to vector<1x256xi1>
    %243 = vector.broadcast %242 : vector<1x256xi1> to vector<4x256xi1>
    %244 = vector.broadcast %cst_96 : f32 to vector<4x256xf32>
    %245 = arith.select %243, %241, %244 : vector<4x256xi1>, vector<4x256xf32>
    %cst_97 = arith.constant dense<0.000000e+00> : vector<4x256xf32>
    %246 = tpu.matmul %240, %245, %cst_97 {dimension_numbers = #tpu.dot_dimension_numbers<[1], [0], [0], [1], [0, 0, 1, 1], [], []>} : vector<4x4xf32>, vector<4x256xf32>, vector<4x256xf32> -> vector<4x256xf32>
    %247 = arith.addf %233, %246 : vector<4x256xf32>
    %c7 = arith.constant 7 : index
    %c0_98 = arith.constant 0 : index
    %c0_99 = arith.constant 0 : index
    %248 = vector.load %arg4[%c7, %c0_98, %c0_99] : memref<9x4x4xf32, #tpu.memory_space<vmem>>, vector<1x4x4xf32>
    %249 = vector.shape_cast %248 : vector<1x4x4xf32> to vector<4x4xf32>
    %cst_100 = arith.constant dense<0.000000e+00> : vector<4x256xf32>
    %250 = tpu.matmul %249, %238, %cst_100 {dimension_numbers = #tpu.dot_dimension_numbers<[1], [0], [0], [1], [0, 0, 1, 1], [], []>} : vector<4x4xf32>, vector<4x256xf32>, vector<4x256xf32> -> vector<4x256xf32>
    %251 = arith.addf %247, %250 : vector<4x256xf32>
    %c8 = arith.constant 8 : index
    %c0_101 = arith.constant 0 : index
    %c0_102 = arith.constant 0 : index
    %252 = vector.load %arg4[%c8, %c0_101, %c0_102] : memref<9x4x4xf32, #tpu.memory_space<vmem>>, vector<1x4x4xf32>
    %253 = vector.shape_cast %252 : vector<1x4x4xf32> to vector<4x4xf32>
    %c255_i32_103 = arith.constant 255 : i32
    %254 = tpu.dynamic_rotate %238 by %c255_i32_103 dim 1 : vector<4x256xf32>, i32 -> vector<4x256xf32>
    %cst_104 = arith.constant 0.000000e+00 : f32
    %255 = vector.shape_cast %57 : vector<1x256xi1> to vector<1x256xi1>
    %256 = vector.broadcast %255 : vector<1x256xi1> to vector<4x256xi1>
    %257 = vector.broadcast %cst_104 : f32 to vector<4x256xf32>
    %258 = arith.select %256, %254, %257 : vector<4x256xi1>, vector<4x256xf32>
    %cst_105 = arith.constant dense<0.000000e+00> : vector<4x256xf32>
    %259 = tpu.matmul %253, %258, %cst_105 {dimension_numbers = #tpu.dot_dimension_numbers<[1], [0], [0], [1], [0, 0, 1, 1], [], []>} : vector<4x4xf32>, vector<4x256xf32>, vector<4x256xf32> -> vector<4x256xf32>
    %260 = arith.addf %251, %259 : vector<4x256xf32>
    %c0_106 = arith.constant 0 : index
    %c0_107 = arith.constant 0 : index
    %261 = vector.load %arg5[%c0_106, %c0_107] : memref<4x1xf32, #tpu.memory_space<vmem>>, vector<4x1xf32>
    %262 = vector.broadcast %261 : vector<4x1xf32> to vector<4x256xf32>
    %263 = arith.addf %260, %262 : vector<4x256xf32>
    %264 = arith.negf %263 : vector<4x256xf32>
    %265 = math.exp %264 : vector<4x256xf32>
    %cst_108 = arith.constant 1.000000e+00 : f32
    %266 = vector.broadcast %cst_108 : f32 to vector<4x256xf32>
    %267 = arith.addf %266, %265 : vector<4x256xf32>
    %268 = arith.divf %266, %267 : vector<4x256xf32>
    %269 = arith.mulf %263, %268 : vector<4x256xf32>
    %c0_109 = arith.constant 0 : index
    %c0_110 = arith.constant 0 : index
    %c0_111 = arith.constant 0 : index
    %270 = vector.load %arg6[%c0_109, %c0_110, %c0_111] : memref<11x4x1xf32, #tpu.memory_space<vmem>>, vector<11x4x1xf32>
    %cst_112 = arith.constant 0.000000e+00 : f32
    %271 = vector.broadcast %cst_112 : f32 to vector<4x256xf32>
    %272 = vector.extract_strided_slice %270 {offsets = [0, 0, 0], sizes = [1, 4, 1], strides = [1, 1, 1]} : vector<11x4x1xf32> to vector<1x4x1xf32>
    %273 = vector.shape_cast %272 : vector<1x4x1xf32> to vector<4x1xf32>
    %c-5_i32 = arith.constant -5 : i32
    %274 = vector.broadcast %c-5_i32 : i32 to vector<1x256xi32>
    %275 = arith.addi %3, %274 : vector<1x256xi32>
    %c0_i32_113 = arith.constant 0 : i32
    %276 = vector.broadcast %c0_i32_113 : i32 to vector<1x256xi32>
    %277 = arith.cmpi sge, %275, %276 : vector<1x256xi32>
    %c-5_i32_114 = arith.constant -5 : i32
    %278 = vector.broadcast %c-5_i32_114 : i32 to vector<1x256xi32>
    %279 = arith.addi %3, %278 : vector<1x256xi32>
    %c16_i32_115 = arith.constant 16 : i32
    %280 = vector.broadcast %c16_i32_115 : i32 to vector<1x256xi32>
    %281 = arith.cmpi slt, %279, %280 : vector<1x256xi32>
    %282 = arith.andi %277, %281 : vector<1x256xi1>
    %c5_i32 = arith.constant 5 : i32
    %283 = tpu.dynamic_rotate %269 by %c5_i32 dim 1 : vector<4x256xf32>, i32 -> vector<4x256xf32>
    %cst_116 = arith.constant 0.000000e+00 : f32
    %284 = vector.shape_cast %282 : vector<1x256xi1> to vector<1x256xi1>
    %285 = vector.broadcast %284 : vector<1x256xi1> to vector<4x256xi1>
    %286 = vector.broadcast %cst_116 : f32 to vector<4x256xf32>
    %287 = arith.select %285, %283, %286 : vector<4x256xi1>, vector<4x256xf32>
    %288 = vector.broadcast %273 : vector<4x1xf32> to vector<4x256xf32>
    %289 = arith.mulf %288, %287 : vector<4x256xf32>
    %290 = arith.addf %271, %289 : vector<4x256xf32>
    %291 = vector.extract_strided_slice %270 {offsets = [1, 0, 0], sizes = [1, 4, 1], strides = [1, 1, 1]} : vector<11x4x1xf32> to vector<1x4x1xf32>
    %292 = vector.shape_cast %291 : vector<1x4x1xf32> to vector<4x1xf32>
    %c-4_i32 = arith.constant -4 : i32
    %293 = vector.broadcast %c-4_i32 : i32 to vector<1x256xi32>
    %294 = arith.addi %3, %293 : vector<1x256xi32>
    %c0_i32_117 = arith.constant 0 : i32
    %295 = vector.broadcast %c0_i32_117 : i32 to vector<1x256xi32>
    %296 = arith.cmpi sge, %294, %295 : vector<1x256xi32>
    %c-4_i32_118 = arith.constant -4 : i32
    %297 = vector.broadcast %c-4_i32_118 : i32 to vector<1x256xi32>
    %298 = arith.addi %3, %297 : vector<1x256xi32>
    %c16_i32_119 = arith.constant 16 : i32
    %299 = vector.broadcast %c16_i32_119 : i32 to vector<1x256xi32>
    %300 = arith.cmpi slt, %298, %299 : vector<1x256xi32>
    %301 = arith.andi %296, %300 : vector<1x256xi1>
    %c4_i32 = arith.constant 4 : i32
    %302 = tpu.dynamic_rotate %269 by %c4_i32 dim 1 : vector<4x256xf32>, i32 -> vector<4x256xf32>
    %cst_120 = arith.constant 0.000000e+00 : f32
    %303 = vector.shape_cast %301 : vector<1x256xi1> to vector<1x256xi1>
    %304 = vector.broadcast %303 : vector<1x256xi1> to vector<4x256xi1>
    %305 = vector.broadcast %cst_120 : f32 to vector<4x256xf32>
    %306 = arith.select %304, %302, %305 : vector<4x256xi1>, vector<4x256xf32>
    %307 = vector.broadcast %292 : vector<4x1xf32> to vector<4x256xf32>
    %308 = arith.mulf %307, %306 : vector<4x256xf32>
    %309 = arith.addf %290, %308 : vector<4x256xf32>
    %310 = vector.extract_strided_slice %270 {offsets = [2, 0, 0], sizes = [1, 4, 1], strides = [1, 1, 1]} : vector<11x4x1xf32> to vector<1x4x1xf32>
    %311 = vector.shape_cast %310 : vector<1x4x1xf32> to vector<4x1xf32>
    %c3_i32_121 = arith.constant 3 : i32
    %312 = tpu.dynamic_rotate %269 by %c3_i32_121 dim 1 : vector<4x256xf32>, i32 -> vector<4x256xf32>
    %cst_122 = arith.constant 0.000000e+00 : f32
    %313 = vector.shape_cast %12 : vector<1x256xi1> to vector<1x256xi1>
    %314 = vector.broadcast %313 : vector<1x256xi1> to vector<4x256xi1>
    %315 = vector.broadcast %cst_122 : f32 to vector<4x256xf32>
    %316 = arith.select %314, %312, %315 : vector<4x256xi1>, vector<4x256xf32>
    %317 = vector.broadcast %311 : vector<4x1xf32> to vector<4x256xf32>
    %318 = arith.mulf %317, %316 : vector<4x256xf32>
    %319 = arith.addf %309, %318 : vector<4x256xf32>
    %320 = vector.extract_strided_slice %270 {offsets = [3, 0, 0], sizes = [1, 4, 1], strides = [1, 1, 1]} : vector<11x4x1xf32> to vector<1x4x1xf32>
    %321 = vector.shape_cast %320 : vector<1x4x1xf32> to vector<4x1xf32>
    %c2_i32_123 = arith.constant 2 : i32
    %322 = tpu.dynamic_rotate %269 by %c2_i32_123 dim 1 : vector<4x256xf32>, i32 -> vector<4x256xf32>
    %cst_124 = arith.constant 0.000000e+00 : f32
    %323 = vector.shape_cast %26 : vector<1x256xi1> to vector<1x256xi1>
    %324 = vector.broadcast %323 : vector<1x256xi1> to vector<4x256xi1>
    %325 = vector.broadcast %cst_124 : f32 to vector<4x256xf32>
    %326 = arith.select %324, %322, %325 : vector<4x256xi1>, vector<4x256xf32>
    %327 = vector.broadcast %321 : vector<4x1xf32> to vector<4x256xf32>
    %328 = arith.mulf %327, %326 : vector<4x256xf32>
    %329 = arith.addf %319, %328 : vector<4x256xf32>
    %330 = vector.extract_strided_slice %270 {offsets = [4, 0, 0], sizes = [1, 4, 1], strides = [1, 1, 1]} : vector<11x4x1xf32> to vector<1x4x1xf32>
    %331 = vector.shape_cast %330 : vector<1x4x1xf32> to vector<4x1xf32>
    %c1_i32_125 = arith.constant 1 : i32
    %332 = tpu.dynamic_rotate %269 by %c1_i32_125 dim 1 : vector<4x256xf32>, i32 -> vector<4x256xf32>
    %cst_126 = arith.constant 0.000000e+00 : f32
    %333 = vector.shape_cast %41 : vector<1x256xi1> to vector<1x256xi1>
    %334 = vector.broadcast %333 : vector<1x256xi1> to vector<4x256xi1>
    %335 = vector.broadcast %cst_126 : f32 to vector<4x256xf32>
    %336 = arith.select %334, %332, %335 : vector<4x256xi1>, vector<4x256xf32>
    %337 = vector.broadcast %331 : vector<4x1xf32> to vector<4x256xf32>
    %338 = arith.mulf %337, %336 : vector<4x256xf32>
    %339 = arith.addf %329, %338 : vector<4x256xf32>
    %340 = vector.extract_strided_slice %270 {offsets = [5, 0, 0], sizes = [1, 4, 1], strides = [1, 1, 1]} : vector<11x4x1xf32> to vector<1x4x1xf32>
    %341 = vector.shape_cast %340 : vector<1x4x1xf32> to vector<4x1xf32>
    %342 = vector.broadcast %341 : vector<4x1xf32> to vector<4x256xf32>
    %343 = arith.mulf %342, %269 : vector<4x256xf32>
    %344 = arith.addf %339, %343 : vector<4x256xf32>
    %345 = vector.extract_strided_slice %270 {offsets = [6, 0, 0], sizes = [1, 4, 1], strides = [1, 1, 1]} : vector<11x4x1xf32> to vector<1x4x1xf32>
    %346 = vector.shape_cast %345 : vector<1x4x1xf32> to vector<4x1xf32>
    %c255_i32_127 = arith.constant 255 : i32
    %347 = tpu.dynamic_rotate %269 by %c255_i32_127 dim 1 : vector<4x256xf32>, i32 -> vector<4x256xf32>
    %cst_128 = arith.constant 0.000000e+00 : f32
    %348 = vector.shape_cast %57 : vector<1x256xi1> to vector<1x256xi1>
    %349 = vector.broadcast %348 : vector<1x256xi1> to vector<4x256xi1>
    %350 = vector.broadcast %cst_128 : f32 to vector<4x256xf32>
    %351 = arith.select %349, %347, %350 : vector<4x256xi1>, vector<4x256xf32>
    %352 = vector.broadcast %346 : vector<4x1xf32> to vector<4x256xf32>
    %353 = arith.mulf %352, %351 : vector<4x256xf32>
    %354 = arith.addf %344, %353 : vector<4x256xf32>
    %355 = vector.extract_strided_slice %270 {offsets = [7, 0, 0], sizes = [1, 4, 1], strides = [1, 1, 1]} : vector<11x4x1xf32> to vector<1x4x1xf32>
    %356 = vector.shape_cast %355 : vector<1x4x1xf32> to vector<4x1xf32>
    %c254_i32_129 = arith.constant 254 : i32
    %357 = tpu.dynamic_rotate %269 by %c254_i32_129 dim 1 : vector<4x256xf32>, i32 -> vector<4x256xf32>
    %cst_130 = arith.constant 0.000000e+00 : f32
    %358 = vector.shape_cast %72 : vector<1x256xi1> to vector<1x256xi1>
    %359 = vector.broadcast %358 : vector<1x256xi1> to vector<4x256xi1>
    %360 = vector.broadcast %cst_130 : f32 to vector<4x256xf32>
    %361 = arith.select %359, %357, %360 : vector<4x256xi1>, vector<4x256xf32>
    %362 = vector.broadcast %356 : vector<4x1xf32> to vector<4x256xf32>
    %363 = arith.mulf %362, %361 : vector<4x256xf32>
    %364 = arith.addf %354, %363 : vector<4x256xf32>
    %365 = vector.extract_strided_slice %270 {offsets = [8, 0, 0], sizes = [1, 4, 1], strides = [1, 1, 1]} : vector<11x4x1xf32> to vector<1x4x1xf32>
    %366 = vector.shape_cast %365 : vector<1x4x1xf32> to vector<4x1xf32>
    %c253_i32_131 = arith.constant 253 : i32
    %367 = tpu.dynamic_rotate %269 by %c253_i32_131 dim 1 : vector<4x256xf32>, i32 -> vector<4x256xf32>
    %cst_132 = arith.constant 0.000000e+00 : f32
    %368 = vector.shape_cast %87 : vector<1x256xi1> to vector<1x256xi1>
    %369 = vector.broadcast %368 : vector<1x256xi1> to vector<4x256xi1>
    %370 = vector.broadcast %cst_132 : f32 to vector<4x256xf32>
    %371 = arith.select %369, %367, %370 : vector<4x256xi1>, vector<4x256xf32>
    %372 = vector.broadcast %366 : vector<4x1xf32> to vector<4x256xf32>
    %373 = arith.mulf %372, %371 : vector<4x256xf32>
    %374 = arith.addf %364, %373 : vector<4x256xf32>
    %375 = vector.extract_strided_slice %270 {offsets = [9, 0, 0], sizes = [1, 4, 1], strides = [1, 1, 1]} : vector<11x4x1xf32> to vector<1x4x1xf32>
    %376 = vector.shape_cast %375 : vector<1x4x1xf32> to vector<4x1xf32>
    %c4_i32_133 = arith.constant 4 : i32
    %377 = vector.broadcast %c4_i32_133 : i32 to vector<1x256xi32>
    %378 = arith.addi %3, %377 : vector<1x256xi32>
    %c0_i32_134 = arith.constant 0 : i32
    %379 = vector.broadcast %c0_i32_134 : i32 to vector<1x256xi32>
    %380 = arith.cmpi sge, %378, %379 : vector<1x256xi32>
    %c4_i32_135 = arith.constant 4 : i32
    %381 = vector.broadcast %c4_i32_135 : i32 to vector<1x256xi32>
    %382 = arith.addi %3, %381 : vector<1x256xi32>
    %c16_i32_136 = arith.constant 16 : i32
    %383 = vector.broadcast %c16_i32_136 : i32 to vector<1x256xi32>
    %384 = arith.cmpi slt, %382, %383 : vector<1x256xi32>
    %385 = arith.andi %380, %384 : vector<1x256xi1>
    %c252_i32 = arith.constant 252 : i32
    %386 = tpu.dynamic_rotate %269 by %c252_i32 dim 1 : vector<4x256xf32>, i32 -> vector<4x256xf32>
    %cst_137 = arith.constant 0.000000e+00 : f32
    %387 = vector.shape_cast %385 : vector<1x256xi1> to vector<1x256xi1>
    %388 = vector.broadcast %387 : vector<1x256xi1> to vector<4x256xi1>
    %389 = vector.broadcast %cst_137 : f32 to vector<4x256xf32>
    %390 = arith.select %388, %386, %389 : vector<4x256xi1>, vector<4x256xf32>
    %391 = vector.broadcast %376 : vector<4x1xf32> to vector<4x256xf32>
    %392 = arith.mulf %391, %390 : vector<4x256xf32>
    %393 = arith.addf %374, %392 : vector<4x256xf32>
    %394 = vector.extract_strided_slice %270 {offsets = [10, 0, 0], sizes = [1, 4, 1], strides = [1, 1, 1]} : vector<11x4x1xf32> to vector<1x4x1xf32>
    %395 = vector.shape_cast %394 : vector<1x4x1xf32> to vector<4x1xf32>
    %c5_i32_138 = arith.constant 5 : i32
    %396 = vector.broadcast %c5_i32_138 : i32 to vector<1x256xi32>
    %397 = arith.addi %3, %396 : vector<1x256xi32>
    %c0_i32_139 = arith.constant 0 : i32
    %398 = vector.broadcast %c0_i32_139 : i32 to vector<1x256xi32>
    %399 = arith.cmpi sge, %397, %398 : vector<1x256xi32>
    %c5_i32_140 = arith.constant 5 : i32
    %400 = vector.broadcast %c5_i32_140 : i32 to vector<1x256xi32>
    %401 = arith.addi %3, %400 : vector<1x256xi32>
    %c16_i32_141 = arith.constant 16 : i32
    %402 = vector.broadcast %c16_i32_141 : i32 to vector<1x256xi32>
    %403 = arith.cmpi slt, %401, %402 : vector<1x256xi32>
    %404 = arith.andi %399, %403 : vector<1x256xi1>
    %c251_i32 = arith.constant 251 : i32
    %405 = tpu.dynamic_rotate %269 by %c251_i32 dim 1 : vector<4x256xf32>, i32 -> vector<4x256xf32>
    %cst_142 = arith.constant 0.000000e+00 : f32
    %406 = vector.shape_cast %404 : vector<1x256xi1> to vector<1x256xi1>
    %407 = vector.broadcast %406 : vector<1x256xi1> to vector<4x256xi1>
    %408 = vector.broadcast %cst_142 : f32 to vector<4x256xf32>
    %409 = arith.select %407, %405, %408 : vector<4x256xi1>, vector<4x256xf32>
    %410 = vector.broadcast %395 : vector<4x1xf32> to vector<4x256xf32>
    %411 = arith.mulf %410, %409 : vector<4x256xf32>
    %412 = arith.addf %393, %411 : vector<4x256xf32>
    %c0_143 = arith.constant 0 : index
    %c0_144 = arith.constant 0 : index
    %413 = vector.load %arg7[%c0_143, %c0_144] : memref<4x1xf32, #tpu.memory_space<vmem>>, vector<4x1xf32>
    %414 = vector.broadcast %413 : vector<4x1xf32> to vector<4x256xf32>
    %415 = arith.addf %412, %414 : vector<4x256xf32>
    %c0_145 = arith.constant 0 : index
    %c0_146 = arith.constant 0 : index
    %c0_147 = arith.constant 0 : index
    %416 = vector.load %arg8[%c0_145, %c0_146, %c0_147] : memref<11x4x1xf32, #tpu.memory_space<vmem>>, vector<11x4x1xf32>
    %cst_148 = arith.constant 0.000000e+00 : f32
    %417 = vector.broadcast %cst_148 : f32 to vector<4x256xf32>
    %418 = vector.extract_strided_slice %416 {offsets = [0, 0, 0], sizes = [1, 4, 1], strides = [1, 1, 1]} : vector<11x4x1xf32> to vector<1x4x1xf32>
    %419 = vector.shape_cast %418 : vector<1x4x1xf32> to vector<4x1xf32>
    %c-5_i32_149 = arith.constant -5 : i32
    %420 = vector.broadcast %c-5_i32_149 : i32 to vector<1x256xi32>
    %421 = arith.addi %2, %420 : vector<1x256xi32>
    %c0_i32_150 = arith.constant 0 : i32
    %422 = vector.broadcast %c0_i32_150 : i32 to vector<1x256xi32>
    %423 = arith.cmpi sge, %421, %422 : vector<1x256xi32>
    %c-5_i32_151 = arith.constant -5 : i32
    %424 = vector.broadcast %c-5_i32_151 : i32 to vector<1x256xi32>
    %425 = arith.addi %2, %424 : vector<1x256xi32>
    %c16_i32_152 = arith.constant 16 : i32
    %426 = vector.broadcast %c16_i32_152 : i32 to vector<1x256xi32>
    %427 = arith.cmpi slt, %425, %426 : vector<1x256xi32>
    %428 = arith.andi %423, %427 : vector<1x256xi1>
    %c80_i32 = arith.constant 80 : i32
    %429 = tpu.dynamic_rotate %415 by %c80_i32 dim 1 : vector<4x256xf32>, i32 -> vector<4x256xf32>
    %cst_153 = arith.constant 0.000000e+00 : f32
    %430 = vector.shape_cast %428 : vector<1x256xi1> to vector<1x256xi1>
    %431 = vector.broadcast %430 : vector<1x256xi1> to vector<4x256xi1>
    %432 = vector.broadcast %cst_153 : f32 to vector<4x256xf32>
    %433 = arith.select %431, %429, %432 : vector<4x256xi1>, vector<4x256xf32>
    %434 = vector.broadcast %419 : vector<4x1xf32> to vector<4x256xf32>
    %435 = arith.mulf %434, %433 : vector<4x256xf32>
    %436 = arith.addf %417, %435 : vector<4x256xf32>
    %437 = vector.extract_strided_slice %416 {offsets = [1, 0, 0], sizes = [1, 4, 1], strides = [1, 1, 1]} : vector<11x4x1xf32> to vector<1x4x1xf32>
    %438 = vector.shape_cast %437 : vector<1x4x1xf32> to vector<4x1xf32>
    %c-4_i32_154 = arith.constant -4 : i32
    %439 = vector.broadcast %c-4_i32_154 : i32 to vector<1x256xi32>
    %440 = arith.addi %2, %439 : vector<1x256xi32>
    %c0_i32_155 = arith.constant 0 : i32
    %441 = vector.broadcast %c0_i32_155 : i32 to vector<1x256xi32>
    %442 = arith.cmpi sge, %440, %441 : vector<1x256xi32>
    %c-4_i32_156 = arith.constant -4 : i32
    %443 = vector.broadcast %c-4_i32_156 : i32 to vector<1x256xi32>
    %444 = arith.addi %2, %443 : vector<1x256xi32>
    %c16_i32_157 = arith.constant 16 : i32
    %445 = vector.broadcast %c16_i32_157 : i32 to vector<1x256xi32>
    %446 = arith.cmpi slt, %444, %445 : vector<1x256xi32>
    %447 = arith.andi %442, %446 : vector<1x256xi1>
    %c64_i32 = arith.constant 64 : i32
    %448 = tpu.dynamic_rotate %415 by %c64_i32 dim 1 : vector<4x256xf32>, i32 -> vector<4x256xf32>
    %cst_158 = arith.constant 0.000000e+00 : f32
    %449 = vector.shape_cast %447 : vector<1x256xi1> to vector<1x256xi1>
    %450 = vector.broadcast %449 : vector<1x256xi1> to vector<4x256xi1>
    %451 = vector.broadcast %cst_158 : f32 to vector<4x256xf32>
    %452 = arith.select %450, %448, %451 : vector<4x256xi1>, vector<4x256xf32>
    %453 = vector.broadcast %438 : vector<4x1xf32> to vector<4x256xf32>
    %454 = arith.mulf %453, %452 : vector<4x256xf32>
    %455 = arith.addf %436, %454 : vector<4x256xf32>
    %456 = vector.extract_strided_slice %416 {offsets = [2, 0, 0], sizes = [1, 4, 1], strides = [1, 1, 1]} : vector<11x4x1xf32> to vector<1x4x1xf32>
    %457 = vector.shape_cast %456 : vector<1x4x1xf32> to vector<4x1xf32>
    %c48_i32_159 = arith.constant 48 : i32
    %458 = tpu.dynamic_rotate %415 by %c48_i32_159 dim 1 : vector<4x256xf32>, i32 -> vector<4x256xf32>
    %cst_160 = arith.constant 0.000000e+00 : f32
    %459 = vector.shape_cast %102 : vector<1x256xi1> to vector<1x256xi1>
    %460 = vector.broadcast %459 : vector<1x256xi1> to vector<4x256xi1>
    %461 = vector.broadcast %cst_160 : f32 to vector<4x256xf32>
    %462 = arith.select %460, %458, %461 : vector<4x256xi1>, vector<4x256xf32>
    %463 = vector.broadcast %457 : vector<4x1xf32> to vector<4x256xf32>
    %464 = arith.mulf %463, %462 : vector<4x256xf32>
    %465 = arith.addf %455, %464 : vector<4x256xf32>
    %466 = vector.extract_strided_slice %416 {offsets = [3, 0, 0], sizes = [1, 4, 1], strides = [1, 1, 1]} : vector<11x4x1xf32> to vector<1x4x1xf32>
    %467 = vector.shape_cast %466 : vector<1x4x1xf32> to vector<4x1xf32>
    %c32_i32_161 = arith.constant 32 : i32
    %468 = tpu.dynamic_rotate %415 by %c32_i32_161 dim 1 : vector<4x256xf32>, i32 -> vector<4x256xf32>
    %cst_162 = arith.constant 0.000000e+00 : f32
    %469 = vector.shape_cast %116 : vector<1x256xi1> to vector<1x256xi1>
    %470 = vector.broadcast %469 : vector<1x256xi1> to vector<4x256xi1>
    %471 = vector.broadcast %cst_162 : f32 to vector<4x256xf32>
    %472 = arith.select %470, %468, %471 : vector<4x256xi1>, vector<4x256xf32>
    %473 = vector.broadcast %467 : vector<4x1xf32> to vector<4x256xf32>
    %474 = arith.mulf %473, %472 : vector<4x256xf32>
    %475 = arith.addf %465, %474 : vector<4x256xf32>
    %476 = vector.extract_strided_slice %416 {offsets = [4, 0, 0], sizes = [1, 4, 1], strides = [1, 1, 1]} : vector<11x4x1xf32> to vector<1x4x1xf32>
    %477 = vector.shape_cast %476 : vector<1x4x1xf32> to vector<4x1xf32>
    %c16_i32_163 = arith.constant 16 : i32
    %478 = tpu.dynamic_rotate %415 by %c16_i32_163 dim 1 : vector<4x256xf32>, i32 -> vector<4x256xf32>
    %cst_164 = arith.constant 0.000000e+00 : f32
    %479 = vector.shape_cast %131 : vector<1x256xi1> to vector<1x256xi1>
    %480 = vector.broadcast %479 : vector<1x256xi1> to vector<4x256xi1>
    %481 = vector.broadcast %cst_164 : f32 to vector<4x256xf32>
    %482 = arith.select %480, %478, %481 : vector<4x256xi1>, vector<4x256xf32>
    %483 = vector.broadcast %477 : vector<4x1xf32> to vector<4x256xf32>
    %484 = arith.mulf %483, %482 : vector<4x256xf32>
    %485 = arith.addf %475, %484 : vector<4x256xf32>
    %486 = vector.extract_strided_slice %416 {offsets = [5, 0, 0], sizes = [1, 4, 1], strides = [1, 1, 1]} : vector<11x4x1xf32> to vector<1x4x1xf32>
    %487 = vector.shape_cast %486 : vector<1x4x1xf32> to vector<4x1xf32>
    %488 = vector.broadcast %487 : vector<4x1xf32> to vector<4x256xf32>
    %489 = arith.mulf %488, %415 : vector<4x256xf32>
    %490 = arith.addf %485, %489 : vector<4x256xf32>
    %491 = vector.extract_strided_slice %416 {offsets = [6, 0, 0], sizes = [1, 4, 1], strides = [1, 1, 1]} : vector<11x4x1xf32> to vector<1x4x1xf32>
    %492 = vector.shape_cast %491 : vector<1x4x1xf32> to vector<4x1xf32>
    %c240_i32_165 = arith.constant 240 : i32
    %493 = tpu.dynamic_rotate %415 by %c240_i32_165 dim 1 : vector<4x256xf32>, i32 -> vector<4x256xf32>
    %cst_166 = arith.constant 0.000000e+00 : f32
    %494 = vector.shape_cast %147 : vector<1x256xi1> to vector<1x256xi1>
    %495 = vector.broadcast %494 : vector<1x256xi1> to vector<4x256xi1>
    %496 = vector.broadcast %cst_166 : f32 to vector<4x256xf32>
    %497 = arith.select %495, %493, %496 : vector<4x256xi1>, vector<4x256xf32>
    %498 = vector.broadcast %492 : vector<4x1xf32> to vector<4x256xf32>
    %499 = arith.mulf %498, %497 : vector<4x256xf32>
    %500 = arith.addf %490, %499 : vector<4x256xf32>
    %501 = vector.extract_strided_slice %416 {offsets = [7, 0, 0], sizes = [1, 4, 1], strides = [1, 1, 1]} : vector<11x4x1xf32> to vector<1x4x1xf32>
    %502 = vector.shape_cast %501 : vector<1x4x1xf32> to vector<4x1xf32>
    %c224_i32_167 = arith.constant 224 : i32
    %503 = tpu.dynamic_rotate %415 by %c224_i32_167 dim 1 : vector<4x256xf32>, i32 -> vector<4x256xf32>
    %cst_168 = arith.constant 0.000000e+00 : f32
    %504 = vector.shape_cast %162 : vector<1x256xi1> to vector<1x256xi1>
    %505 = vector.broadcast %504 : vector<1x256xi1> to vector<4x256xi1>
    %506 = vector.broadcast %cst_168 : f32 to vector<4x256xf32>
    %507 = arith.select %505, %503, %506 : vector<4x256xi1>, vector<4x256xf32>
    %508 = vector.broadcast %502 : vector<4x1xf32> to vector<4x256xf32>
    %509 = arith.mulf %508, %507 : vector<4x256xf32>
    %510 = arith.addf %500, %509 : vector<4x256xf32>
    %511 = vector.extract_strided_slice %416 {offsets = [8, 0, 0], sizes = [1, 4, 1], strides = [1, 1, 1]} : vector<11x4x1xf32> to vector<1x4x1xf32>
    %512 = vector.shape_cast %511 : vector<1x4x1xf32> to vector<4x1xf32>
    %c208_i32_169 = arith.constant 208 : i32
    %513 = tpu.dynamic_rotate %415 by %c208_i32_169 dim 1 : vector<4x256xf32>, i32 -> vector<4x256xf32>
    %cst_170 = arith.constant 0.000000e+00 : f32
    %514 = vector.shape_cast %177 : vector<1x256xi1> to vector<1x256xi1>
    %515 = vector.broadcast %514 : vector<1x256xi1> to vector<4x256xi1>
    %516 = vector.broadcast %cst_170 : f32 to vector<4x256xf32>
    %517 = arith.select %515, %513, %516 : vector<4x256xi1>, vector<4x256xf32>
    %518 = vector.broadcast %512 : vector<4x1xf32> to vector<4x256xf32>
    %519 = arith.mulf %518, %517 : vector<4x256xf32>
    %520 = arith.addf %510, %519 : vector<4x256xf32>
    %521 = vector.extract_strided_slice %416 {offsets = [9, 0, 0], sizes = [1, 4, 1], strides = [1, 1, 1]} : vector<11x4x1xf32> to vector<1x4x1xf32>
    %522 = vector.shape_cast %521 : vector<1x4x1xf32> to vector<4x1xf32>
    %c4_i32_171 = arith.constant 4 : i32
    %523 = vector.broadcast %c4_i32_171 : i32 to vector<1x256xi32>
    %524 = arith.addi %2, %523 : vector<1x256xi32>
    %c0_i32_172 = arith.constant 0 : i32
    %525 = vector.broadcast %c0_i32_172 : i32 to vector<1x256xi32>
    %526 = arith.cmpi sge, %524, %525 : vector<1x256xi32>
    %c4_i32_173 = arith.constant 4 : i32
    %527 = vector.broadcast %c4_i32_173 : i32 to vector<1x256xi32>
    %528 = arith.addi %2, %527 : vector<1x256xi32>
    %c16_i32_174 = arith.constant 16 : i32
    %529 = vector.broadcast %c16_i32_174 : i32 to vector<1x256xi32>
    %530 = arith.cmpi slt, %528, %529 : vector<1x256xi32>
    %531 = arith.andi %526, %530 : vector<1x256xi1>
    %c192_i32 = arith.constant 192 : i32
    %532 = tpu.dynamic_rotate %415 by %c192_i32 dim 1 : vector<4x256xf32>, i32 -> vector<4x256xf32>
    %cst_175 = arith.constant 0.000000e+00 : f32
    %533 = vector.shape_cast %531 : vector<1x256xi1> to vector<1x256xi1>
    %534 = vector.broadcast %533 : vector<1x256xi1> to vector<4x256xi1>
    %535 = vector.broadcast %cst_175 : f32 to vector<4x256xf32>
    %536 = arith.select %534, %532, %535 : vector<4x256xi1>, vector<4x256xf32>
    %537 = vector.broadcast %522 : vector<4x1xf32> to vector<4x256xf32>
    %538 = arith.mulf %537, %536 : vector<4x256xf32>
    %539 = arith.addf %520, %538 : vector<4x256xf32>
    %540 = vector.extract_strided_slice %416 {offsets = [10, 0, 0], sizes = [1, 4, 1], strides = [1, 1, 1]} : vector<11x4x1xf32> to vector<1x4x1xf32>
    %541 = vector.shape_cast %540 : vector<1x4x1xf32> to vector<4x1xf32>
    %c5_i32_176 = arith.constant 5 : i32
    %542 = vector.broadcast %c5_i32_176 : i32 to vector<1x256xi32>
    %543 = arith.addi %2, %542 : vector<1x256xi32>
    %c0_i32_177 = arith.constant 0 : i32
    %544 = vector.broadcast %c0_i32_177 : i32 to vector<1x256xi32>
    %545 = arith.cmpi sge, %543, %544 : vector<1x256xi32>
    %c5_i32_178 = arith.constant 5 : i32
    %546 = vector.broadcast %c5_i32_178 : i32 to vector<1x256xi32>
    %547 = arith.addi %2, %546 : vector<1x256xi32>
    %c16_i32_179 = arith.constant 16 : i32
    %548 = vector.broadcast %c16_i32_179 : i32 to vector<1x256xi32>
    %549 = arith.cmpi slt, %547, %548 : vector<1x256xi32>
    %550 = arith.andi %545, %549 : vector<1x256xi1>
    %c176_i32 = arith.constant 176 : i32
    %551 = tpu.dynamic_rotate %415 by %c176_i32 dim 1 : vector<4x256xf32>, i32 -> vector<4x256xf32>
    %cst_180 = arith.constant 0.000000e+00 : f32
    %552 = vector.shape_cast %550 : vector<1x256xi1> to vector<1x256xi1>
    %553 = vector.broadcast %552 : vector<1x256xi1> to vector<4x256xi1>
    %554 = vector.broadcast %cst_180 : f32 to vector<4x256xf32>
    %555 = arith.select %553, %551, %554 : vector<4x256xi1>, vector<4x256xf32>
    %556 = vector.broadcast %541 : vector<4x1xf32> to vector<4x256xf32>
    %557 = arith.mulf %556, %555 : vector<4x256xf32>
    %558 = arith.addf %539, %557 : vector<4x256xf32>
    %c0_181 = arith.constant 0 : index
    %c0_182 = arith.constant 0 : index
    %559 = vector.load %arg9[%c0_181, %c0_182] : memref<4x1xf32, #tpu.memory_space<vmem>>, vector<4x1xf32>
    %560 = vector.broadcast %559 : vector<4x1xf32> to vector<4x256xf32>
    %561 = arith.addf %558, %560 : vector<4x256xf32>
    %cst_183 = arith.constant 0.000000e+00 : f32
    %562 = vector.broadcast %cst_183 : f32 to vector<4x256xf32>
    %c16_i32_184 = arith.constant 16 : i32
    %563 = tpu.dynamic_rotate %561 by %c16_i32_184 dim 1 : vector<4x256xf32>, i32 -> vector<4x256xf32>
    %cst_185 = arith.constant 0.000000e+00 : f32
    %564 = vector.shape_cast %131 : vector<1x256xi1> to vector<1x256xi1>
    %565 = vector.broadcast %564 : vector<1x256xi1> to vector<4x256xi1>
    %566 = vector.broadcast %cst_185 : f32 to vector<4x256xf32>
    %567 = arith.select %565, %563, %566 : vector<4x256xi1>, vector<4x256xf32>
    %c0_186 = arith.constant 0 : index
    %c0_187 = arith.constant 0 : index
    %c0_188 = arith.constant 0 : index
    %568 = vector.load %arg10[%c0_186, %c0_187, %c0_188] : memref<9x4x4xf32, #tpu.memory_space<vmem>>, vector<1x4x4xf32>
    %569 = vector.shape_cast %568 : vector<1x4x4xf32> to vector<4x4xf32>
    %c1_i32_189 = arith.constant 1 : i32
    %570 = tpu.dynamic_rotate %567 by %c1_i32_189 dim 1 : vector<4x256xf32>, i32 -> vector<4x256xf32>
    %cst_190 = arith.constant 0.000000e+00 : f32
    %571 = vector.shape_cast %41 : vector<1x256xi1> to vector<1x256xi1>
    %572 = vector.broadcast %571 : vector<1x256xi1> to vector<4x256xi1>
    %573 = vector.broadcast %cst_190 : f32 to vector<4x256xf32>
    %574 = arith.select %572, %570, %573 : vector<4x256xi1>, vector<4x256xf32>
    %cst_191 = arith.constant dense<0.000000e+00> : vector<4x256xf32>
    %575 = tpu.matmul %569, %574, %cst_191 {dimension_numbers = #tpu.dot_dimension_numbers<[1], [0], [0], [1], [0, 0, 1, 1], [], []>} : vector<4x4xf32>, vector<4x256xf32>, vector<4x256xf32> -> vector<4x256xf32>
    %576 = arith.addf %562, %575 : vector<4x256xf32>
    %c1_192 = arith.constant 1 : index
    %c0_193 = arith.constant 0 : index
    %c0_194 = arith.constant 0 : index
    %577 = vector.load %arg10[%c1_192, %c0_193, %c0_194] : memref<9x4x4xf32, #tpu.memory_space<vmem>>, vector<1x4x4xf32>
    %578 = vector.shape_cast %577 : vector<1x4x4xf32> to vector<4x4xf32>
    %cst_195 = arith.constant dense<0.000000e+00> : vector<4x256xf32>
    %579 = tpu.matmul %578, %567, %cst_195 {dimension_numbers = #tpu.dot_dimension_numbers<[1], [0], [0], [1], [0, 0, 1, 1], [], []>} : vector<4x4xf32>, vector<4x256xf32>, vector<4x256xf32> -> vector<4x256xf32>
    %580 = arith.addf %576, %579 : vector<4x256xf32>
    %c2_196 = arith.constant 2 : index
    %c0_197 = arith.constant 0 : index
    %c0_198 = arith.constant 0 : index
    %581 = vector.load %arg10[%c2_196, %c0_197, %c0_198] : memref<9x4x4xf32, #tpu.memory_space<vmem>>, vector<1x4x4xf32>
    %582 = vector.shape_cast %581 : vector<1x4x4xf32> to vector<4x4xf32>
    %c255_i32_199 = arith.constant 255 : i32
    %583 = tpu.dynamic_rotate %567 by %c255_i32_199 dim 1 : vector<4x256xf32>, i32 -> vector<4x256xf32>
    %cst_200 = arith.constant 0.000000e+00 : f32
    %584 = vector.shape_cast %57 : vector<1x256xi1> to vector<1x256xi1>
    %585 = vector.broadcast %584 : vector<1x256xi1> to vector<4x256xi1>
    %586 = vector.broadcast %cst_200 : f32 to vector<4x256xf32>
    %587 = arith.select %585, %583, %586 : vector<4x256xi1>, vector<4x256xf32>
    %cst_201 = arith.constant dense<0.000000e+00> : vector<4x256xf32>
    %588 = tpu.matmul %582, %587, %cst_201 {dimension_numbers = #tpu.dot_dimension_numbers<[1], [0], [0], [1], [0, 0, 1, 1], [], []>} : vector<4x4xf32>, vector<4x256xf32>, vector<4x256xf32> -> vector<4x256xf32>
    %589 = arith.addf %580, %588 : vector<4x256xf32>
    %c3_202 = arith.constant 3 : index
    %c0_203 = arith.constant 0 : index
    %c0_204 = arith.constant 0 : index
    %590 = vector.load %arg10[%c3_202, %c0_203, %c0_204] : memref<9x4x4xf32, #tpu.memory_space<vmem>>, vector<1x4x4xf32>
    %591 = vector.shape_cast %590 : vector<1x4x4xf32> to vector<4x4xf32>
    %c1_i32_205 = arith.constant 1 : i32
    %592 = tpu.dynamic_rotate %561 by %c1_i32_205 dim 1 : vector<4x256xf32>, i32 -> vector<4x256xf32>
    %cst_206 = arith.constant 0.000000e+00 : f32
    %593 = vector.shape_cast %41 : vector<1x256xi1> to vector<1x256xi1>
    %594 = vector.broadcast %593 : vector<1x256xi1> to vector<4x256xi1>
    %595 = vector.broadcast %cst_206 : f32 to vector<4x256xf32>
    %596 = arith.select %594, %592, %595 : vector<4x256xi1>, vector<4x256xf32>
    %cst_207 = arith.constant dense<0.000000e+00> : vector<4x256xf32>
    %597 = tpu.matmul %591, %596, %cst_207 {dimension_numbers = #tpu.dot_dimension_numbers<[1], [0], [0], [1], [0, 0, 1, 1], [], []>} : vector<4x4xf32>, vector<4x256xf32>, vector<4x256xf32> -> vector<4x256xf32>
    %598 = arith.addf %589, %597 : vector<4x256xf32>
    %c4_208 = arith.constant 4 : index
    %c0_209 = arith.constant 0 : index
    %c0_210 = arith.constant 0 : index
    %599 = vector.load %arg10[%c4_208, %c0_209, %c0_210] : memref<9x4x4xf32, #tpu.memory_space<vmem>>, vector<1x4x4xf32>
    %600 = vector.shape_cast %599 : vector<1x4x4xf32> to vector<4x4xf32>
    %cst_211 = arith.constant dense<0.000000e+00> : vector<4x256xf32>
    %601 = tpu.matmul %600, %561, %cst_211 {dimension_numbers = #tpu.dot_dimension_numbers<[1], [0], [0], [1], [0, 0, 1, 1], [], []>} : vector<4x4xf32>, vector<4x256xf32>, vector<4x256xf32> -> vector<4x256xf32>
    %602 = arith.addf %598, %601 : vector<4x256xf32>
    %c5_212 = arith.constant 5 : index
    %c0_213 = arith.constant 0 : index
    %c0_214 = arith.constant 0 : index
    %603 = vector.load %arg10[%c5_212, %c0_213, %c0_214] : memref<9x4x4xf32, #tpu.memory_space<vmem>>, vector<1x4x4xf32>
    %604 = vector.shape_cast %603 : vector<1x4x4xf32> to vector<4x4xf32>
    %c255_i32_215 = arith.constant 255 : i32
    %605 = tpu.dynamic_rotate %561 by %c255_i32_215 dim 1 : vector<4x256xf32>, i32 -> vector<4x256xf32>
    %cst_216 = arith.constant 0.000000e+00 : f32
    %606 = vector.shape_cast %57 : vector<1x256xi1> to vector<1x256xi1>
    %607 = vector.broadcast %606 : vector<1x256xi1> to vector<4x256xi1>
    %608 = vector.broadcast %cst_216 : f32 to vector<4x256xf32>
    %609 = arith.select %607, %605, %608 : vector<4x256xi1>, vector<4x256xf32>
    %cst_217 = arith.constant dense<0.000000e+00> : vector<4x256xf32>
    %610 = tpu.matmul %604, %609, %cst_217 {dimension_numbers = #tpu.dot_dimension_numbers<[1], [0], [0], [1], [0, 0, 1, 1], [], []>} : vector<4x4xf32>, vector<4x256xf32>, vector<4x256xf32> -> vector<4x256xf32>
    %611 = arith.addf %602, %610 : vector<4x256xf32>
    %c240_i32_218 = arith.constant 240 : i32
    %612 = tpu.dynamic_rotate %561 by %c240_i32_218 dim 1 : vector<4x256xf32>, i32 -> vector<4x256xf32>
    %cst_219 = arith.constant 0.000000e+00 : f32
    %613 = vector.shape_cast %147 : vector<1x256xi1> to vector<1x256xi1>
    %614 = vector.broadcast %613 : vector<1x256xi1> to vector<4x256xi1>
    %615 = vector.broadcast %cst_219 : f32 to vector<4x256xf32>
    %616 = arith.select %614, %612, %615 : vector<4x256xi1>, vector<4x256xf32>
    %c6_220 = arith.constant 6 : index
    %c0_221 = arith.constant 0 : index
    %c0_222 = arith.constant 0 : index
    %617 = vector.load %arg10[%c6_220, %c0_221, %c0_222] : memref<9x4x4xf32, #tpu.memory_space<vmem>>, vector<1x4x4xf32>
    %618 = vector.shape_cast %617 : vector<1x4x4xf32> to vector<4x4xf32>
    %c1_i32_223 = arith.constant 1 : i32
    %619 = tpu.dynamic_rotate %616 by %c1_i32_223 dim 1 : vector<4x256xf32>, i32 -> vector<4x256xf32>
    %cst_224 = arith.constant 0.000000e+00 : f32
    %620 = vector.shape_cast %41 : vector<1x256xi1> to vector<1x256xi1>
    %621 = vector.broadcast %620 : vector<1x256xi1> to vector<4x256xi1>
    %622 = vector.broadcast %cst_224 : f32 to vector<4x256xf32>
    %623 = arith.select %621, %619, %622 : vector<4x256xi1>, vector<4x256xf32>
    %cst_225 = arith.constant dense<0.000000e+00> : vector<4x256xf32>
    %624 = tpu.matmul %618, %623, %cst_225 {dimension_numbers = #tpu.dot_dimension_numbers<[1], [0], [0], [1], [0, 0, 1, 1], [], []>} : vector<4x4xf32>, vector<4x256xf32>, vector<4x256xf32> -> vector<4x256xf32>
    %625 = arith.addf %611, %624 : vector<4x256xf32>
    %c7_226 = arith.constant 7 : index
    %c0_227 = arith.constant 0 : index
    %c0_228 = arith.constant 0 : index
    %626 = vector.load %arg10[%c7_226, %c0_227, %c0_228] : memref<9x4x4xf32, #tpu.memory_space<vmem>>, vector<1x4x4xf32>
    %627 = vector.shape_cast %626 : vector<1x4x4xf32> to vector<4x4xf32>
    %cst_229 = arith.constant dense<0.000000e+00> : vector<4x256xf32>
    %628 = tpu.matmul %627, %616, %cst_229 {dimension_numbers = #tpu.dot_dimension_numbers<[1], [0], [0], [1], [0, 0, 1, 1], [], []>} : vector<4x4xf32>, vector<4x256xf32>, vector<4x256xf32> -> vector<4x256xf32>
    %629 = arith.addf %625, %628 : vector<4x256xf32>
    %c8_230 = arith.constant 8 : index
    %c0_231 = arith.constant 0 : index
    %c0_232 = arith.constant 0 : index
    %630 = vector.load %arg10[%c8_230, %c0_231, %c0_232] : memref<9x4x4xf32, #tpu.memory_space<vmem>>, vector<1x4x4xf32>
    %631 = vector.shape_cast %630 : vector<1x4x4xf32> to vector<4x4xf32>
    %c255_i32_233 = arith.constant 255 : i32
    %632 = tpu.dynamic_rotate %616 by %c255_i32_233 dim 1 : vector<4x256xf32>, i32 -> vector<4x256xf32>
    %cst_234 = arith.constant 0.000000e+00 : f32
    %633 = vector.shape_cast %57 : vector<1x256xi1> to vector<1x256xi1>
    %634 = vector.broadcast %633 : vector<1x256xi1> to vector<4x256xi1>
    %635 = vector.broadcast %cst_234 : f32 to vector<4x256xf32>
    %636 = arith.select %634, %632, %635 : vector<4x256xi1>, vector<4x256xf32>
    %cst_235 = arith.constant dense<0.000000e+00> : vector<4x256xf32>
    %637 = tpu.matmul %631, %636, %cst_235 {dimension_numbers = #tpu.dot_dimension_numbers<[1], [0], [0], [1], [0, 0, 1, 1], [], []>} : vector<4x4xf32>, vector<4x256xf32>, vector<4x256xf32> -> vector<4x256xf32>
    %638 = arith.addf %629, %637 : vector<4x256xf32>
    %c0_236 = arith.constant 0 : index
    %c0_237 = arith.constant 0 : index
    %639 = vector.load %arg11[%c0_236, %c0_237] : memref<4x1xf32, #tpu.memory_space<vmem>>, vector<4x1xf32>
    %640 = vector.broadcast %639 : vector<4x1xf32> to vector<4x256xf32>
    %641 = arith.addf %638, %640 : vector<4x256xf32>
    %642 = arith.negf %641 : vector<4x256xf32>
    %643 = math.exp %642 : vector<4x256xf32>
    %cst_238 = arith.constant 1.000000e+00 : f32
    %644 = vector.broadcast %cst_238 : f32 to vector<4x256xf32>
    %645 = arith.addf %644, %643 : vector<4x256xf32>
    %646 = arith.divf %644, %645 : vector<4x256xf32>
    %647 = arith.mulf %641, %646 : vector<4x256xf32>
    %648 = arith.negf %647 : vector<4x256xf32>
    %649 = math.exp %648 : vector<4x256xf32>
    %cst_239 = arith.constant 1.000000e+00 : f32
    %650 = vector.broadcast %cst_239 : f32 to vector<4x256xf32>
    %651 = arith.addf %650, %649 : vector<4x256xf32>
    %652 = arith.divf %650, %651 : vector<4x256xf32>
    %653 = arith.mulf %652, %1 : vector<4x256xf32>
    %c0_240 = arith.constant 0 : index
    %c0_241 = arith.constant 0 : index
    %c0_242 = arith.constant 0 : index
    %654 = vector.load %arg12[%c0_240, %c0_241, %c0_242] : memref<1x4x256xf32, #tpu.memory_space<vmem>>, vector<1x4x256xf32>
    %655 = vector.shape_cast %654 : vector<1x4x256xf32> to vector<4x256xf32>
    %656 = vector.shape_cast %653 : vector<4x256xf32> to vector<1x4x256xf32>
    tpu.vector_store %arg12[%c0_240, %c0_241, %c0_242], %656 {strides = array<i32>} : memref<1x4x256xf32, #tpu.memory_space<vmem>>, vector<1x4x256xf32>,
    return
  }
  func.func @transform_0(%arg0: i32) -> (i32, i32, i32) {
    %c0_i32 = arith.constant 0 : i32
    %c0_i32_0 = arith.constant 0 : i32
    %c0_i32_1 = arith.constant 0 : i32
    return %arg0, %c0_i32, %c0_i32_0 : i32, i32, i32
  }
  func.func @transform_1(%arg0: i32) -> (i32, i32) {
    %c0_i32 = arith.constant 0 : i32
    %c0_i32_0 = arith.constant 0 : i32
    %c0_i32_1 = arith.constant 0 : i32
    return %c0_i32, %c0_i32_0 : i32, i32
  }
  func.func @transform_2(%arg0: i32) -> (i32, i32) {
    %c0_i32 = arith.constant 0 : i32
    %c0_i32_0 = arith.constant 0 : i32
    %c0_i32_1 = arith.constant 0 : i32
    return %c0_i32, %c0_i32_0 : i32, i32
  }
  func.func @transform_3(%arg0: i32) -> (i32, i32, i32) {
    %c0_i32 = arith.constant 0 : i32
    %c0_i32_0 = arith.constant 0 : i32
    %c0_i32_1 = arith.constant 0 : i32
    %c0_i32_2 = arith.constant 0 : i32
    return %c0_i32, %c0_i32_0, %c0_i32_1 : i32, i32, i32
  }
  func.func @transform_4(%arg0: i32) -> (i32, i32) {
    %c0_i32 = arith.constant 0 : i32
    %c0_i32_0 = arith.constant 0 : i32
    %c0_i32_1 = arith.constant 0 : i32
    return %c0_i32, %c0_i32_0 : i32, i32
  }
  func.func @transform_5(%arg0: i32) -> (i32, i32, i32) {
    %c0_i32 = arith.constant 0 : i32
    %c0_i32_0 = arith.constant 0 : i32
    %c0_i32_1 = arith.constant 0 : i32
    %c0_i32_2 = arith.constant 0 : i32
    return %c0_i32, %c0_i32_0, %c0_i32_1 : i32, i32, i32
  }
  func.func @transform_6(%arg0: i32) -> (i32, i32) {
    %c0_i32 = arith.constant 0 : i32
    %c0_i32_0 = arith.constant 0 : i32
    %c0_i32_1 = arith.constant 0 : i32
    return %c0_i32, %c0_i32_0 : i32, i32
  }
  func.func @transform_7(%arg0: i32) -> (i32, i32, i32) {
    %c0_i32 = arith.constant 0 : i32
    %c0_i32_0 = arith.constant 0 : i32
    %c0_i32_1 = arith.constant 0 : i32
    %c0_i32_2 = arith.constant 0 : i32
    return %c0_i32, %c0_i32_0, %c0_i32_1 : i32, i32, i32
  }
  func.func @transform_8(%arg0: i32) -> (i32, i32) {
    %c0_i32 = arith.constant 0 : i32
    %c0_i32_0 = arith.constant 0 : i32
    %c0_i32_1 = arith.constant 0 : i32
    return %c0_i32, %c0_i32_0 : i32, i32
  }
  func.func @transform_9(%arg0: i32) -> (i32, i32, i32) {
    %c0_i32 = arith.constant 0 : i32
    %c0_i32_0 = arith.constant 0 : i32
    %c0_i32_1 = arith.constant 0 : i32
    %c0_i32_2 = arith.constant 0 : i32
    return %c0_i32, %c0_i32_0, %c0_i32_1 : i32, i32, i32
  }
  func.func @transform_10(%arg0: i32) -> (i32, i32) {
    %c0_i32 = arith.constant 0 : i32
    %c0_i32_0 = arith.constant 0 : i32
    %c0_i32_1 = arith.constant 0 : i32
    return %c0_i32, %c0_i32_0 : i32, i32
  }
  func.func @transform_11(%arg0: i32) -> (i32, i32, i32) {
    %c0_i32 = arith.constant 0 : i32
    %c0_i32_0 = arith.constant 0 : i32
    %c0_i32_1 = arith.constant 0 : i32
    return %arg0, %c0_i32, %c0_i32_0 : i32, i32, i32
  }
}

</mosaic_0001>

<bundles_post_ra>
// kernel: tpu_custom_call.1
= control target key start
LH: loop header
LB: loop body
LE: loop exit
PB: predicated region body
PF: predicated region fallthrough
CT: control target
= control target key end

     0   :  { %s3875_s0 = inlined_call_operand.vmem [shape: f32[2,4,256], index: 0, kind: input, shape index: {}]   ;;  %s3876_s1 = inlined_call_operand.vmem [shape: s32[1,256], index: 1, kind: input, shape index: {}]   ;;  %s3877_s2 = inlined_call_operand.vmem [shape: s32[1,256], index: 2, kind: input, shape index: {}]   ;;  %s3878_s3 = inlined_call_operand.vmem [shape: f32[9,4,4], index: 3, kind: input, shape index: {}]   ;;  %s3879_s4 = inlined_call_operand.vmem [shape: f32[4,1], index: 4, kind: input, shape index: {}]   ;;  %s3880_s5 = inlined_call_operand.vmem [shape: f32[11,4,1], index: 5, kind: input, shape index: {}]   ;;  %s3881_s6 = inlined_call_operand.vmem [shape: f32[4,1], index: 6, kind: input, shape index: {}]   ;;  %s3882_s7 = inlined_call_operand.vmem [shape: f32[11,4,1], index: 7, kind: input, shape index: {}]   ;;  %s3883_s8 = inlined_call_operand.vmem [shape: f32[4,1], index: 8, kind: input, shape index: {}]   ;;  %s3884_s9 = inlined_call_operand.vmem [shape: f32[9,4,4], index: 9, kind: input, shape index: {}]   ;;  %s3885_s10 = inlined_call_operand.vmem [shape: f32[4,1], index: 10, kind: input, shape index: {}]   ;;  %s3886_s11 = inlined_call_operand.hbm [shape: f32[2,4,256], index: 11, kind: output, shape index: {}]  }
   0x1   :  { %3940 = sst [smem:[#allocation5_spill]] %s3875_s0 }
   0x2   :  { %16 = vsyncpa [#allocation3], 0 }
   0x3   :  { %18 = vsyncpa [#allocation3 + $0x1], 0  ;;  %s2754_s17 = smov 0   ;;  %s2756_s18 = smov 0  }
   0x4   :  { %s2758_s19 = smov 0   ;;  %s2760_s20 = smov 0  }
   0x5 LB: > { %s2775_s21 = sadd.s32 4294967295, %s2674_s20   ;;  %s2418_s22 = sadd.s32 4294967294, %s2674_s20   ;;  %s2674_s20 = sphi %s2760_s20, %s4167_s20   ;;  %s2670_s19 = sphi %s2758_s19, %s4166_s19   ;;  %s2666_s18 = sphi %s2756_s18, %s4165_s18   ;;  %s2662_s17 = sphi %s2754_s17, %s4164_s17  }
   0x6   : > { %s2779_s23 = sadd.s32 1, %s2674_s20   ;;  %s267_s24 = sadd.s32 1, %s2670_s19 }
   0x7   : > { %s264_s25 = ssub.s32 %s2674_s20, %s2779_s23  ;;  %p277_p0 = scmp.ne.s32.totalorder %s2670_s19, %s2666_s18 }
   0x8   : > { %p265_p1 = scmp.eq.s32.totalorder %s264_s25, 0  ;;  %p278_p2 = scmp.eq.s32.totalorder %s2775_s21, 1 }
   0x9   : > { %p283_p3 = scmp.ne.s32.totalorder %s2666_s18, %s2662_s17  ;;  %p284_p4 = scmp.eq.s32.totalorder %s2418_s22, 1 }
   0xa   : > { %s2790_s26 = scalar_select %p265_p1, %s2670_s19, %s267_s24  }
   0xb   : > { %p2792_p5 = por %p278_p2, %p277_p0  ;;  %p2796_p6 = por %p284_p4, %p283_p3 }
   0xc   : > { %p2421_p7 = scmp.ge.s32.totalorder %s2674_s20, 1  ;;  %p340_p8 = scmp.lt.s32.totalorder %s2674_s20, 3 }
   0xe   : > { %p341_p9 = pnand %p2421_p7, %p340_p8 }
   0xf   : > { %p380_p10 = scmp.lt.s32.totalorder (!%p341_p9), %s2775_s21, 1  ;;  %s3943_s0 = sld [smem:[#allocation5_spill]] (!%p341_p9) }
  0x10   : > { %344 = sbr.rel (%p341_p9) target bundleno = 1607 (0x647), region = 64  ;;  %s2676_s15 = smov (!%p341_p9), 3  }
  0x11   : > { %s2677_s16 = smov (!%p341_p9), 2   ;;  %s3938_s22 = smov (!%p341_p9), 1  }
  0x12   : > { %s3936_s24 = smov (!%p341_p9), 127   ;;  %s3895_s25 = smov (!%p341_p9), 126  }
  0x13   : > { %s3891_s13 = smov (!%p341_p9), 48   ;;  %s3926_s12 = smov (!%p341_p9), 112  }
  0x15   : > { %s381_s29 = scalar_select %p380_p10, %s2775_s21, 1  ;;  %v2682_v15 = vmov 0   ;;  %v2829_v16 = vld [vmem:[%s3877_s2] sm:$0x3]  ;;  %v402_v23 = vlaneseq  ;;  %v3944_v35 = vmov 0  ;;  %v3946_v38 = vmov 0 }
  0x16   : > { %2583 = vset.pattern.permute.xlu1 %v2682_v15  ;;  %2584 = vset.pattern.permute.xlu0 %v2682_v15  ;;  %v388_v17 = vadd.s32 4294967293, %v2829_v16  ;;  %v414_v18 = vadd.s32 4294967294, %v2829_v16  ;;  %v439_v20 = vadd.s32 4294967295, %v2829_v16  ;;  %v471_v27 = vadd.s32 1, %v2829_v16 }
  0x17   : > { %s2524_s30 = sshll.u32 %s381_s29, 3  ;;  %s3889_s29 = smov 125   ;;  %2585 = vset.pattern.permute.xlu2 %v2682_v15  ;;  %v2835_v25 = vand.u32 127, %v402_v23  ;;  %v496_v31 = vadd.s32 2, %v2829_v16  ;;  %v3948_v42 = vmov 0  ;;  %v521_v43 = vadd.s32 3, %v2829_v16 }
  0x18   : > { %s384_s14 = scalar_lea.vmem %s3943_s0, %s2524_s30  ;;  %vm389_vm0 = vcmp.ge.s32.totalorder %v388_v17, 0  ;;  %vm390_vm1 = vcmp.lt.s32.totalorder %v388_v17, 16  ;;  %vm415_vm2 = vcmp.ge.s32.totalorder %v414_v18, 0  ;;  %vm416_vm3 = vcmp.lt.s32.totalorder %v414_v18, 16  ;;  %s3918_s30 = smov 16  }
  0x19   : > { %v385_v0 = vld [vmem:[%s384_s14] sm:$0xff]  ;;  %vm391_vm4 = vmand %vm389_vm0, %vm390_vm1  ;;  %vm440_vm6 = vcmp.ge.s32.totalorder %v439_v20, 0  ;;  %vm441_vm7 = vcmp.lt.s32.totalorder %v439_v20, 16  ;;  %vm3898_vm9 = vcmp.lt.s32.totalorder %v2835_v25, 3  ;;  %vm472_vm10 = vcmp.ge.s32.totalorder %v471_v27, 0  ;;  %s3893_s14 = smov 32  }
  0x1a   : > { %393 = vst [vmem:[#allocation1] ss:$2 sm:$0xff] %v385_v0  ;;  %vm417_vm5 = vmand %vm415_vm2, %vm416_vm3  ;;  %v407_v24 = vsel %vm391_vm4, 1, %v2682_v15  ;;  %vm473_vm11 = vcmp.lt.s32.totalorder %v471_v27, 16  ;;  %vm3888_vm13 = vcmp.lt.s32.totalorder %v2835_v25, 2  ;;  %vm497_vm15 = vcmp.ge.s32.totalorder %v496_v31, 0 }
  0x1b   : > { %v430_v26 = vsel %vm417_vm5, 1, %v2682_v15  ;;  %vm442_vm8 = vmand %vm440_vm6, %vm441_vm7  ;;  %v408_v28 = vperm.slane %v407_v24, 0  ;;  %v409_v30 = vperm.slane %v407_v24, 1  ;;  %vm498_vm0 = vcmp.lt.s32.totalorder %v496_v31, 16  ;;  %s4114_s0 = smov 1  }
  0x1c   : > { %v431_v32 = vperm.slane %v430_v26, 0  ;;  %v455_v33 = vsel %vm442_vm8, 1, %v2682_v15  ;;  %v432_v34 = vperm.slane %v430_v26, 1  ;;  %vm474_vm2 = vmand %vm472_vm10, %vm473_vm11  ;;  %v3950_v44 = vmov 0 }
  0x1d   : > { %vm2842_vm12 = vcmp.eq.s32.totalorder %v408_v28, 1  ;;  %vm2847_vm14 = vcmp.eq.s32.totalorder %v409_v30, 1  ;;  %v456_v39 = vperm.slane %v455_v33, 0  ;;  %v457_v47 = vperm.slane %v455_v33, 1  ;;  %vm499_vm5 = vmand %vm497_vm15, %vm498_vm0 }
  0x1e   : > { %v3945_v35 = vsel %vm2842_vm12, 4294967295, %v3944_v35  ;;  %v3947_v38 = vsel %vm2847_vm14, 4294967295, %v3946_v38  ;;  %vm2855_vm1 = vcmp.eq.s32.totalorder %v431_v32, 1  ;;  %vm2860_vm3 = vcmp.eq.s32.totalorder %v432_v34, 1 }
  0x1f   : > { %v3949_v42 = vsel %vm2855_vm1, 4294967295, %v3948_v42  ;;  %v3951_v44 = vsel %vm2860_vm3, 4294967295, %v3950_v44  ;;  %vm3900_vm4 = vcmp.lt.s32.totalorder %v2835_v25, 1  ;;  %vm2873_vm6 = vcmp.eq.s32.totalorder %v456_v39, 1 }
  0x20   : > { %v487_v52 = vsel %vm474_vm2, 1, %v2682_v15  ;;  %vm522_vm7 = vcmp.ge.s32.totalorder %v521_v43, 0  ;;  %vm523_vm8 = vcmp.lt.s32.totalorder %v521_v43, 16  ;;  %vm2882_vm10 = vcmp.eq.s32.totalorder %v457_v47, 1 }
  0x21   : > { %v394_v1 = vld.sshfl [vmem:[#allocation1] sm:$0xff pattern:$0x75316420]  ;;  %v395_v2 = vld.sshfl [vmem:[#allocation1 + $0x8] sm:$0xff pattern:$0x75316420]  ;;  %vm524_vm15 = vmand %vm522_vm7, %vm523_vm8 }
  0x22   : > { %398 = vrot.lane.b32.xlu0 %v394_v1, %s2676_s15  ;;  %418 = vst [vmem:[#allocation1] ss:$2 sm:$0xff] %v385_v0  ;;  %v3954_v55 = vmov 0  ;;  %v512_v58 = vsel %vm499_vm5, 1, %v2682_v15  ;;  %v488_v59 = vperm.slane %v487_v52, 0  ;;  %v489_v60 = vperm.slane %v487_v52, 1 }
  0x23   : > { %v3955_v55 = vsel %vm2882_vm10, 4294967295, %v3954_v55  ;;  %vm3899_vm11 = vcmp.lt.s32.totalorder %v2835_v25, 127  ;;  %vm3887_vm5 = vcmp.lt.s32.totalorder %v2835_v25, 126  ;;  %v3960_v17 = vmov 0 }
  0x24   : > { %vm2896_vm0 = vcmp.eq.s32.totalorder %v488_v59, 1  ;;  %vm2900_vm2 = vcmp.eq.s32.totalorder %v489_v60, 1  ;;  %v3962_v18 = vmov 0  ;;  %v3964_v33 = vmov 0 }
  0x25   : > { %v3966_v34 = vmov 0 }
  0x29   : > { %v419_v3 = vld.sshfl [vmem:[#allocation1] sm:$0xff pattern:$0x75316420]  ;;  %v420_v4 = vld.sshfl [vmem:[#allocation1 + $0x8] sm:$0xff pattern:$0x75316420] }
  0x2a   : > { %423 = vrot.lane.b32.xlu1 %v419_v3, %s2677_s16  ;;  %400 = vrot.lane.b32.xlu0 %v395_v2, %s2676_s15  ;;  %443 = vst [vmem:[#allocation1] ss:$2 sm:$0xff] %v385_v0  ;;  %v513_v3 = vperm.slane %v512_v58, 0 }
  0x2c   : > { %vm2910_vm7 = vcmp.eq.s32.totalorder %v513_v3, 1 }
  0x2d   : > { %v3961_v17 = vsel %vm2910_vm7, 4294967295, %v3960_v17 }
  0x31   : > { %v444_v5 = vld.sshfl [vmem:[#allocation1] sm:$0xff pattern:$0x75316420]  ;;  %v445_v6 = vld.sshfl [vmem:[#allocation1 + $0x8] sm:$0xff pattern:$0x75316420] }
  0x32   : > { %425 = vrot.lane.b32.xlu1 %v420_v4, %s2677_s16  ;;  %464 = vst [vmem:[#allocation1] ss:$2 sm:$0xff] %v385_v0  ;;  %448 = vrot.lane.b32.xlu2 %v444_v5, %s3938_s22  ;;  %v514_v4 = vperm.slane %v512_v58, 1 }
  0x34   : > { %vm2914_vm8 = vcmp.eq.s32.totalorder %v514_v4, 1 }
  0x35   : > { %v3963_v18 = vsel %vm2914_vm8, 4294967295, %v3962_v18 }
  0x39   : > { %v2812_v7 = vld.sshfl [vmem:[#allocation1] sm:$0xff pattern:$0x75316420]  ;;  %v2814_v8 = vld.sshfl [vmem:[#allocation1 + $0x8] sm:$0xff pattern:$0x75316420] }
  0x3a   : > { %475 = vst [vmem:[#allocation1] ss:$2 sm:$0xff] %v385_v0  ;;  %450 = vrot.lane.b32.xlu2 %v445_v6, %s3938_s22 }
  0x41   : > { %v477_v9 = vld.sshfl [vmem:[#allocation1 + $0x8] sm:$0xff pattern:$0x75316420]  ;;  %v476_v10 = vld.sshfl [vmem:[#allocation1] sm:$0xff pattern:$0x75316420] }
  0x42   : > { %482 = vrot.lane.b32.xlu1 %v477_v9, %s3936_s24  ;;  %480 = vrot.lane.b32.xlu0 %v476_v10, %s3936_s24  ;;  %500 = vst [vmem:[#allocation1] ss:$2 sm:$0xff] %v385_v0  ;;  %v537_v10 = vsel %vm524_vm15, 1, %v2682_v15  ;;  %vm3897_vm15 = vcmp.lt.s32.totalorder %v2835_v25, 125 }
  0x49   : > { %v502_v11 = vld.sshfl [vmem:[#allocation1 + $0x8] sm:$0xff pattern:$0x75316420]  ;;  %v501_v12 = vld.sshfl [vmem:[#allocation1] sm:$0xff pattern:$0x75316420] }
  0x4a   : > { %507 = vrot.lane.b32.xlu0 %v502_v11, %s3895_s25  ;;  %525 = vst [vmem:[#allocation1] ss:$2 sm:$0xff] %v385_v0  ;;  %505 = vrot.lane.b32.xlu2 %v501_v12, %s3895_s25  ;;  %s2689_s25 = smov 4  }
  0x51   : > { %v526_v13 = vld.sshfl [vmem:[#allocation1] sm:$0xff pattern:$0x75316420]  ;;  %v527_v14 = vld.sshfl [vmem:[#allocation1 + $0x8] sm:$0xff pattern:$0x75316420] }
  0x52   : > { %530 = vrot.lane.b32.xlu1 %v526_v13, %s3889_s29  ;;  %532 = vrot.lane.b32.xlu2 %v527_v14, %s3889_s29  ;;  %2329 = vst [vmem:[#allocation1] ss:$2 sm:$0xff] %v385_v0  ;;  %s3920_s29 = smov 96  }
  0x8c   : > { %v449_v22 = vpop.permute.xlu2 %448 }
  0x94   : > { %v399_v19 = vpop.permute.xlu0 %398  ;;  %v451_v37 = vpop.permute.xlu2 %450 }
  0x95   : > { %v453_v56 = vsel %vm3900_vm4, %v449_v22, %v451_v37  ;;  %v454_v57 = vsel %vm3900_vm4, %v451_v37, %v449_v22  ;;  %v539_v22 = vperm.slane %v537_v10, 1 }
  0x96   : > { %v460_v0 = vsel %vm2873_vm6, %v454_v57, 0.0  ;;  %v461_v1 = vsel %vm2882_vm10, %v453_v56, 0.0 }
  0x9c   : > { %v424_v21 = vpop.permute.xlu1 %423  ;;  %v401_v29 = vpop.permute.xlu0 %400 }
  0x9d   : > { %v405_v40 = vsel %vm3898_vm9, %v399_v19, %v401_v29  ;;  %v406_v41 = vsel %vm3898_vm9, %v401_v29, %v399_v19 }
  0x9e   : > { %v412_v49 = vsel %vm2842_vm12, %v406_v41, 0.0  ;;  %v413_v50 = vsel %vm2847_vm14, %v405_v40, 0.0 }
  0xa4   : > { %v426_v36 = vpop.permute.xlu1 %425  ;;  %v506_v61 = vpop.permute.xlu2 %505 }
  0xa5   : > { %v428_v45 = vsel %vm3888_vm13, %v424_v21, %v426_v36  ;;  %v429_v46 = vsel %vm3888_vm13, %v426_v36, %v424_v21  ;;  %v538_v21 = vperm.slane %v537_v10, 0  ;;  %vm2937_vm13 = vcmp.eq.s32.totalorder %v539_v22, 1 }
  0xa6   : > { %v435_v53 = vsel %vm2855_vm1, %v429_v46, 0.0  ;;  %v436_v54 = vsel %vm2860_vm3, %v428_v45, 0.0  ;;  %v3967_v34 = vsel %vm2937_vm13, 4294967295, %v3966_v34  ;;  %v386_v46 = vld [vmem:[%s3876_s1] sm:$0x3]  ;;  %v3972_v10 = vmov 0 }
  0xa7   : > { %v437_v62 = vadd.f32 %v435_v53, %v412_v49  ;;  %v438_v63 = vadd.f32 %v436_v54, %v413_v50  ;;  %v546_v47 = vadd.s32 4294967293, %v386_v46  ;;  %v584_v50 = vadd.s32 4294967295, %v386_v46 }
  0xa8   : > { %v606_v53 = vadd.s32 1, %v386_v46  ;;  %v646_v4 = vadd.s32 3, %v386_v46 }
  0xa9   : > { %v462_v11 = vadd.f32 %v460_v0, %v437_v62  ;;  %v463_v12 = vadd.f32 %v461_v1, %v438_v63  ;;  %vm548_vm9 = vcmp.lt.s32.totalorder %v546_v47, 16  ;;  %v626_v0 = vadd.s32 2, %v386_v46 }
  0xaa   : > { %vm607_vm1 = vcmp.ge.s32.totalorder %v606_v53, 0  ;;  %vm608_vm14 = vcmp.lt.s32.totalorder %v606_v53, 16  ;;  %v3968_v1 = vmov 0 }
  0xab   : > { %v470_v26 = vadd.f32 %v2814_v8, %v463_v12  ;;  %v469_v27 = vadd.f32 %v2812_v7, %v462_v11  ;;  %v3974_v11 = vmov 0 }
  0xac   : > { %v533_v30 = vpop.permute.xlu2 %532 }
  0xb4   : > { %v481_v48 = vpop.permute.xlu0 %480  ;;  %v483_v2 = vpop.permute.xlu1 %482 }
  0xb5   : > { %v485_v13 = vsel %vm3899_vm11, %v481_v48, %v483_v2  ;;  %v486_v14 = vsel %vm3899_vm11, %v483_v2, %v481_v48  ;;  %v564_v48 = vadd.s32 4294967294, %v386_v46  ;;  %v3970_v2 = vmov 0 }
  0xb6   : > { %v492_v23 = vsel %vm2896_vm0, %v485_v13, 0.0  ;;  %v493_v24 = vsel %vm2900_vm2, %v486_v14, 0.0 }
  0xb7   : > { %v494_v31 = vadd.f32 %v492_v23, %v469_v27  ;;  %v495_v32 = vadd.f32 %v493_v24, %v470_v26  ;;  %vm565_vm11 = vcmp.ge.s32.totalorder %v564_v48, 0  ;;  %vm566_vm4 = vcmp.lt.s32.totalorder %v564_v48, 16 }
  0xbc   : > { %v508_v9 = vpop.permute.xlu0 %507 }
  0xbd   : > { %v510_v19 = vsel %vm3887_vm5, %v506_v61, %v508_v9  ;;  %v511_v20 = vsel %vm3887_vm5, %v508_v9, %v506_v61  ;;  %vm2933_vm5 = vcmp.eq.s32.totalorder %v538_v21, 1 }
  0xbe   : > { %v517_v28 = vsel %vm2910_vm7, %v510_v19, 0.0  ;;  %v518_v29 = vsel %vm2914_vm8, %v511_v20, 0.0  ;;  %v3965_v33 = vsel %vm2933_vm5, 4294967295, %v3964_v33  ;;  %vm585_vm8 = vcmp.ge.s32.totalorder %v584_v50, 0 }
  0xbf   : > { %v519_v8 = vadd.f32 %v517_v28, %v494_v31  ;;  %v520_v36 = vadd.f32 %v518_v29, %v495_v32  ;;  %vm586_vm7 = vcmp.lt.s32.totalorder %v584_v50, 16 }
  0xc0   : > { %vm587_vm3 = vmand %vm585_vm8, %vm586_vm7  ;;  %vm628_vm8 = vcmp.lt.s32.totalorder %v626_v0, 16  ;;  %vm648_vm7 = vcmp.lt.s32.totalorder %v646_v4, 16 }
  0xc1   : > { %v595_v63 = vsel %vm587_vm3, 1, %v2682_v15 }
  0xc2   : > { %v596_v9 = vperm.slane %v595_v63, 0  ;;  %v597_v13 = vperm.slane %v595_v63, 1 }
  0xc4   : > { %v531_v7 = vpop.permute.xlu1 %530  ;;  %vm3015_vm12 = vcmp.eq.s32.totalorder %v596_v9, 1  ;;  %v3988_v9 = vmov 0 }
  0xc5   : > { %v535_v37 = vsel %vm3897_vm15, %v531_v7, %v533_v30  ;;  %v536_v39 = vsel %vm3897_vm15, %v533_v30, %v531_v7  ;;  %vm547_vm15 = vcmp.ge.s32.totalorder %v546_v47, 0 }
  0xc6   : > { %v542_v40 = vsel %vm2933_vm5, %v535_v37, 0.0  ;;  %v543_v41 = vsel %vm2937_vm13, %v536_v39, 0.0  ;;  %vm549_vm13 = vmand %vm547_vm15, %vm548_vm9  ;;  %vm3909_vm9 = vcmp.lt.s32.totalorder %v2835_v25, 32  ;;  %vm647_vm15 = vcmp.ge.s32.totalorder %v646_v4, 0 }
  0xc7   : > { %v2949_v43 = vadd.f32 %v542_v40, %v519_v8  ;;  %v2951_v45 = vadd.f32 %v543_v41, %v520_v36  ;;  %vm567_vm5 = vmand %vm565_vm11, %vm566_vm4  ;;  %v557_v54 = vsel %vm549_vm13, 1, %v2682_v15  ;;  %vm3910_vm11 = vcmp.lt.s32.totalorder %v2835_v25, 48  ;;  %v2243_v40 = vld [vmem:[%s3885_s10] sm:$0xf] }
  0xc8   : > { %v575_v57 = vsel %vm567_vm5, 1, %v2682_v15  ;;  %v558_v58 = vperm.slane %v557_v54, 0  ;;  %v559_v59 = vperm.slane %v557_v54, 1  ;;  %vm609_vm4 = vmand %vm607_vm1, %vm608_vm14  ;;  %vm627_vm1 = vcmp.ge.s32.totalorder %v626_v0, 0 }
  0xc9   : > { %552 = vrot.lane.b32.xlu1 %v2951_v45, %s3891_s13  ;;  %568 = vrot.lane.b32.xlu2 %v2949_v43, %s3893_s14  ;;  %v576_v61 = vperm.slane %v575_v57, 0  ;;  %v577_v62 = vperm.slane %v575_v57, 1  ;;  %v617_v20 = vsel %vm609_vm4, 1, %v2682_v15  ;;  %vm3023_vm4 = vcmp.eq.s32.totalorder %v597_v13, 1 }
  0xca   : > { %550 = vrot.lane.b32.xlu0 %v2949_v43, %s3891_s13  ;;  %s3928_s13 = smov 80   ;;  %vm2985_vm13 = vcmp.eq.s32.totalorder %v558_v58, 1  ;;  %vm2989_vm5 = vcmp.eq.s32.totalorder %v559_v59, 1  ;;  %v618_v27 = vperm.slane %v617_v20, 0  ;;  %v619_v31 = vperm.slane %v617_v20, 1 }
  0xcb   : > { %v3969_v1 = vsel %vm2985_vm13, 4294967295, %v3968_v1  ;;  %v3971_v2 = vsel %vm2989_vm5, 4294967295, %v3970_v2  ;;  %vm2994_vm3 = vcmp.eq.s32.totalorder %v576_v61, 1  ;;  %vm2998_vm14 = vcmp.eq.s32.totalorder %v577_v62, 1 }
  0xcc   : > { %v3973_v10 = vsel %vm2994_vm3, 4294967295, %v3972_v10  ;;  %v3975_v11 = vsel %vm2998_vm14, 4294967295, %v3974_v11  ;;  %v3986_v4 = vmov 0 }
  0xd1   : > { %588 = vrot.lane.b32.xlu1 %v2949_v43, %s3918_s30  ;;  %590 = vrot.lane.b32.xlu2 %v2951_v45, %s3918_s30 }
  0xd2   : > { %570 = vrot.lane.b32.xlu0 %v2951_v45, %s3893_s14  ;;  %s2690_s14 = smov 5  }
  0xd9   : > { %612 = vrot.lane.b32.xlu1 %v2951_v45, %s3926_s12  ;;  %630 = vrot.lane.b32.xlu2 %v2949_v43, %s3920_s29 }
  0xda   : > { %610 = vrot.lane.b32.xlu0 %v2949_v43, %s3926_s12 }
  0xe1   : > { %650 = vrot.lane.b32.xlu1 %v2949_v43, %s3928_s13  ;;  %652 = vrot.lane.b32.xlu2 %v2951_v45, %s3928_s13  ;;  %s2691_s13 = smov 124  }
  0xe2   : > { %632 = vrot.lane.b32.xlu0 %v2951_v45, %s3920_s29 }
 0x123   : > { %v569_v49 = vpop.permute.xlu2 %568 }
 0x12b   : > { %v591_v60 = vpop.permute.xlu2 %590 }
 0x133   : > { %v631_v32 = vpop.permute.xlu2 %630 }
 0x13b   : > { %v553_v52 = vpop.permute.xlu1 %552 }
 0x13c   : > { %v551_v56 = vpop.permute.xlu0 %550 }
 0x13d   : > { %v555_v21 = vsel %vm3910_vm11, %v551_v56, %v553_v52  ;;  %v556_v22 = vsel %vm3910_vm11, %v553_v52, %v551_v56  ;;  %vm3980_vm11 = vcmp.lt.s32.totalorder %v2835_v25, 16 }
 0x13e   : > { %v562_v28 = vsel %vm2985_vm13, %v556_v22, 0.0  ;;  %v563_v29 = vsel %vm2989_vm5, %v555_v21, 0.0  ;;  %vm3917_vm13 = vcmp.lt.s32.totalorder %v2835_v25, 112  ;;  %vm3032_vm5 = vcmp.eq.s32.totalorder %v618_v27, 1 }
 0x143   : > { %v589_v3 = vpop.permute.xlu1 %588 }
 0x144   : > { %v571_v12 = vpop.permute.xlu0 %570  ;;  %v593_v7 = vsel %vm3980_vm11, %v589_v3, %v591_v60 }
 0x145   : > { %v573_v14 = vsel %vm3909_vm9, %v569_v49, %v571_v12  ;;  %v574_v19 = vsel %vm3909_vm9, %v571_v12, %v569_v49  ;;  %vm629_vm9 = vmand %vm627_vm1, %vm628_vm8  ;;  %v601_v48 = vsel %vm3023_vm4, %v593_v7, 0.0  ;;  %v3984_v49 = vmov 0  ;;  %v653_v12 = vpop.permute.xlu2 %652 }
 0x146   : > { %v580_v23 = vsel %vm2994_vm3, %v574_v19, 0.0  ;;  %v581_v24 = vsel %vm2998_vm14, %v573_v14, 0.0  ;;  %vm3981_vm14 = vmmov %vm3980_vm11  ;;  %v637_v46 = vsel %vm629_vm9, 1, %v2682_v15  ;;  %vm3041_vm11 = vcmp.eq.s32.totalorder %v619_v31, 1 }
 0x147   : > { %v594_v8 = vsel %vm3981_vm14, %v591_v60, %v589_v3  ;;  %v582_v36 = vadd.f32 %v580_v23, %v562_v28  ;;  %v583_v37 = vadd.f32 %v581_v24, %v563_v29  ;;  %vm649_vm3 = vmand %vm647_vm15, %vm648_vm7  ;;  %v3985_v49 = vsel %vm3041_vm11, 4294967295, %v3984_v49 }
 0x148   : > { %v600_v47 = vsel %vm3015_vm12, %v594_v8, 0.0  ;;  %v657_v50 = vsel %vm649_vm3, 1, %v2682_v15  ;;  %v638_v57 = vperm.slane %v637_v46, 0  ;;  %v639_v58 = vperm.slane %v637_v46, 1 }
 0x149   : > { %v602_v52 = vadd.f32 %v600_v47, %v582_v36  ;;  %v603_v53 = vadd.f32 %v601_v48, %v583_v37  ;;  %v658_v59 = vperm.slane %v657_v50, 0  ;;  %v659_v60 = vperm.slane %v657_v50, 1 }
 0x14a   : > { %vm3916_vm9 = vcmp.lt.s32.totalorder %v2835_v25, 80  ;;  %vm3915_vm7 = vcmp.lt.s32.totalorder %v2835_v25, 96  ;;  %vm3058_vm3 = vcmp.eq.s32.totalorder %v638_v57, 1  ;;  %vm3062_vm14 = vcmp.eq.s32.totalorder %v639_v58, 1  ;;  %v2425_v57 = vld [vmem:[%s3878_s3 + $0x4] sm:$0xf] }
 0x14b   : > { %v613_v39 = vpop.permute.xlu1 %612  ;;  %v604_v63 = vadd.f32 %v602_v52, %v2949_v43  ;;  %v605_v0 = vadd.f32 %v603_v53, %v2951_v45  ;;  %v3987_v4 = vsel %vm3058_vm3, 4294967295, %v3986_v4  ;;  %v3989_v9 = vsel %vm3062_vm14, 4294967295, %v3988_v9 }
 0x14c   : > { %v611_v41 = vpop.permute.xlu0 %610  ;;  %vm3066_vm1 = vcmp.eq.s32.totalorder %v658_v59, 1  ;;  %v3990_v43 = vmov 0  ;;  %vm3070_vm8 = vcmp.eq.s32.totalorder %v659_v60, 1  ;;  %v3992_v45 = vmov 0 }
 0x14d   : > { %v615_v54 = vsel %vm3917_vm13, %v611_v41, %v613_v39  ;;  %v616_v56 = vsel %vm3917_vm13, %v613_v39, %v611_v41  ;;  %v3991_v43 = vsel %vm3066_vm1, 4294967295, %v3990_v43  ;;  %v3993_v45 = vsel %vm3070_vm8, 4294967295, %v3992_v45 }
 0x14e   : > { %v622_v61 = vsel %vm3032_vm5, %v615_v54, 0.0  ;;  %v623_v62 = vsel %vm3041_vm11, %v616_v56, 0.0  ;;  %vm3994_vm15 = vcmp.lt.s32.totalorder %v2835_v25, 16 }
 0x14f   : > { %v624_v13 = vadd.f32 %v622_v61, %v604_v63  ;;  %v625_v14 = vadd.f32 %v623_v62, %v605_v0  ;;  %v674_v63 = vld [vmem:[%s3878_s3] sm:$0xf] }
 0x153   : > { %v651_v3 = vpop.permute.xlu1 %650 }
 0x154   : > { %v633_v19 = vpop.permute.xlu0 %632  ;;  %v655_v20 = vsel %vm3916_vm9, %v651_v3, %v653_v12  ;;  %v656_v21 = vsel %vm3916_vm9, %v653_v12, %v651_v3  ;;  %vm3923_vm9 = vcmask 1043456  }
 0x155   : > { %v635_v22 = vsel %vm3915_vm7, %v631_v32, %v633_v19  ;;  %v636_v23 = vsel %vm3915_vm7, %v633_v19, %v631_v32  ;;  %v662_v31 = vsel %vm3066_vm1, %v655_v20, 0.0  ;;  %v663_v7 = vsel %vm3070_vm8, %v656_v21, 0.0  ;;  %vm3995_vm7 = vmmov %vm3994_vm15 }
 0x156   : > { %v642_v24 = vsel %vm3058_vm3, %v635_v22, 0.0  ;;  %v643_v27 = vsel %vm3062_vm14, %v636_v23, 0.0  ;;  %vm4006_vm8 = vcmask 31744  }
 0x157   : > { %v644_v28 = vadd.f32 %v642_v24, %v624_v13  ;;  %v645_v29 = vadd.f32 %v643_v27, %v625_v14  ;;  %v1204_v13 = vld [vmem:[%s3879_s4] sm:$0xf]  ;;  %vm4007_vm1 = vmmov %vm4006_vm8 }
 0x158   : > { %v1252_v14 = vld [vmem:[%s3880_s5] sm:$0xf] }
 0x159   : > { %v3090_v8 = vadd.f32 %v662_v31, %v644_v28  ;;  %v3092_v36 = vadd.f32 %v663_v7, %v645_v29  ;;  %v2434_v7 = vld [vmem:[%s3878_s3 + $0x8] sm:$0xf] }
 0x15b   : > { %668 = vrot.lane.b32.xlu1 %v3092_v36, %s3918_s30  ;;  %1021 = vrot.lane.b32.xlu2 %v3090_v8, %s3926_s12 }
 0x15c   : > { %666 = vrot.lane.b32.xlu0 %v3090_v8, %s3918_s30  ;;  %s2693_s30 = smov 64  }
 0x164   : > { %1023 = vrot.lane.b32.xlu0 %v3092_v36, %s3926_s12  ;;  %s2692_s12 = smov 123  }
 0x1b5   : > { %v1022_v50 = vpop.permute.xlu2 %1021 }
 0x1cd   : > { %v669_v32 = vpop.permute.xlu1 %668 }
 0x1ce   : > { %v667_v37 = vpop.permute.xlu0 %666 }
 0x1cf   : > { %v670_v39 = vsel %vm3994_vm15, %v667_v37, %v669_v32  ;;  %v671_v41 = vsel %vm3995_vm7, %v669_v32, %v667_v37  ;;  %vm3922_vm7 = vcmask 31744   ;;  %vm3996_vm15 = vcmp.lt.s32.totalorder %v2835_v25, 1  ;;  %v2439_v32 = vld [vmem:[%s3878_s3 + $0xc] sm:$0xf] }
 0x1d0   : > { %v672_v46 = vsel %vm3015_vm12, %v671_v41, 0.0  ;;  %v673_v47 = vsel %vm3023_vm4, %v670_v39, 0.0  ;;  %v1253_v39 = vld [vmem:[%s3880_s5 + $0x4] sm:$0xf]  ;;  %v1257_v41 = vld [vmem:[%s3880_s5 + $0x14] sm:$0xf] }
 0x1d1   : > { %787 = vrot.lane.b32.xlu0 %v672_v46, %s3936_s24  ;;  %675 = vrot.lane.b32.xlu1 %v672_v46, %s3938_s22 }
 0x1d2   : > { %2426 = vmatpush.msk.msra.mxu0 %vm3923_vm9, %v672_v46  ;;  %677 = vrot.lane.b32.xlu2 %v673_v47, %s3938_s22 }
 0x1d3   : > { %2428 = vmatpush.msk.msra.mxu1 %vm3923_vm9, %v673_v47  ;;  %2427 = vmatmul.msk.f32.vlgmr.msra.gmra.mxu0 %vm3922_vm7, %v2425_v57 }
 0x1d4   : > { %2429 = vmatmul.msk.f32.vlgmr.msra.gmra.mxu1 %vm3922_vm7, %v2425_v57 }
 0x1d6   : > { %v1024_v48 = vpop.permute.xlu0 %1023 }
 0x1d7   : > { %v1025_v52 = vsel %vm3917_vm13, %v1022_v50, %v1024_v48  ;;  %v1026_v54 = vsel %vm3917_vm13, %v1024_v48, %v1022_v50  ;;  %vm3997_vm13 = vmmov %vm3996_vm15 }
 0x1d8   : > { %v3124_v53 = vsel %vm3032_vm5, %v1025_v52, 0.0  ;;  %v3136_v56 = vsel %vm3041_vm11, %v1026_v54, 0.0 }
 0x1d9   : > { %850 = vrot.lane.b32.xlu0 %v3092_v36, %s3938_s22  ;;  %789 = vrot.lane.b32.xlu1 %v673_v47, %s3936_s24 }
 0x1da   : > { %848 = vrot.lane.b32.xlu2 %v3090_v8, %s3938_s22 }
 0x1e1   : > { %962 = vrot.lane.b32.xlu1 %v3090_v8, %s3936_s24  ;;  %1031 = vrot.lane.b32.xlu0 %v3124_v53, %s3938_s22 }
 0x1e2   : > { %964 = vrot.lane.b32.xlu2 %v3092_v36, %s3936_s24 }
 0x1e9   : > { %1033 = vrot.lane.b32.xlu1 %v3136_v56, %s3938_s22  ;;  %1147 = vrot.lane.b32.xlu0 %v3136_v56, %s3936_s24 }
 0x1ea   : > { %1145 = vrot.lane.b32.xlu2 %v3124_v53, %s3936_s24 }
 0x1f1   : > { %1207 = vperm.xlu1 %2583, %v1204_v13   ;;  %1283 = vperm.xlu0 %2584, %v1252_v14   ;;  %v2459_v13 = vld [vmem:[%s3878_s3 + $0x1c] sm:$0xf]  ;;  %v2464_v14 = vld [vmem:[%s3878_s3 + $0x20] sm:$0xf] }
 0x1f9   : > { %1310 = vperm.xlu1 %2583, %v1253_v39   ;;  %1370 = vperm.xlu0 %2584, %v1257_v41  }
 0x22c   : > { %v678_v58 = vpop.permute.xlu2 %677 }
 0x234   : > { %v849_v12 = vpop.permute.xlu2 %848 }
 0x23c   : > { %v965_v37 = vpop.permute.xlu2 %964 }
 0x243   : > { %v676_v59 = vpop.permute.xlu1 %675  ;;  %v788_v60 = vpop.permute.xlu0 %787 }
 0x244   : > { %v680_v61 = vsel %vm3996_vm15, %v678_v58, %v676_v59  ;;  %v679_v62 = vsel %vm3997_vm13, %v676_v59, %v678_v58  ;;  %vm3998_vm13 = vcmp.lt.s32.totalorder %v2835_v25, 127  ;;  %v1146_v57 = vpop.permute.xlu2 %1145 }
 0x245   : > { %v681_v0 = vsel %vm2873_vm6, %v680_v61, 0.0  ;;  %v682_v3 = vsel %vm2882_vm10, %v679_v62, 0.0  ;;  %vm3999_vm15 = vmmov %vm3998_vm13 }
 0x246   : > { %2430 = vmatpush.msk.msra.mxu2 %vm3923_vm9, %v681_v0  ;;  %2432 = vmatpush.msk.msra.mxu3 %vm3923_vm9, %v682_v3 }
 0x247   : > { %2431 = vmatmul.msk.f32.vlgmr.msra.gmra.mxu2 %vm3922_vm7, %v674_v63  ;;  %2433 = vmatmul.msk.f32.vlgmr.msra.gmra.mxu3 %vm3922_vm7, %v674_v63  ;;  %vm4000_vm7 = vcmp.lt.s32.totalorder %v2835_v25, 1 }
 0x248   : > { %vm4001_vm9 = vmmov %vm4000_vm7 }
 0x24b   : > { %v790_v19 = vpop.permute.xlu1 %789  ;;  %v851_v20 = vpop.permute.xlu0 %850 }
 0x24c   : > { %v791_v21 = vsel %vm3998_vm13, %v788_v60, %v790_v19  ;;  %v792_v22 = vsel %vm3999_vm15, %v790_v19, %v788_v60  ;;  %v852_v23 = vsel %vm4000_vm7, %v849_v12, %v851_v20  ;;  %v853_v24 = vsel %vm4001_vm9, %v851_v20, %v849_v12  ;;  %v2454_v12 = vld [vmem:[%s3878_s3 + $0x18] sm:$0xf] }
 0x24d   : > { %v793_v27 = vsel %vm2896_vm0, %v791_v21, 0.0  ;;  %v794_v28 = vsel %vm2900_vm2, %v792_v22, 0.0  ;;  %v854_v29 = vsel %vm2873_vm6, %v853_v24, 0.0  ;;  %v855_v31 = vsel %vm2882_vm10, %v852_v23, 0.0 }
 0x24e   : > { %vm4002_vm7 = vcmask 1043456  }
 0x24f   : > { %2435 = vmatpush.msk.msrb.mxu0 %vm4002_vm7, %v793_v27  ;;  %vm4003_vm13 = vmmov %vm4002_vm7  ;;  %v1254_v27 = vld [vmem:[%s3880_s5 + $0x8] sm:$0xf] }
 0x250   : > { %2437 = vmatpush.msk.msrb.mxu1 %vm4003_vm13, %v794_v28  ;;  %vm4004_vm9 = vmmov %vm4002_vm7  ;;  %2436 = vmatmul.msk.f32.vlgmr.msrb.gmra.mxu0 %vm4006_vm8, %v2434_v7  ;;  %v713_v19 = vpop.f32.mrf.mxu0  ;;  %v1258_v28 = vld [vmem:[%s3880_s5 + $0x18] sm:$0xf] }
 0x251   : > { %2440 = vmatpush.msk.msrb.mxu2 %vm4004_vm9, %v854_v29  ;;  %vm4005_vm15 = vmmov %vm4002_vm7  ;;  %2438 = vmatmul.msk.f32.vlgmr.msrb.gmra.mxu1 %vm4007_vm1, %v2434_v7  ;;  %v733_v20 = vpop.f32.mrf.mxu1 }
 0x252   : > { %2442 = vmatpush.msk.msrb.mxu3 %vm4005_vm15, %v855_v31  ;;  %vm4008_vm7 = vmmov %vm4007_vm1  ;;  %2445 = vmatpush.msk.msra.mxu0 %vm4004_vm9, %v3090_v8  ;;  %v2444_v8 = vld [vmem:[%s3878_s3 + $0x10] sm:$0xf] }
 0x253   : > { %2441 = vmatmul.msk.f32.vlgmr.msrb.gmra.mxu2 %vm4008_vm7, %v2439_v32  ;;  %vm4009_vm13 = vmmov %vm4007_vm1  ;;  %v963_v46 = vpop.permute.xlu1 %962  ;;  %v1032_v47 = vpop.permute.xlu0 %1031  ;;  %vm4011_vm1 = vcmp.lt.s32.totalorder %v2835_v25, 127  ;;  %1327 = vperm.xlu2 %2585, %v1254_v27  }
 0x254   : > { %2443 = vmatmul.msk.f32.vlgmr.msrb.gmra.mxu3 %vm4009_vm13, %v2439_v32  ;;  %vm4010_vm15 = vmmov %vm4004_vm9  ;;  %v966_v48 = vsel %vm4011_vm1, %v963_v46, %v965_v37  ;;  %1387 = vperm.xlu0 %2584, %v1258_v28  }
 0x255   : > { %2447 = vmatpush.msk.msra.mxu1 %vm4010_vm15, %v3092_v36  ;;  %vm4012_vm8 = vmmov %vm4011_vm1  ;;  %v968_v52 = vsel %vm2896_vm0, %v966_v48, 0.0  ;;  %v2449_v36 = vld [vmem:[%s3878_s3 + $0x14] sm:$0xf]  ;;  %vm4017_vm1 = vcmask 31744  }
 0x256   : > { %v967_v50 = vsel %vm4012_vm8, %v965_v37, %v963_v46  ;;  %vm4013_vm7 = vmmov %vm4004_vm9 }
 0x257   : > { %v969_v54 = vsel %vm2900_vm2, %v967_v50, 0.0  ;;  %2450 = vmatpush.msk.msra.mxu2 %vm4013_vm7, %v968_v52  ;;  %vm4014_vm13 = vmmov %vm4013_vm7  ;;  %v1255_v50 = vld [vmem:[%s3880_s5 + $0xc] sm:$0xf]  ;;  %v1259_v52 = vld [vmem:[%s3880_s5 + $0x1c] sm:$0xf] }
 0x258   : > { %2452 = vmatpush.msk.msra.mxu3 %vm4014_vm13, %v969_v54  ;;  %vm4015_vm9 = vmmov %vm4013_vm7  ;;  %2446 = vmatmul.msk.f32.vlgmr.msra.gmra.mxu0 %vm4017_vm1, %v2444_v8 }
 0x259   : > { %2460 = vmatpush.msk.msrb.mxu2 %vm4015_vm9, %v3124_v53  ;;  %vm4016_vm15 = vmmov %vm4013_vm7  ;;  %vm4021_vm7 = vcmp.lt.s32.totalorder %v2835_v25, 1  ;;  %vm4023_vm9 = vcmp.lt.s32.totalorder %v2835_v25, 127 }
 0x25a   : > { %2462 = vmatpush.msk.msrb.mxu3 %vm4016_vm15, %v3136_v56  ;;  %vm4018_vm8 = vmmov %vm4017_vm1 }
 0x25b   : > { %2448 = vmatmul.msk.f32.vlgmr.msra.gmra.mxu1 %vm4018_vm8, %v2444_v8  ;;  %vm4019_vm14 = vmmov %vm4017_vm1  ;;  %v1034_v58 = vpop.permute.xlu1 %1033  ;;  %v1148_v59 = vpop.permute.xlu0 %1147  ;;  %1344 = vperm.xlu2 %2585, %v1255_v50  }
 0x25c   : > { %2451 = vmatmul.msk.f32.vlgmr.msra.gmra.mxu2 %vm4019_vm14, %v2449_v36  ;;  %vm4020_vm3 = vmmov %vm4017_vm1  ;;  %v1035_v60 = vsel %vm4021_vm7, %v1032_v47, %v1034_v58  ;;  %v1149_v56 = vsel %vm4023_vm9, %v1146_v57, %v1148_v59  ;;  %1404 = vperm.xlu0 %2584, %v1259_v52  }
 0x25d   : > { %2453 = vmatmul.msk.f32.vlgmr.msra.gmra.mxu3 %vm4020_vm3, %v2449_v36  ;;  %vm4022_vm13 = vmmov %vm4021_vm7  ;;  %v1038_v63 = vsel %vm2882_vm10, %v1035_v60, 0.0  ;;  %v1151_v0 = vsel %vm2896_vm0, %v1149_v56, 0.0  ;;  %vm4025_vm3 = vcmask 1043456   ;;  %vm4029_vm7 = vcmask 31744   ;;  %v1256_v56 = vld [vmem:[%s3880_s5 + $0x10] sm:$0xf] }
 0x25e   : > { %v1036_v53 = vsel %vm4022_vm13, %v1034_v58, %v1032_v47  ;;  %vm4024_vm15 = vmmov %vm4023_vm9 }
 0x25f   : > { %v1150_v61 = vsel %vm4024_vm15, %v1148_v59, %v1146_v57  ;;  %v1037_v62 = vsel %vm2873_vm6, %v1036_v53, 0.0  ;;  %vm4026_vm14 = vmmov %vm4025_vm3 }
 0x260   : > { %v1152_v3 = vsel %vm2900_vm2, %v1150_v61, 0.0  ;;  %2455 = vmatpush.msk.msrb.mxu0 %vm4025_vm3, %v1037_v62  ;;  %2457 = vmatpush.msk.msrb.mxu1 %vm4026_vm14, %v1038_v63  ;;  %vm4027_vm1 = vmmov %vm4025_vm3  ;;  %v1260_v61 = vld [vmem:[%s3880_s5 + $0x20] sm:$0xf] }
 0x261   : > { %vm4028_vm8 = vmmov %vm4027_vm1  ;;  %2456 = vmatmul.msk.f32.vlgmr.msrb.gmra.mxu0 %vm4029_vm7, %v2454_v12 }
 0x262   : > { %2465 = vmatpush.msk.msra.mxu0 %vm4027_vm1, %v1151_v0  ;;  %2467 = vmatpush.msk.msra.mxu1 %vm4028_vm8, %v1152_v3  ;;  %vm4030_vm13 = vmmov %vm4029_vm7 }
 0x263   : > { %2458 = vmatmul.msk.f32.vlgmr.msrb.gmra.mxu1 %vm4030_vm13, %v2454_v12  ;;  %vm4031_vm9 = vmmov %vm4029_vm7  ;;  %1361 = vperm.xlu2 %2585, %v1256_v56  }
 0x264   : > { %2461 = vmatmul.msk.f32.vlgmr.msrb.gmra.mxu2 %vm4031_vm9, %v2459_v13  ;;  %vm4032_vm15 = vmmov %vm4029_vm7  ;;  %1421 = vperm.xlu0 %2584, %v1260_v61  }
 0x265   : > { %2463 = vmatmul.msk.f32.vlgmr.msrb.gmra.mxu3 %vm4032_vm15, %v2459_v13  ;;  %vm4033_vm3 = vmmov %vm4029_vm7 }
 0x266   : > { %vm4034_vm14 = vmmov %vm4033_vm3 }
 0x269   : > { %2466 = vmatmul.msk.f32.vlgmr.msra.gmra.mxu0 %vm4033_vm3, %v2464_v14 }
 0x26b   : > { %2468 = vmatmul.msk.f32.vlgmr.msra.gmra.mxu1 %vm4034_vm14, %v2464_v14 }
 0x2ca   : > { %v762_v21 = vpop.f32.mrf.mxu2  ;;  %v782_v22 = vpop.f32.mrf.mxu3 }
 0x2cb   : > { %v763_v29 = vadd.f32 %v762_v21, %v713_v19  ;;  %v783_v31 = vadd.f32 %v782_v22, %v733_v20  ;;  %v1208_v22 = vpop.permute.xlu1 %1207 }
 0x2cd   : > { %v821_v23 = vpop.f32.mrf.mxu0 }
 0x2ce   : > { %v841_v24 = vpop.f32.mrf.mxu1  ;;  %v844_v41 = vadd.f32 %v821_v23, %v763_v29 }
 0x2cf   : > { %v845_v46 = vadd.f32 %v841_v24, %v783_v31 }
 0x2d5   : > { %v935_v37 = vpop.f32.mrf.mxu0 }
 0x2d6   : > { %v882_v7 = vpop.f32.mrf.mxu2 }
 0x2d7   : > { %v902_v32 = vpop.f32.mrf.mxu3  ;;  %v905_v47 = vadd.f32 %v882_v7, %v844_v41 }
 0x2d8   : > { %v955_v39 = vpop.f32.mrf.mxu1  ;;  %v906_v48 = vadd.f32 %v902_v32, %v845_v46 }
 0x2d9   : > { %v958_v36 = vadd.f32 %v935_v37, %v905_v47 }
 0x2da   : > { %v959_v57 = vadd.f32 %v955_v39, %v906_v48 }
 0x2de   : > { %v1065_v58 = vpop.f32.mrf.mxu0 }
 0x2df   : > { %v996_v54 = vpop.f32.mrf.mxu2 }
 0x2e0   : > { %v1016_v8 = vpop.f32.mrf.mxu3  ;;  %v1085_v59 = vpop.f32.mrf.mxu1  ;;  %v1019_v60 = vadd.f32 %v996_v54, %v958_v36 }
 0x2e1   : > { %v1020_v53 = vadd.f32 %v1016_v8, %v959_v57 }
 0x2e2   : > { %v1088_v62 = vadd.f32 %v1065_v58, %v1019_v60 }
 0x2e3   : > { %v1089_v63 = vadd.f32 %v1085_v59, %v1020_v53 }
 0x2e6   : > { %v1179_v14 = vpop.f32.mrf.mxu0 }
 0x2e7   : > { %v1118_v0 = vpop.f32.mrf.mxu2 }
 0x2e8   : > { %v1138_v3 = vpop.f32.mrf.mxu3  ;;  %v1141_v12 = vadd.f32 %v1118_v0, %v1088_v62  ;;  %v1199_v19 = vpop.f32.mrf.mxu1 }
 0x2e9   : > { %v1142_v13 = vadd.f32 %v1138_v3, %v1089_v63 }
 0x2ea   : > { %v1202_v20 = vadd.f32 %v1179_v14, %v1141_v12  ;;  %v1261_v12 = vld [vmem:[%s3880_s5 + $0x24] sm:$0xf]  ;;  %v1490_v14 = vld [vmem:[%s3882_s7] sm:$0xf] }
 0x2eb   : > { %v1203_v21 = vadd.f32 %v1199_v19, %v1142_v13  ;;  %v1262_v13 = vld [vmem:[%s3880_s5 + $0x28] sm:$0xf]  ;;  %v1495_v19 = vld [vmem:[%s3882_s7 + $0x14] sm:$0xf] }
 0x2ec   : > { %v1210_v23 = vadd.f32 %v1208_v22, %v1202_v20  ;;  %v1482_v20 = vld [vmem:[%s3881_s6] sm:$0xf] }
 0x2ed   : > { %v1211_v24 = vadd.f32 %v1208_v22, %v1203_v21  ;;  %v1496_v21 = vld [vmem:[%s3882_s7 + $0x18] sm:$0xf]  ;;  %v3341_v22 = vpop.permute.xlu0 %1283 }
 0x2ee   : > { %v2469_v27 = vmul.f32 -1.442695, %v1210_v23 }
 0x2ef   : > { %v2470_v28 = vmul.f32 -1.442695, %v1211_v24 }
 0x2f0   : > { %2586 = vpow2.f32 %v2469_v27 }
 0x2f1   : > { %2588 = vpow2.f32 %v2470_v28  ;;  %v1492_v28 = vld [vmem:[%s3882_s7 + $0x8] sm:$0xf] }
 0x2f5   : > { %v3348_v27 = vpop.permute.xlu0 %1370 }
 0x2f6   : > { %v2587_v29 = vpop.eup %2586 }
 0x2f7   : > { %v2589_v31 = vpop.eup %2588  ;;  %v1218_v7 = vadd.f32 1.0, %v2587_v29 }
 0x2f8   : > { %v1219_v32 = vadd.f32 1.0, %v2589_v31 }
 0x2f9   : > { %2590 = vrcp.f32 %v1218_v7  ;;  %v1231_v48 = vand.u32 2147483648, %v1218_v7  ;;  %v1229_v54 = vand.u32 2147483647, %v1218_v7  ;;  %vm1225_vm7 = vweird.f32 %v1218_v7 }
 0x2fa   : > { %2592 = vrcp.f32 %v1219_v32  ;;  %v1246_v8 = vand.u32 2147483648, %v1219_v32  ;;  %v1244_v57 = vand.u32 2147483647, %v1219_v32  ;;  %vm1240_vm9 = vweird.f32 %v1219_v32 }
 0x2fb   : > { %v1232_v59 = vor.u32 1.1754944e-38, %v1231_v48  ;;  %vm1230_vm15 = vcmp.eq.f32.partialorder %v1229_v54, 8.507059e+37  ;;  %v1290_v48 = vadd.s32 4294967292, %v2829_v16 }
 0x2fc   : > { %v1247_v56 = vor.u32 1.1754944e-38, %v1246_v8  ;;  %vm1245_vm14 = vcmp.eq.f32.partialorder %v1244_v57, 8.507059e+37 }
 0x2fd   : > { %v3355_v31 = vpop.permute.xlu0 %1387 }
 0x2ff   : > { %v2591_v37 = vpop.eup %2590 }
 0x300   : > { %v2593_v39 = vpop.eup %2592  ;;  %v1221_v41 = vmul.f32 %v2591_v37, %v1218_v7  ;;  %vm1226_vm1 = vweird.f32 %v2591_v37  ;;  %v1493_v7 = vld [vmem:[%s3882_s7 + $0xc] sm:$0xf] }
 0x301   : > { %v1236_v46 = vmul.f32 %v2593_v39, %v1219_v32  ;;  %vm1241_vm8 = vweird.f32 %v2593_v39  ;;  %vm1227_vm13 = vmor %vm1225_vm7, %vm1226_vm1  ;;  %vm1291_vm1 = vcmp.ge.s32.totalorder %v1290_v48, 0 }
 0x302   : > { %v1222_v47 = vsub.f32 1.0, %v1221_v41  ;;  %vm1242_vm3 = vmor %vm1240_vm9, %vm1241_vm8  ;;  %v1311_v41 = vpop.permute.xlu1 %1310  ;;  %vm1292_vm8 = vcmp.lt.s32.totalorder %v1290_v48, 16 }
 0x303   : > { %v1237_v50 = vsub.f32 1.0, %v1236_v46  ;;  %vm1293_vm9 = vmand %vm1291_vm1, %vm1292_vm8 }
 0x304   : > { %v1223_v52 = vmul.f32 %v2591_v37, %v1222_v47 }
 0x305   : > { %v1238_v36 = vmul.f32 %v2593_v39, %v1237_v50  ;;  %v1263_v50 = vadd.s32 4294967291, %v2829_v16 }
 0x306   : > { %v1224_v58 = vadd.f32 %v2591_v37, %v1223_v52 }
 0x307   : > { %v1239_v60 = vadd.f32 %v2593_v39, %v1238_v36  ;;  %vm1264_vm7 = vcmp.ge.s32.totalorder %v1263_v50, 0  ;;  %v1301_v36 = vsel %vm1293_vm9, 1, %v2682_v15 }
 0x308   : > { %v1228_v53 = vsel %vm1227_vm13, %v2591_v37, %v1224_v58  ;;  %v3362_v37 = vpop.permute.xlu0 %1404  ;;  %vm1265_vm13 = vcmp.lt.s32.totalorder %v1263_v50, 16  ;;  %v1302_v58 = vperm.slane %v1301_v36, 0 }
 0x309   : > { %v1233_v61 = vsel %vm1230_vm15, %v1232_v59, %v1228_v53  ;;  %v1243_v62 = vsel %vm1242_vm3, %v2593_v39, %v1239_v60  ;;  %v1494_v39 = vld [vmem:[%s3882_s7 + $0x10] sm:$0xf]  ;;  %vm1266_vm15 = vmand %vm1264_vm7, %vm1265_vm13  ;;  %v1303_v59 = vperm.slane %v1301_v36, 1  ;;  %vm1298_vm3 = vcmp.lt.s32.totalorder %v2835_v25, 4 }
 0x30a   : > { %v3287_v63 = vmul.f32 %v1233_v61, %v1210_v23  ;;  %v1248_v0 = vsel %vm1245_vm14, %v1247_v56, %v1243_v62  ;;  %v3343_v23 = vpop.permute.xlu2 %1327  ;;  %v1274_v57 = vsel %vm1266_vm15, 1, %v2682_v15  ;;  %vm1271_vm14 = vcmp.lt.s32.totalorder %v2835_v25, 5 }
 0x30b   : > { %v3289_v3 = vmul.f32 %v1248_v0, %v1211_v24  ;;  %v1491_v24 = vld [vmem:[%s3882_s7 + $0x4] sm:$0xf]  ;;  %v1275_v60 = vperm.slane %v1274_v57, 0  ;;  %v1276_v53 = vperm.slane %v1274_v57, 1  ;;  %vm3375_vm11 = vcmp.eq.s32.totalorder %v1302_v58, 1 }
 0x30c   : > { %1294 = vrot.lane.b32.xlu1 %v3287_v63, %s2689_s25  ;;  %1267 = vrot.lane.b32.xlu2 %v3287_v63, %s2690_s14  ;;  %vm3379_vm1 = vcmp.eq.s32.totalorder %v1303_v59, 1  ;;  %vm4045_vm13 = vcmp.lt.s32.totalorder %v2835_v25, 3  ;;  %vm4047_vm15 = vcmp.lt.s32.totalorder %v2835_v25, 2 }
 0x30d   : > { %1269 = vrot.lane.b32.xlu0 %v3289_v3, %s2690_s14  ;;  %s4036_s14 = smov 125   ;;  %vm3383_vm8 = vcmp.eq.s32.totalorder %v1275_v60, 1  ;;  %vm3387_vm7 = vcmp.eq.s32.totalorder %v1276_v53, 1  ;;  %vm4046_vm9 = vmmov %vm4045_vm13 }
 0x310   : > { %v3367_v47 = vpop.permute.xlu0 %1421 }
 0x312   : > { %v3353_v29 = vpop.permute.xlu2 %1344 }
 0x314   : > { %1319 = vrot.lane.b32.xlu1 %v3289_v3, %s2676_s15  ;;  %1296 = vrot.lane.b32.xlu2 %v3289_v3, %s2689_s25  ;;  %s4072_s25 = smov 32  }
 0x315   : > { %1334 = vrot.lane.b32.xlu0 %v3287_v63, %s2677_s16 }
 0x31a   : > { %v3360_v32 = vpop.permute.xlu2 %1361 }
 0x31c   : > { %1336 = vrot.lane.b32.xlu1 %v3289_v3, %s2677_s16  ;;  %1317 = vrot.lane.b32.xlu2 %v3287_v63, %s2676_s15  ;;  %s4035_s15 = smov 126   ;;  %s4071_s16 = smov 112  }
 0x31d   : > { %1351 = vrot.lane.b32.xlu0 %v3287_v63, %s3938_s22 }
 0x324   : > { %1353 = vrot.lane.b32.xlu1 %v3289_v3, %s3938_s22  ;;  %1379 = vrot.lane.b32.xlu2 %v3289_v3, %s3936_s24  ;;  %s4115_s22 = smov 127  }
 0x325   : > { %1448 = vperm.xlu0 %2584, %v1261_v12  }
 0x32c   : > { %1377 = vrot.lane.b32.xlu1 %v3287_v63, %s3936_s24  ;;  %1396 = vrot.lane.b32.xlu2 %v3289_v3, %s4035_s15 }
 0x32d   : > { %1475 = vperm.xlu0 %2584, %v1262_v13  }
 0x334   : > { %1394 = vrot.lane.b32.xlu1 %v3287_v63, %s4035_s15  ;;  %1413 = vrot.lane.b32.xlu2 %v3289_v3, %s4036_s14  ;;  %s4070_s15 = smov 48  }
 0x335   : > { %1520 = vperm.xlu0 %2584, %v1490_v14  }
 0x33c   : > { %1411 = vrot.lane.b32.xlu1 %v3287_v63, %s4036_s14  ;;  %1434 = vrot.lane.b32.xlu2 %v3289_v3, %s2691_s13  ;;  %s4073_s14 = smov 96  }
 0x344   : > { %1432 = vrot.lane.b32.xlu1 %v3287_v63, %s2691_s13  ;;  %1461 = vrot.lane.b32.xlu2 %v3289_v3, %s2692_s12 }
 0x34c   : > { %1459 = vrot.lane.b32.xlu1 %v3287_v63, %s2692_s12  ;;  %1607 = vperm.xlu2 %2585, %v1495_v19   ;;  %s4069_s12 = smov 80  }
 0x354   : > { %1485 = vperm.xlu1 %2583, %v1482_v20   ;;  %1624 = vperm.xlu2 %2585, %v1496_v21  }
 0x35c   : > { %1547 = vperm.xlu1 %2583, %v1491_v24  }
 0x364   : > { %1564 = vperm.xlu1 %2583, %v1492_v28  }
 0x366   : > { %v1268_v46 = vpop.permute.xlu2 %1267 }
 0x36c   : > { %1581 = vperm.xlu1 %2583, %v1493_v7  }
 0x36e   : > { %v1297_v54 = vpop.permute.xlu2 %1296 }
 0x374   : > { %1598 = vperm.xlu1 %2583, %v1494_v39  }
 0x376   : > { %v1318_v12 = vpop.permute.xlu2 %1317 }
 0x37e   : > { %v1295_v52 = vpop.permute.xlu1 %1294  ;;  %v1380_v61 = vpop.permute.xlu2 %1379 }
 0x37f   : > { %v1270_v8 = vpop.permute.xlu0 %1269  ;;  %v1299_v13 = vsel %vm1298_vm3, %v1295_v52, %v1297_v54  ;;  %v1300_v14 = vsel %vm1298_vm3, %v1297_v54, %v1295_v52  ;;  %vm4048_vm3 = vmmov %vm4047_vm15 }
 0x380   : > { %v1272_v19 = vsel %vm1271_vm14, %v1268_v46, %v1270_v8  ;;  %v1273_v20 = vsel %vm1271_vm14, %v1270_v8, %v1268_v46  ;;  %v1306_v7 = vsel %vm3375_vm11, %v1300_v14, 0.0  ;;  %v1307_v39 = vsel %vm3379_vm1, %v1299_v13, 0.0 }
 0x381   : > { %v1279_v48 = vsel %vm3383_vm8, %v1273_v20, 0.0  ;;  %v1280_v50 = vsel %vm3387_vm7, %v1272_v19, 0.0  ;;  %vm4049_vm14 = vnez %v3945_v35  ;;  %vm4050_vm11 = vnez %v3947_v38 }
 0x382   : > { %v1313_v57 = vmul.f32 %v1311_v41, %v1306_v7  ;;  %v1314_v58 = vmul.f32 %v1311_v41, %v1307_v39  ;;  %v1286_v59 = vmul.f32 %v3341_v22, %v1279_v48  ;;  %v1287_v60 = vmul.f32 %v3341_v22, %v1280_v50 }
 0x383   : > { %vm4051_vm1 = vnez %v3949_v42  ;;  %vm4052_vm8 = vnez %v3951_v44  ;;  %vm4053_vm7 = vcmp.lt.s32.totalorder %v2835_v25, 1  ;;  %v1374_v7 = vmul.f32 %v3348_v27, %v3289_v3 }
 0x384   : > { %v1315_v62 = vadd.f32 %v1313_v57, %v1286_v59  ;;  %v1316_v38 = vadd.f32 %v1314_v58, %v1287_v60 }
 0x386   : > { %v1320_v56 = vpop.permute.xlu1 %1319 }
 0x387   : > { %v1335_v21 = vpop.permute.xlu0 %1334  ;;  %v1321_v24 = vsel %vm4045_vm13, %v1318_v12, %v1320_v56  ;;  %v1322_v28 = vsel %vm4046_vm9, %v1320_v56, %v1318_v12  ;;  %vm4054_vm13 = vmmov %vm4053_vm7 }
 0x388   : > { %v1323_v8 = vsel %vm4049_vm14, %v1322_v28, 0.0  ;;  %v1324_v36 = vsel %vm4050_vm11, %v1321_v24, 0.0  ;;  %v1373_v28 = vmul.f32 %v3348_v27, %v3287_v63 }
 0x389   : > { %v1330_v16 = vmul.f32 %v3343_v23, %v1323_v8  ;;  %v1331_v35 = vmul.f32 %v3343_v23, %v1324_v36  ;;  %v2610_v36 = vld [vmem:[%s3877_s2] sm:$0x3] }
 0x38a   : > { %v1428_v57 = vadd.s32 4, %v2610_v36 }
 0x38b   : > { %v1332_v22 = vadd.f32 %v1330_v16, %v1315_v62  ;;  %v1333_v14 = vadd.f32 %v1331_v35, %v1316_v38 }
 0x38c   : > { %vm1429_vm9 = vcmp.ge.s32.totalorder %v1428_v57, 0 }
 0x38e   : > { %v1337_v46 = vpop.permute.xlu1 %1336 }
 0x38f   : > { %v1338_v52 = vsel %vm4047_vm15, %v1335_v21, %v1337_v46  ;;  %v1339_v54 = vsel %vm4048_vm3, %v1337_v46, %v1335_v21  ;;  %v1352_v12 = vpop.permute.xlu0 %1351  ;;  %vm1430_vm15 = vcmp.lt.s32.totalorder %v1428_v57, 16 }
 0x390   : > { %v1340_v53 = vsel %vm4051_vm1, %v1339_v54, 0.0  ;;  %v1341_v56 = vsel %vm4052_vm8, %v1338_v52, 0.0  ;;  %v1397_v54 = vpop.permute.xlu2 %1396  ;;  %vm1431_vm3 = vmand %vm1429_vm9, %vm1430_vm15  ;;  %vm4055_vm1 = vcmp.lt.s32.totalorder %v2835_v25, 127  ;;  %vm1436_vm9 = vcmp.lt.s32.totalorder %v2835_v25, 124 }
 0x391   : > { %v1347_v0 = vmul.f32 %v3353_v29, %v1340_v53  ;;  %v1348_v41 = vmul.f32 %v3353_v29, %v1341_v56  ;;  %v1439_v3 = vsel %vm1431_vm3, 1, %v2682_v15  ;;  %vm4056_vm8 = vmmov %vm4055_vm1  ;;  %vm4059_vm15 = vnez %v3961_v17 }
 0x392   : > { %v1440_v16 = vperm.slane %v1439_v3, 0  ;;  %v1441_v35 = vperm.slane %v1439_v3, 1  ;;  %vm4060_vm3 = vnez %v3963_v18 }
 0x393   : > { %v1349_v20 = vadd.f32 %v1347_v0, %v1332_v22  ;;  %v1350_v21 = vadd.f32 %v1348_v41, %v1333_v14 }
 0x396   : > { %v1354_v13 = vpop.permute.xlu1 %1353 }
 0x397   : > { %v1355_v42 = vsel %vm4053_vm7, %v1352_v12, %v1354_v13  ;;  %v1356_v44 = vsel %vm4054_vm13, %v1354_v13, %v1352_v12  ;;  %vm4057_vm13 = vcmp.lt.s32.totalorder %v2835_v25, 126  ;;  %v1449_v0 = vpop.permute.xlu0 %1448 }
 0x398   : > { %v1357_v23 = vsel %vm2873_vm6, %v1356_v44, 0.0  ;;  %v1358_v19 = vsel %vm2882_vm10, %v1355_v42, 0.0  ;;  %v1414_v58 = vpop.permute.xlu2 %1413  ;;  %vm4058_vm10 = vmmov %vm4057_vm13 }
 0x399   : > { %v1364_v29 = vmul.f32 %v3360_v32, %v1357_v23  ;;  %v1365_v24 = vmul.f32 %v3360_v32, %v1358_v19  ;;  %v1455_v32 = vadd.s32 5, %v2610_v36 }
 0x39b   : > { %v1366_v39 = vadd.f32 %v1364_v29, %v1349_v20  ;;  %v1367_v48 = vadd.f32 %v1365_v24, %v1350_v21  ;;  %vm1456_vm14 = vcmp.ge.s32.totalorder %v1455_v32, 0  ;;  %vm1457_vm11 = vcmp.lt.s32.totalorder %v1455_v32, 16 }
 0x39c   : > { %vm1458_vm7 = vmand %vm1456_vm14, %vm1457_vm11  ;;  %vm3463_vm11 = vcmp.eq.s32.totalorder %v1440_v16, 1 }
 0x39d   : > { %v1375_v50 = vadd.f32 %v1373_v28, %v1366_v39  ;;  %v1376_v46 = vadd.f32 %v1374_v7, %v1367_v48  ;;  %v1466_v41 = vsel %vm1458_vm7, 1, %v2682_v15  ;;  %vm4068_vm7 = vnez %v3967_v34 }
 0x39e   : > { %v1378_v52 = vpop.permute.xlu1 %1377  ;;  %v1467_v20 = vperm.slane %v1466_v41, 0  ;;  %v1468_v21 = vperm.slane %v1466_v41, 1  ;;  %v1497_v41 = vld [vmem:[%s3882_s7 + $0x1c] sm:$0xf] }
 0x39f   : > { %v1381_v27 = vsel %vm4055_vm1, %v1378_v52, %v1380_v61  ;;  %v1382_v59 = vsel %vm4056_vm8, %v1380_v61, %v1378_v52  ;;  %vm3467_vm1 = vcmp.eq.s32.totalorder %v1441_v35, 1  ;;  %vm4067_vm8 = vnez %v3965_v33  ;;  %v1476_v32 = vpop.permute.xlu0 %1475 }
 0x3a0   : > { %v1435_v60 = vpop.permute.xlu2 %1434  ;;  %v1383_v62 = vsel %vm2896_vm0, %v1381_v27, 0.0  ;;  %v1384_v38 = vsel %vm2900_vm2, %v1382_v59, 0.0 }
 0x3a1   : > { %v1390_v42 = vmul.f32 %v3355_v31, %v1383_v62  ;;  %v1391_v44 = vmul.f32 %v3355_v31, %v1384_v38 }
 0x3a3   : > { %v1392_v7 = vadd.f32 %v1390_v42, %v1375_v50  ;;  %v1393_v39 = vadd.f32 %v1391_v44, %v1376_v46 }
 0x3a6   : > { %v1395_v8 = vpop.permute.xlu1 %1394 }
 0x3a7   : > { %v1398_v53 = vsel %vm4057_vm13, %v1395_v8, %v1397_v54  ;;  %v1399_v56 = vsel %vm4058_vm10, %v1397_v54, %v1395_v8  ;;  %vm4061_vm10 = vcmp.lt.s32.totalorder %v2835_v25, 125  ;;  %vm1463_vm13 = vcmp.lt.s32.totalorder %v2835_v25, 123 }
 0x3a8   : > { %v1400_v12 = vsel %vm4059_vm15, %v1398_v53, 0.0  ;;  %v1401_v13 = vsel %vm4060_vm3, %v1399_v56, 0.0  ;;  %vm4062_vm14 = vmmov %vm4061_vm10  ;;  %vm1470_vm15 = vcmp.eq.s32.totalorder %v1468_v21, 1  ;;  %v1462_v33 = vpop.permute.xlu2 %1461 }
 0x3a9   : > { %v1407_v29 = vmul.f32 %v3362_v37, %v1400_v12  ;;  %v1408_v24 = vmul.f32 %v3362_v37, %v1401_v13  ;;  %v1498_v12 = vld [vmem:[%s3882_s7 + $0x20] sm:$0xf]  ;;  %v1500_v13 = vld [vmem:[%s3882_s7 + $0x28] sm:$0xf] }
 0x3ab   : > { %v1409_v8 = vadd.f32 %v1407_v29, %v1392_v7  ;;  %v1410_v34 = vadd.f32 %v1408_v24, %v1393_v39  ;;  %v2611_v29 = vld [vmem:[%s3876_s1] sm:$0x3] }
 0x3ac   : > { %v1527_v24 = vadd.s32 4294967292, %v2611_v29 }
 0x3ae   : > { %v1412_v63 = vpop.permute.xlu1 %1411  ;;  %vm1528_vm3 = vcmp.ge.s32.totalorder %v1527_v24, 0 }
 0x3af   : > { %v1415_v22 = vsel %vm4061_vm10, %v1412_v63, %v1414_v58  ;;  %v1416_v14 = vsel %vm4062_vm14, %v1414_v58, %v1412_v63  ;;  %vm1529_vm10 = vcmp.lt.s32.totalorder %v1527_v24, 16 }
 0x3b0   : > { %v1417_v28 = vsel %vm4067_vm8, %v1415_v22, 0.0  ;;  %v1418_v31 = vsel %vm4068_vm7, %v1416_v14, 0.0  ;;  %v1699_v22 = vld [vmem:[%s3883_s8] sm:$0xf]  ;;  %v3533_v14 = vpop.permute.xlu2 %1607  ;;  %vm1535_vm7 = vcmp.lt.s32.totalorder %v2835_v25, 64 }
 0x3b1   : > { %v1424_v54 = vmul.f32 %v3367_v47, %v1417_v28  ;;  %v1425_v37 = vmul.f32 %v3367_v47, %v1418_v31  ;;  %v1501_v28 = vadd.s32 4294967291, %v2611_v29 }
 0x3b3   : > { %v1426_v27 = vadd.f32 %v1424_v54, %v1409_v8  ;;  %v1427_v59 = vadd.f32 %v1425_v37, %v1410_v34  ;;  %vm1502_vm14 = vcmp.ge.s32.totalorder %v1501_v28, 0 }
 0x3b6   : > { %v1433_v61 = vpop.permute.xlu1 %1432 }
 0x3b7   : > { %v1437_v18 = vsel %vm1436_vm9, %v1433_v61, %v1435_v60  ;;  %v1438_v19 = vsel %vm1436_vm9, %v1435_v60, %v1433_v61  ;;  %vm1469_vm9 = vcmp.eq.s32.totalorder %v1467_v20, 1  ;;  %v1499_v61 = vld [vmem:[%s3882_s7 + $0x24] sm:$0xf] }
 0x3b8   : > { %v1444_v48 = vsel %vm3463_vm11, %v1437_v18, 0.0  ;;  %v1445_v52 = vsel %vm3467_vm1, %v1438_v19, 0.0  ;;  %v3535_v44 = vpop.permute.xlu2 %1624  ;;  %v1521_v18 = vpop.permute.xlu0 %1520  ;;  %vm1503_vm11 = vcmp.lt.s32.totalorder %v1501_v28, 16  ;;  %vm1530_vm1 = vmand %vm1528_vm3, %vm1529_vm10  ;;  %vm4083_vm10 = vcmp.lt.s32.totalorder %v2835_v25, 80 }
 0x3b9   : > { %v1451_v57 = vmul.f32 %v1449_v0, %v1444_v48  ;;  %v1452_v58 = vmul.f32 %v1449_v0, %v1445_v52  ;;  %vm1504_vm8 = vmand %vm1502_vm14, %vm1503_vm11  ;;  %v1538_v48 = vsel %vm1530_vm1, 1, %v2682_v15  ;;  %vm4085_vm11 = vcmp.lt.s32.totalorder %v2835_v25, 48 }
 0x3ba   : > { %v1511_v52 = vsel %vm1504_vm8, 1, %v2682_v15  ;;  %v1540_v8 = vperm.slane %v1538_v48, 1  ;;  %vm4084_vm14 = vmmov %vm4083_vm10  ;;  %vm4087_vm8 = vnez %v3969_v1 }
 0x3bb   : > { %v1453_v53 = vadd.f32 %v1451_v57, %v1426_v27  ;;  %v1454_v56 = vadd.f32 %v1452_v58, %v1427_v59  ;;  %v1512_v34 = vperm.slane %v1511_v52, 0  ;;  %vm4086_vm1 = vmmov %vm4085_vm11 }
 0x3be   : > { %v1460_v36 = vpop.permute.xlu1 %1459 }
 0x3bf   : > { %v1464_v50 = vsel %vm1463_vm13, %v1460_v36, %v1462_v33  ;;  %v1465_v46 = vsel %vm1463_vm13, %v1462_v33, %v1460_v36  ;;  %v1539_v33 = vperm.slane %v1538_v48, 0  ;;  %v1513_v36 = vperm.slane %v1511_v52, 1 }
 0x3c0   : > { %v1471_v63 = vsel %vm1469_vm9, %v1464_v50, 0.0  ;;  %v1472_v3 = vsel %vm1470_vm15, %v1465_v46, 0.0  ;;  %vm3551_vm9 = vcmp.eq.s32.totalorder %v1540_v8, 1  ;;  %vm3555_vm15 = vcmp.eq.s32.totalorder %v1512_v34, 1 }
 0x3c1   : > { %v1478_v47 = vmul.f32 %v1476_v32, %v1471_v63  ;;  %v1479_v60 = vmul.f32 %v1476_v32, %v1472_v3  ;;  %vm3547_vm13 = vcmp.eq.s32.totalorder %v1539_v33, 1  ;;  %vm3559_vm3 = vcmp.eq.s32.totalorder %v1513_v36, 1 }
 0x3c3   : > { %v1480_v16 = vadd.f32 %v1478_v47, %v1453_v53  ;;  %v1481_v35 = vadd.f32 %v1479_v60, %v1454_v56 }
 0x3c6   : > { %v1486_v62 = vpop.permute.xlu1 %1485 }
 0x3c7   : > { %v3488_v38 = vadd.f32 %v1486_v62, %v1480_v16  ;;  %v3490_v0 = vadd.f32 %v1486_v62, %v1481_v35 }
 0x3c9   : > { %1507 = vrot.lane.b32.xlu0 %v3490_v0, %s4069_s12  ;;  %1531 = vrot.lane.b32.xlu1 %v3488_v38, %s2693_s30 }
 0x3ca   : > { %1505 = vrot.lane.b32.xlu2 %v3488_v38, %s4069_s12  ;;  %s4074_s12 = smov 16  }
 0x3ce   : > { %v1548_v42 = vpop.permute.xlu1 %1547 }
 0x3d1   : > { %1556 = vrot.lane.b32.xlu0 %v3490_v0, %s4070_s15  ;;  %1616 = vrot.lane.b32.xlu1 %v3490_v0, %s4071_s16 }
 0x3d2   : > { %1533 = vrot.lane.b32.xlu2 %v3490_v0, %s2693_s30 }
 0x3d6   : > { %v1565_v23 = vpop.permute.xlu1 %1564 }
 0x3d9   : > { %1573 = vrot.lane.b32.xlu0 %v3490_v0, %s4072_s25  ;;  %1633 = vrot.lane.b32.xlu1 %v3490_v0, %s4073_s14 }
 0x3da   : > { %1554 = vrot.lane.b32.xlu2 %v3488_v38, %s4070_s15 }
 0x3de   : > { %v3537_v19 = vpop.permute.xlu1 %1581 }
 0x3e1   : > { %1590 = vrot.lane.b32.xlu0 %v3490_v0, %s4074_s12  ;;  %1672 = vperm.xlu1 %2583, %v1499_v61  }
 0x3e2   : > { %1571 = vrot.lane.b32.xlu2 %v3488_v38, %s4072_s25 }
 0x3e6   : > { %v3542_v7 = vpop.permute.xlu1 %1598 }
 0x3e9   : > { %1614 = vrot.lane.b32.xlu0 %v3488_v38, %s4071_s16 }
 0x3ea   : > { %1588 = vrot.lane.b32.xlu2 %v3488_v38, %s4074_s12 }
 0x3f1   : > { %1631 = vrot.lane.b32.xlu0 %v3488_v38, %s4073_s14 }
 0x3f2   : > { %1641 = vperm.xlu2 %2585, %v1497_v41   ;;  %v1659_v41 = vadd.s32 4, %v2611_v29 }
 0x3f9   : > { %1652 = vperm.xlu0 %2584, %v1498_v12   ;;  %v1679_v12 = vadd.s32 5, %v2611_v29 }
 0x3fa   : > { %1692 = vperm.xlu2 %2585, %v1500_v13  }
 0x401   : > { %1702 = vperm.xlu0 %2584, %v1699_v22  }
 0x424   : > { %v1506_v17 = vpop.permute.xlu2 %1505 }
 0x42c   : > { %v1534_v20 = vpop.permute.xlu2 %1533 }
 0x434   : > { %v1555_v39 = vpop.permute.xlu2 %1554 }
 0x43b   : > { %v1508_v21 = vpop.permute.xlu0 %1507  ;;  %v1532_v37 = vpop.permute.xlu1 %1531 }
 0x43c   : > { %v1572_v57 = vpop.permute.xlu2 %1571  ;;  %v3563_v63 = vsel %vm1535_vm7, %v1532_v37, %v1534_v20  ;;  %v3565_v3 = vsel %vm1535_vm7, %v1534_v20, %v1532_v37  ;;  %v3569_v27 = vsel %vm4083_vm10, %v1506_v17, %v1508_v21  ;;  %v3573_v59 = vsel %vm4084_vm14, %v1508_v21, %v1506_v17 }
 0x43d   : > { %v1543_v56 = vsel %vm3547_vm13, %v3565_v3, 0.0  ;;  %v1544_v16 = vsel %vm3551_vm9, %v3563_v63, 0.0  ;;  %v1516_v35 = vsel %vm3555_vm15, %v3573_v59, 0.0  ;;  %v1517_v62 = vsel %vm3559_vm3, %v3569_v27, 0.0 }
 0x43e   : > { %vm4088_vm7 = vnez %v3971_v2  ;;  %vm4089_vm13 = vcmp.lt.s32.totalorder %v2835_v25, 32  ;;  %v1550_v21 = vmul.f32 %v1548_v42, %v1543_v56  ;;  %v1551_v24 = vmul.f32 %v1548_v42, %v1544_v16 }
 0x43f   : > { %vm4090_vm9 = vmmov %vm4089_vm13  ;;  %v1523_v28 = vmul.f32 %v1521_v18, %v1516_v35  ;;  %vm4091_vm15 = vcmp.lt.s32.totalorder %v2835_v25, 16  ;;  %vm4093_vm10 = vnez %v3973_v10  ;;  %vm4094_vm14 = vnez %v3975_v11 }
 0x440   : > { %vm4092_vm3 = vmmov %vm4091_vm15 }
 0x441   : > { %v1552_v42 = vadd.f32 %v1550_v21, %v1523_v28 }
 0x443   : > { %v1557_v31 = vpop.permute.xlu0 %1556  ;;  %v1617_v61 = vpop.permute.xlu1 %1616 }
 0x444   : > { %v3577_v60 = vsel %vm4085_vm11, %v1555_v39, %v1557_v31  ;;  %v3581_v53 = vsel %vm4086_vm1, %v1557_v31, %v1555_v39  ;;  %v1524_v31 = vmul.f32 %v1521_v18, %v1517_v62  ;;  %v1589_v39 = vpop.permute.xlu2 %1588  ;;  %vm1660_vm11 = vcmp.ge.s32.totalorder %v1659_v41, 0 }
 0x445   : > { %v1560_v13 = vsel %vm4087_vm8, %v3581_v53, 0.0  ;;  %v1561_v22 = vsel %vm4088_vm7, %v3577_v60, 0.0  ;;  %vm1661_vm1 = vcmp.lt.s32.totalorder %v1659_v41, 16  ;;  %vm1680_vm8 = vcmp.ge.s32.totalorder %v1679_v12, 0 }
 0x446   : > { %v1567_v48 = vmul.f32 %v1565_v23, %v1560_v13  ;;  %v1568_v2 = vmul.f32 %v1565_v23, %v1561_v22  ;;  %vm1681_vm7 = vcmp.lt.s32.totalorder %v1679_v12, 16  ;;  %v1553_v18 = vadd.f32 %v1551_v24, %v1524_v31 }
 0x447   : > { %v1610_v22 = vmul.f32 %v3533_v14, %v3488_v38 }
 0x448   : > { %v1569_v34 = vadd.f32 %v1567_v48, %v1552_v42  ;;  %v1570_v11 = vadd.f32 %v1568_v2, %v1553_v18 }
 0x44b   : > { %v1574_v54 = vpop.permute.xlu0 %1573  ;;  %v1634_v46 = vpop.permute.xlu1 %1633 }
 0x44c   : > { %v1575_v17 = vsel %vm4089_vm13, %v1572_v57, %v1574_v54  ;;  %v1576_v20 = vsel %vm4090_vm9, %v1574_v54, %v1572_v57  ;;  %vm1662_vm13 = vmand %vm1660_vm11, %vm1661_vm1  ;;  %v1642_v56 = vpop.permute.xlu2 %1641  ;;  %vm4100_vm1 = vnez %v3987_v4 }
 0x44d   : > { %v1577_v52 = vsel %vm4093_vm10, %v1576_v20, 0.0  ;;  %v1578_v37 = vsel %vm4094_vm14, %v1575_v17, 0.0  ;;  %vm1682_vm9 = vmand %vm1680_vm8, %vm1681_vm7  ;;  %vm4097_vm10 = vnez %v3985_v49  ;;  %vm4098_vm14 = vcmp.lt.s32.totalorder %v2835_v25, 96  ;;  %v2471_v49 = vld [vmem:[%s3884_s9 + $0x4] sm:$0xf] }
 0x44e   : > { %v1584_v23 = vmul.f32 %v3537_v19, %v1577_v52  ;;  %v1585_v10 = vmul.f32 %v3537_v19, %v1578_v37  ;;  %v1663_v19 = vsel %vm1662_vm13, 1, %v2682_v15  ;;  %v1683_v16 = vsel %vm1682_vm9, 1, %v2682_v15  ;;  %vm4099_vm11 = vmmov %vm4098_vm14 }
 0x44f   : > { %v1611_v15 = vmul.f32 %v3533_v14, %v3490_v0  ;;  %vm4101_vm8 = vnez %v3989_v9  ;;  %v1664_v21 = vperm.slane %v1663_v19, 0  ;;  %v1665_v24 = vperm.slane %v1663_v19, 1  ;;  %v2480_v0 = vld [vmem:[%s3884_s9 + $0x8] sm:$0xf] }
 0x450   : > { %v1586_v32 = vadd.f32 %v1584_v23, %v1569_v34 }
 0x451   : > { %vm3645_vm7 = vcmp.eq.s32.totalorder %v1664_v21, 1  ;;  %vm3649_vm13 = vcmp.eq.s32.totalorder %v1665_v24, 1 }
 0x452   : > { %v1668_v34 = vsel %vm3645_vm7, %v3563_v63, 0.0 }
 0x453   : > { %v1591_v47 = vpop.permute.xlu0 %1590  ;;  %v1673_v52 = vpop.permute.xlu1 %1672 }
 0x454   : > { %v1592_v29 = vsel %vm4091_vm15, %v1589_v39, %v1591_v47  ;;  %v1593_v1 = vsel %vm4092_vm3, %v1591_v47, %v1589_v39  ;;  %vm4095_vm15 = vcmp.lt.s32.totalorder %v2835_v25, 112  ;;  %v1587_v47 = vadd.f32 %v1585_v10, %v1570_v11 }
 0x455   : > { %v1594_v33 = vsel %vm3015_vm12, %v1593_v1, 0.0  ;;  %v1595_v8 = vsel %vm3023_vm4, %v1592_v29, 0.0  ;;  %vm4096_vm3 = vmmov %vm4095_vm15  ;;  %v1684_v39 = vperm.slane %v1683_v16, 0  ;;  %v1685_v29 = vperm.slane %v1683_v16, 1 }
 0x456   : > { %v1601_v36 = vmul.f32 %v3542_v7, %v1594_v33  ;;  %v1602_v57 = vmul.f32 %v3542_v7, %v1595_v8  ;;  %v1669_v11 = vsel %vm3649_vm13, %v3565_v3, 0.0  ;;  %vm4122_vm13 = vcmp.lt.s32.totalorder %v2835_v25, 1 }
 0x457   : > { %vm3653_vm9 = vcmp.eq.s32.totalorder %v1684_v39, 1 }
 0x458   : > { %v1603_v41 = vadd.f32 %v1601_v36, %v1586_v32  ;;  %v1604_v12 = vadd.f32 %v1602_v57, %v1587_v47  ;;  %v1693_v36 = vpop.permute.xlu2 %1692 }
 0x45a   : > { %v1612_v1 = vadd.f32 %v1610_v22, %v1603_v41  ;;  %v1613_v48 = vadd.f32 %v1611_v15, %v1604_v12 }
 0x45b   : > { %v1615_v54 = vpop.permute.xlu0 %1614 }
 0x45c   : > { %v1618_v58 = vsel %vm4095_vm15, %v1615_v54, %v1617_v61  ;;  %v1619_v50 = vsel %vm4096_vm3, %v1617_v61, %v1615_v54  ;;  %vm3657_vm15 = vcmp.eq.s32.totalorder %v1685_v29, 1  ;;  %vm4110_vm3 = vnez %v3991_v43 }
 0x45d   : > { %v1620_v35 = vsel %vm3032_vm5, %v1618_v58, 0.0  ;;  %v1621_v7 = vsel %vm4097_vm10, %v1619_v50, 0.0  ;;  %v1648_v54 = vsel %vm4110_vm3, %v3569_v27, 0.0  ;;  %v1675_v43 = vmul.f32 %v1673_v52, %v1668_v34 }
 0x45e   : > { %v1627_v28 = vmul.f32 %v3535_v44, %v1620_v35  ;;  %v1628_v31 = vmul.f32 %v3535_v44, %v1621_v7  ;;  %v1676_v27 = vmul.f32 %v1673_v52, %v1669_v11  ;;  %v2485_v44 = vld [vmem:[%s3884_s9 + $0xc] sm:$0xf] }
 0x460   : > { %v1629_v9 = vadd.f32 %v1627_v28, %v1612_v1  ;;  %v1630_v14 = vadd.f32 %v1628_v31, %v1613_v48  ;;  %v1715_v48 = vld [vmem:[%s3884_s9] sm:$0xf] }
 0x463   : > { %v1632_v62 = vpop.permute.xlu0 %1631 }
 0x464   : > { %v1635_v61 = vsel %vm4098_vm14, %v1632_v62, %v1634_v46  ;;  %v1636_v13 = vsel %vm4099_vm11, %v1634_v46, %v1632_v62  ;;  %vm4111_vm14 = vnez %v3993_v45  ;;  %v1688_v45 = vsel %vm3653_vm9, %v3577_v60, 0.0  ;;  %vm4123_vm9 = vmmov %vm4122_vm13 }
 0x465   : > { %v1637_v17 = vsel %vm4100_vm1, %v1635_v61, 0.0  ;;  %v1638_v20 = vsel %vm4101_vm8, %v1636_v13, 0.0  ;;  %v1649_v42 = vsel %vm4111_vm14, %v3573_v59, 0.0  ;;  %v1689_v59 = vsel %vm3657_vm15, %v3581_v53, 0.0 }
 0x466   : > { %v1644_v38 = vmul.f32 %v1642_v56, %v1637_v17  ;;  %v1645_v2 = vmul.f32 %v1642_v56, %v1638_v20  ;;  %v1695_v50 = vmul.f32 %v1693_v36, %v1688_v45  ;;  %v1696_v46 = vmul.f32 %v1693_v36, %v1689_v59  ;;  %v2500_v59 = vld [vmem:[%s3884_s9 + $0x18] sm:$0xf] }
 0x467   : > { %vm4112_vm11 = vcmp.lt.s32.totalorder %v2835_v25, 16  ;;  %vm4116_vm8 = vcmask 1043456   ;;  %vm4124_vm15 = vcmp.lt.s32.totalorder %v2835_v25, 127  ;;  %vm4126_vm14 = vnez %v3955_v55 }
 0x468   : > { %v1646_v33 = vadd.f32 %v1644_v38, %v1629_v9  ;;  %v1647_v8 = vadd.f32 %v1645_v2, %v1630_v14  ;;  %vm4113_vm1 = vmmov %vm4112_vm11 }
 0x469   : > { %vm4117_vm7 = vmmov %vm4116_vm8 }
 0x46a   : > { %vm4125_vm3 = vmmov %vm4124_vm15 }
 0x46b   : > { %v1653_v18 = vpop.permute.xlu0 %1652 }
 0x46c   : > { %v1655_v23 = vmul.f32 %v1653_v18, %v1648_v54  ;;  %v1656_v10 = vmul.f32 %v1653_v18, %v1649_v42  ;;  %v2490_v18 = vld [vmem:[%s3884_s9 + $0x10] sm:$0xf] }
 0x46e   : > { %v1657_v57 = vadd.f32 %v1655_v23, %v1646_v33  ;;  %v1658_v58 = vadd.f32 %v1656_v10, %v1647_v8 }
 0x470   : > { %v1677_v63 = vadd.f32 %v1675_v43, %v1657_v57  ;;  %v1678_v32 = vadd.f32 %v1676_v27, %v1658_v58  ;;  %v2495_v57 = vld [vmem:[%s3884_s9 + $0x14] sm:$0xf] }
 0x472   : > { %v1697_v47 = vadd.f32 %v1695_v50, %v1677_v63  ;;  %v1698_v56 = vadd.f32 %v1696_v46, %v1678_v32  ;;  %v2505_v63 = vld [vmem:[%s3884_s9 + $0x1c] sm:$0xf] }
 0x473   : > { %v1703_v3 = vpop.permute.xlu0 %1702 }
 0x474   : > { %v1705_v19 = vadd.f32 %v1703_v3, %v1697_v47  ;;  %v1706_v16 = vadd.f32 %v1703_v3, %v1698_v56  ;;  %v2510_v56 = vld [vmem:[%s3884_s9 + $0x20] sm:$0xf] }
 0x476   : > { %1709 = vrot.lane.b32.xlu2 %v1706_v16, %s4074_s12  ;;  %2060 = vrot.lane.b32.xlu0 %v1705_v19, %s4071_s16 }
 0x477   : > { %1707 = vrot.lane.b32.xlu1 %v1705_v19, %s4074_s12  ;;  %s2632_s12 = scalar_lea.hbm %s3886_s11, 16 }
 0x47f   : > { %2062 = vrot.lane.b32.xlu1 %v1706_v16, %s4071_s16  ;;  %s2525_s16 = sshll.u32 %s2775_s21, 3 }
 0x480   : > { %s2354_s15 = scalar_lea.hbm %s3886_s11, %s2525_s16 }
 0x481   : > { %s2358_s29 = sshll.u32 %s2354_s15, 4  ;;  %s2359_s29 = int_to_ptr.hbm [resolvable:$true] %s2358_s29 }
 0x482   : > { %s2626_s24 = sshra.s32 %s2359_s29, 4  ;;  %s2627_s24 = int_to_ptr.hbm [resolvable:$true] %s2626_s24 }
 0x483   : > { %s2628_s14 = scalar_lea.hbm %s2627_s24, 8  ;;  %p2633_p0 = scmp.lt.s32.totalorder %s2627_s24, %s3886_s11 }
 0x484   : > { %p2629_p11 = scmp.ne.s32.totalorder %s2627_s24, %s2628_s14  ;;  %p2634_p1 = scmp.lt.s32.totalorder %s2632_s12, %s2628_s14 }
 0x486   : > { %p2630_p12 = pnand %p2629_p11, %p2792_p5  ;;  %p2635_p2 = por %p2634_p1, %p2633_p0 }
 0x488   : > { %p2631_p13 = pneg %p2630_p12 }
 0x48a   : > { %p2636_p3 = pnand %p2635_p2, %p2631_p13 }
 0x4d0   : > { %v1710_v60 = vpop.permute.xlu2 %1709 }
 0x4e8   : > { %v2061_v26 = vpop.permute.xlu0 %2060 }
 0x4e9   : > { %v1708_v35 = vpop.permute.xlu1 %1707 }
 0x4ea   : > { %v1711_v53 = vsel %vm4112_vm11, %v1708_v35, %v1710_v60  ;;  %v1712_v7 = vsel %vm4113_vm1, %v1710_v60, %v1708_v35  ;;  %vm4127_vm11 = vmmov %vm4117_vm7 }
 0x4eb   : > { %v1713_v62 = vsel %vm3015_vm12, %v1712_v7, 0.0  ;;  %v1714_v41 = vsel %vm3023_vm4, %v1711_v53, 0.0  ;;  %vm4118_vm12 = vcmp.lt.s32.totalorder %v2835_v25, 112  ;;  %vm4128_vm1 = vmmov %vm4117_vm7 }
 0x4ec   : > { %1716 = vrot.lane.b32.xlu1 %v1713_v62, %s4114_s0  ;;  %1826 = vrot.lane.b32.xlu2 %v1713_v62, %s4115_s22  ;;  %vm4119_vm4 = vmmov %vm4118_vm12 }
 0x4ed   : > { %2472 = vmatpush.msk.msra.mxu2 %vm4116_vm8, %v1713_v62  ;;  %1828 = vrot.lane.b32.xlu0 %v1714_v41, %s4115_s22  ;;  %vm4129_vm8 = vmmov %vm4128_vm1 }
 0x4ee   : > { %2474 = vmatpush.msk.msra.mxu3 %vm4117_vm7, %v1714_v41  ;;  %vm4130_vm7 = vmmov %vm4128_vm1 }
 0x4f1   : > { %v2063_v12 = vpop.permute.xlu1 %2062 }
 0x4f2   : > { %v2064_v30 = vsel %vm4118_vm12, %v2061_v26, %v2063_v12  ;;  %v2065_v61 = vsel %vm4119_vm4, %v2063_v12, %v2061_v26 }
 0x4f3   : > { %v3705_v13 = vsel %vm3032_vm5, %v2064_v30, 0.0  ;;  %v3710_v22 = vsel %vm4097_vm10, %v2065_v61, 0.0  ;;  %vm4120_vm5 = vcmask 31744  }
 0x4f4   : > { %1889 = vrot.lane.b32.xlu1 %v1706_v16, %s4114_s0  ;;  %1718 = vrot.lane.b32.xlu2 %v1714_v41, %s4114_s0  ;;  %vm4121_vm10 = vmmov %vm4120_vm5 }
 0x4f5   : > { %1887 = vrot.lane.b32.xlu0 %v1705_v19, %s4114_s0  ;;  %2473 = vmatmul.msk.f32.vlgmr.msra.gmra.mxu2 %vm4120_vm5, %v2471_v49  ;;  %vm4131_vm12 = vmmov %vm4120_vm5 }
 0x4f6   : > { %2475 = vmatmul.msk.f32.vlgmr.msra.gmra.mxu3 %vm4121_vm10, %v2471_v49  ;;  %vm4132_vm4 = vmmov %vm4120_vm5 }
 0x4f7   : > { %vm4133_vm5 = vmmov %vm4132_vm4 }
 0x4f8   : > { %vm4134_vm10 = vmmov %vm4132_vm4 }
 0x4fc   : > { %2001 = vrot.lane.b32.xlu1 %v1705_v19, %s4115_s22  ;;  %2070 = vrot.lane.b32.xlu2 %v3705_v13, %s4114_s0 }
 0x4fd   : > { %2072 = vrot.lane.b32.xlu0 %v3710_v22, %s4114_s0  ;;  %s377_s0 = sand.u32 1, %s2666_s18  }
 0x4fe   : > { %s2343_s25 = scalar_lea.sflag [#allocation3], %s377_s0 }
 0x504   : > { %2186 = vrot.lane.b32.xlu1 %v3710_v22, %s4115_s22  ;;  %2003 = vrot.lane.b32.xlu2 %v1706_v16, %s4115_s22 }
 0x505   : > { %2184 = vrot.lane.b32.xlu0 %v3705_v13, %s4115_s22  ;;  %s3838_s22 = sshll.u32 %s377_s0, 3 }
 0x506   : > { %s379_s21 = scalar_lea.vmem [#allocation2], %s3838_s22 }
 0x507   : > { %s2356_s13 = sshll.u32 %s379_s21, 4  ;;  %s2357_s13 = int_to_ptr.vmem [resolvable:$true] %s2356_s13 }
 0x50c   : > { %2246 = vperm.xlu2 %2585, %v2243_v40  }
 0x546   : > { %v1827_v15 = vpop.permute.xlu2 %1826 }
 0x54e   : > { %v1719_v17 = vpop.permute.xlu2 %1718 }
 0x556   : > { %v2071_v4 = vpop.permute.xlu2 %2070 }
 0x55e   : > { %v1717_v20 = vpop.permute.xlu1 %1716  ;;  %v2004_v33 = vpop.permute.xlu2 %2003 }
 0x55f   : > { %v1829_v21 = vpop.permute.xlu0 %1828  ;;  %v1720_v24 = vsel %vm4122_vm13, %v1717_v20, %v1719_v17  ;;  %v1721_v28 = vsel %vm4123_vm9, %v1719_v17, %v1717_v20  ;;  %vm4135_vm13 = vmmov %vm4128_vm1 }
 0x560   : > { %v1830_v31 = vsel %vm4124_vm15, %v1827_v15, %v1829_v21  ;;  %v1831_v39 = vsel %vm4125_vm3, %v1829_v21, %v1827_v15  ;;  %v1722_v29 = vsel %vm2873_vm6, %v1721_v28, 0.0  ;;  %v1723_v1 = vsel %vm4126_vm14, %v1720_v24, 0.0  ;;  %vm4136_vm9 = vmmov %vm4128_vm1 }
 0x561   : > { %v1832_v38 = vsel %vm2896_vm0, %v1830_v31, 0.0  ;;  %v1833_v2 = vsel %vm2900_vm2, %v1831_v39, 0.0  ;;  %2476 = vmatpush.msk.msrb.mxu0 %vm4127_vm11, %v1722_v29  ;;  %2478 = vmatpush.msk.msrb.mxu1 %vm4128_vm1, %v1723_v1  ;;  %vm4137_vm15 = vcmp.lt.s32.totalorder %v2835_v25, 1  ;;  %vm4139_vm11 = vmmov %vm4128_vm1 }
 0x562   : > { %2481 = vmatpush.msk.msrb.mxu2 %vm4129_vm8, %v1832_v38  ;;  %2483 = vmatpush.msk.msrb.mxu3 %vm4130_vm7, %v1833_v2  ;;  %vm4138_vm3 = vmmov %vm4137_vm15 }
 0x563   : > { %2477 = vmatmul.msk.f32.vlgmr.msrb.gmra.mxu0 %vm4131_vm12, %v1715_v48  ;;  %2479 = vmatmul.msk.f32.vlgmr.msrb.gmra.mxu1 %vm4132_vm4, %v1715_v48  ;;  %vm4140_vm8 = vmmov %vm4132_vm4 }
 0x564   : > { %2482 = vmatmul.msk.f32.vlgmr.msrb.gmra.mxu2 %vm4133_vm5, %v2480_v0  ;;  %2484 = vmatmul.msk.f32.vlgmr.msrb.gmra.mxu3 %vm4134_vm10, %v2480_v0  ;;  %vm4141_vm7 = vmmov %vm4132_vm4  ;;  %vm4143_vm5 = vcmp.lt.s32.totalorder %v2835_v25, 127 }
 0x565   : > { %2491 = vmatpush.msk.msra.mxu2 %vm4135_vm13, %v1705_v19  ;;  %2493 = vmatpush.msk.msra.mxu3 %vm4136_vm9, %v1706_v16  ;;  %vm4142_vm12 = vmmov %vm4132_vm4 }
 0x566   : > { %v1890_v9 = vpop.permute.xlu1 %1889  ;;  %vm4144_vm10 = vmmov %vm4143_vm5 }
 0x567   : > { %v1888_v14 = vpop.permute.xlu0 %1887  ;;  %vm4145_vm13 = vmmov %vm4138_vm3 }
 0x568   : > { %v1891_v52 = vsel %vm4137_vm15, %v1888_v14, %v1890_v9  ;;  %v1892_v37 = vsel %vm4138_vm3, %v1890_v9, %v1888_v14  ;;  %vm4146_vm9 = vmmov %vm4138_vm3 }
 0x569   : > { %v1893_v54 = vsel %vm2873_vm6, %v1892_v37, 0.0  ;;  %v1894_v42 = vsel %vm4126_vm14, %v1891_v52, 0.0  ;;  %vm4147_vm15 = vmmov %vm4128_vm1 }
 0x56a   : > { %2486 = vmatpush.msk.msra.mxu0 %vm4139_vm11, %v1893_v54  ;;  %2488 = vmatpush.msk.msra.mxu1 %vm4128_vm1, %v1894_v42  ;;  %vm4148_vm3 = vmmov %vm4128_vm1 }
 0x56b   : > { %2487 = vmatmul.msk.f32.vlgmr.msra.gmra.mxu0 %vm4140_vm8, %v2485_v44  ;;  %2489 = vmatmul.msk.f32.vlgmr.msra.gmra.mxu1 %vm4141_vm7, %v2485_v44  ;;  %vm4149_vm11 = vmmov %vm4128_vm1 }
 0x56c   : > { %2492 = vmatmul.msk.f32.vlgmr.msra.gmra.mxu2 %vm4142_vm12, %v2490_v18  ;;  %2494 = vmatmul.msk.f32.vlgmr.msra.gmra.mxu3 %vm4132_vm4, %v2490_v18  ;;  %vm4150_vm8 = vmmov %vm4132_vm4 }
 0x56d   : > { %vm4151_vm7 = vmmov %vm4132_vm4 }
 0x56e   : > { %v2002_v8 = vpop.permute.xlu1 %2001  ;;  %vm4153_vm12 = vmmov %vm4132_vm4 }
 0x56f   : > { %v2073_v23 = vpop.permute.xlu0 %2072  ;;  %v2005_v10 = vsel %vm4143_vm5, %v2002_v8, %v2004_v33  ;;  %v2006_v34 = vsel %vm4144_vm10, %v2004_v33, %v2002_v8  ;;  %vm4156_vm10 = vmmov %vm4143_vm5 }
 0x570   : > { %v2074_v11 = vsel %vm4145_vm13, %v2071_v4, %v2073_v23  ;;  %v2075_v36 = vsel %vm4146_vm9, %v2073_v23, %v2071_v4  ;;  %v2007_v43 = vsel %vm2896_vm0, %v2005_v10, 0.0  ;;  %v2008_v27 = vsel %vm2900_vm2, %v2006_v34, 0.0  ;;  %vm4157_vm13 = vmmov %vm4128_vm1  ;;  %v2247_v4 = vpop.permute.xlu2 %2246 }
 0x571   : > { %v2076_v58 = vsel %vm2873_vm6, %v2075_v36, 0.0  ;;  %v2077_v45 = vsel %vm4126_vm14, %v2074_v11, 0.0  ;;  %2496 = vmatpush.msk.msrb.mxu0 %vm4147_vm15, %v2007_v43  ;;  %2498 = vmatpush.msk.msrb.mxu1 %vm4148_vm3, %v2008_v27  ;;  %vm4152_vm6 = vmmov %vm4132_vm4 }
 0x572   : > { %2501 = vmatpush.msk.msrb.mxu2 %vm4149_vm11, %v2076_v58  ;;  %2503 = vmatpush.msk.msrb.mxu3 %vm4128_vm1, %v2077_v45  ;;  %vm4154_vm14 = vmmov %vm4128_vm1 }
 0x573   : > { %2497 = vmatmul.msk.f32.vlgmr.msrb.gmra.mxu0 %vm4150_vm8, %v2495_v57  ;;  %2499 = vmatmul.msk.f32.vlgmr.msrb.gmra.mxu1 %vm4151_vm7, %v2495_v57  ;;  %vm4155_vm4 = vmmov %vm4128_vm1 }
 0x574   : > { %2502 = vmatmul.msk.f32.vlgmr.msrb.gmra.mxu2 %vm4152_vm6, %v2500_v59  ;;  %2504 = vmatmul.msk.f32.vlgmr.msrb.gmra.mxu3 %vm4153_vm12, %v2500_v59  ;;  %vm4158_vm9 = vmmov %vm4128_vm1 }
 0x575   : > { %2506 = vmatpush.msk.msra.mxu0 %vm4154_vm14, %v3705_v13  ;;  %2508 = vmatpush.msk.msra.mxu1 %vm4155_vm4, %v3710_v22  ;;  %vm4159_vm15 = vmmov %vm4152_vm6 }
 0x576   : > { %v2187_v51 = vpop.permute.xlu1 %2186  ;;  %vm4160_vm3 = vmmov %vm4152_vm6 }
 0x577   : > { %v2185_v55 = vpop.permute.xlu0 %2184  ;;  %vm4161_vm11 = vmmov %vm4160_vm3 }
 0x578   : > { %v2188_v50 = vsel %vm4143_vm5, %v2185_v55, %v2187_v51  ;;  %v2189_v46 = vsel %vm4156_vm10, %v2187_v51, %v2185_v55  ;;  %vm4162_vm1 = vmmov %vm4160_vm3  ;;  %v1752_v25 = vpop.f32.mrf.mxu2 }
 0x579   : > { %v2190_v32 = vsel %vm2896_vm0, %v2188_v50, 0.0  ;;  %v2191_v47 = vsel %vm2900_vm2, %v2189_v46, 0.0  ;;  %v1772_v5 = vpop.f32.mrf.mxu3 }
 0x57a   : > { %2511 = vmatpush.msk.msra.mxu2 %vm4157_vm13, %v2190_v32  ;;  %2513 = vmatpush.msk.msra.mxu3 %vm4158_vm9, %v2191_v47 }
 0x57b   : > { %2507 = vmatmul.msk.f32.vlgmr.msra.gmra.mxu0 %vm4159_vm15, %v2505_v63  ;;  %2509 = vmatmul.msk.f32.vlgmr.msra.gmra.mxu1 %vm4160_vm3, %v2505_v63 }
 0x57c   : > { %2512 = vmatmul.msk.f32.vlgmr.msra.gmra.mxu2 %vm4161_vm11, %v2510_v56  ;;  %2514 = vmatmul.msk.f32.vlgmr.msra.gmra.mxu3 %vm4162_vm1, %v2510_v56 }
 0x5e0   : > { %v1801_v6 = vpop.f32.mrf.mxu0  ;;  %v1821_v3 = vpop.f32.mrf.mxu1 }
 0x5e1   : > { %v1802_v53 = vadd.f32 %v1801_v6, %v1752_v25  ;;  %v1822_v7 = vadd.f32 %v1821_v3, %v1772_v5 }
 0x5e7   : > { %v1860_v19 = vpop.f32.mrf.mxu2  ;;  %v1880_v16 = vpop.f32.mrf.mxu3 }
 0x5e8   : > { %v1921_v60 = vpop.f32.mrf.mxu0  ;;  %v1941_v35 = vpop.f32.mrf.mxu1  ;;  %v1883_v62 = vadd.f32 %v1860_v19, %v1802_v53  ;;  %v1884_v41 = vadd.f32 %v1880_v16, %v1822_v7 }
 0x5ea   : > { %v1944_v13 = vadd.f32 %v1921_v60, %v1883_v62  ;;  %v1945_v22 = vadd.f32 %v1941_v35, %v1884_v41 }
 0x5ef   : > { %v1974_v12 = vpop.f32.mrf.mxu2  ;;  %v1994_v26 = vpop.f32.mrf.mxu3 }
 0x5f0   : > { %v2035_v30 = vpop.f32.mrf.mxu0  ;;  %v2055_v61 = vpop.f32.mrf.mxu1  ;;  %v1997_v40 = vadd.f32 %v1974_v12, %v1944_v13  ;;  %v1998_v49 = vadd.f32 %v1994_v26, %v1945_v22 }
 0x5f2   : > { %v2058_v20 = vadd.f32 %v2035_v30, %v1997_v40  ;;  %v2059_v21 = vadd.f32 %v2055_v61, %v1998_v49 }
 0x5f7   : > { %v2104_v15 = vpop.f32.mrf.mxu2  ;;  %v2124_v17 = vpop.f32.mrf.mxu3 }
 0x5f8   : > { %v2127_v24 = vadd.f32 %v2104_v15, %v2058_v20  ;;  %v2128_v28 = vadd.f32 %v2124_v17, %v2059_v21  ;;  %v2157_v31 = vpop.f32.mrf.mxu0  ;;  %v2177_v39 = vpop.f32.mrf.mxu1 }
 0x5fa   : > { %v2180_v29 = vadd.f32 %v2157_v31, %v2127_v24  ;;  %v2181_v1 = vadd.f32 %v2177_v39, %v2128_v28  ;;  %v2331_v24 = vld.sshfl [vmem:[#allocation1 + $0x8] sm:$0xff pattern:$0x75316420] }
 0x5ff   : > { %v2218_v48 = vpop.f32.mrf.mxu2  ;;  %v2238_v38 = vpop.f32.mrf.mxu3 }
 0x600   : > { %v2241_v2 = vadd.f32 %v2218_v48, %v2180_v29  ;;  %v2242_v0 = vadd.f32 %v2238_v38, %v2181_v1  ;;  %v2330_v29 = vld.sshfl [vmem:[#allocation1] sm:$0xff pattern:$0x75316420] }
 0x602   : > { %v2249_v9 = vadd.f32 %v2247_v4, %v2241_v2  ;;  %v2250_v14 = vadd.f32 %v2247_v4, %v2242_v0 }
 0x604   : > { %v2515_v52 = vmul.f32 -1.442695, %v2249_v9  ;;  %v2516_v37 = vmul.f32 -1.442695, %v2250_v14 }
 0x606   : > { %2594 = vpow2.f32 %v2515_v52 }
 0x607   : > { %2596 = vpow2.f32 %v2516_v37 }
 0x60c   : > { %v2595_v44 = vpop.eup %2594 }
 0x60d   : > { %v2597_v54 = vpop.eup %2596  ;;  %v2257_v42 = vadd.f32 1.0, %v2595_v44 }
 0x60e   : > { %v2258_v18 = vadd.f32 1.0, %v2597_v54 }
 0x60f   : > { %2598 = vrcp.f32 %v2257_v42  ;;  %v2270_v11 = vand.u32 2147483648, %v2257_v42  ;;  %v2268_v27 = vand.u32 2147483647, %v2257_v42  ;;  %vm2264_vm8 = vweird.f32 %v2257_v42 }
 0x610   : > { %2600 = vrcp.f32 %v2258_v18  ;;  %v2285_v57 = vand.u32 2147483648, %v2258_v18  ;;  %v2283_v45 = vand.u32 2147483647, %v2258_v18  ;;  %vm2279_vm6 = vweird.f32 %v2258_v18 }
 0x611   : > { %v2271_v51 = vor.u32 1.1754944e-38, %v2270_v11  ;;  %vm2269_vm12 = vcmp.eq.f32.partialorder %v2268_v27, 8.507059e+37 }
 0x612   : > { %v2286_v46 = vor.u32 1.1754944e-38, %v2285_v57  ;;  %vm2284_vm4 = vcmp.eq.f32.partialorder %v2283_v45, 8.507059e+37 }
 0x615   : > { %v2599_v33 = vpop.eup %2598 }
 0x616   : > { %v2601_v8 = vpop.eup %2600  ;;  %v2260_v23 = vmul.f32 %v2599_v33, %v2257_v42  ;;  %vm2265_vm0 = vweird.f32 %v2599_v33 }
 0x617   : > { %v2275_v10 = vmul.f32 %v2601_v8, %v2258_v18  ;;  %vm2280_vm2 = vweird.f32 %v2601_v8  ;;  %vm2266_vm7 = vmor %vm2264_vm8, %vm2265_vm0  ;;  %vm4163_vm0 = vcmask 1043456  }
 0x618   : > { %v2261_v34 = vsub.f32 1.0, %v2260_v23  ;;  %vm2281_vm14 = vmor %vm2279_vm6, %vm2280_vm2 }
 0x619   : > { %v2276_v36 = vsub.f32 1.0, %v2275_v10 }
 0x61a   : > { %v2262_v43 = vmul.f32 %v2599_v33, %v2261_v34 }
 0x61b   : > { %v2277_v58 = vmul.f32 %v2601_v8, %v2276_v36 }
 0x61c   : > { %v2263_v59 = vadd.f32 %v2599_v33, %v2262_v43 }
 0x61d   : > { %v2278_v55 = vadd.f32 %v2601_v8, %v2277_v58 }
 0x61e   : > { %v2267_v50 = vsel %vm2266_vm7, %v2599_v33, %v2263_v59 }
 0x61f   : > { %v2272_v63 = vsel %vm2269_vm12, %v2271_v51, %v2267_v50  ;;  %v2282_v32 = vsel %vm2281_vm14, %v2601_v8, %v2278_v55 }
 0x620   : > { %v2289_v47 = vmul.f32 %v2272_v63, %v2249_v9  ;;  %v2287_v56 = vsel %vm2284_vm4, %v2286_v46, %v2282_v32 }
 0x621   : > { %v2290_v25 = vmul.f32 %v2287_v56, %v2250_v14 }
 0x622   : > { %v2517_v5 = vmul.f32 -1.442695, %v2289_v47 }
 0x623   : > { %v2518_v6 = vmul.f32 -1.442695, %v2290_v25 }
 0x624   : > { %2602 = vpow2.f32 %v2517_v5 }
 0x625   : > { %2604 = vpow2.f32 %v2518_v6 }
 0x62a   : > { %v2603_v3 = vpop.eup %2602 }
 0x62b   : > { %v2605_v19 = vpop.eup %2604  ;;  %v2297_v16 = vadd.f32 1.0, %v2603_v3 }
 0x62c   : > { %v2298_v60 = vadd.f32 1.0, %v2605_v19 }
 0x62d   : > { %2606 = vrcp.f32 %v2297_v16  ;;  %v2310_v30 = vand.u32 2147483648, %v2297_v16  ;;  %v2308_v13 = vand.u32 2147483647, %v2297_v16  ;;  %vm2304_vm13 = vweird.f32 %v2297_v16 }
 0x62e   : > { %2608 = vrcp.f32 %v2298_v60  ;;  %v2325_v61 = vand.u32 2147483648, %v2298_v60  ;;  %v2323_v40 = vand.u32 2147483647, %v2298_v60  ;;  %vm2319_vm15 = vweird.f32 %v2298_v60 }
 0x62f   : > { %v2311_v20 = vor.u32 1.1754944e-38, %v2310_v30  ;;  %vm2309_vm11 = vcmp.eq.f32.partialorder %v2308_v13, 8.507059e+37 }
 0x630   : > { %v2326_v21 = vor.u32 1.1754944e-38, %v2325_v61  ;;  %vm2324_vm1 = vcmp.eq.f32.partialorder %v2323_v40, 8.507059e+37 }
 0x633   : > { %v2607_v35 = vpop.eup %2606 }
 0x634   : > { %v2609_v53 = vpop.eup %2608  ;;  %v2300_v7 = vmul.f32 %v2607_v35, %v2297_v16  ;;  %vm2305_vm5 = vweird.f32 %v2607_v35 }
 0x635   : > { %v2315_v62 = vmul.f32 %v2609_v53, %v2298_v60  ;;  %vm2320_vm10 = vweird.f32 %v2609_v53  ;;  %vm2306_vm9 = vmor %vm2304_vm13, %vm2305_vm5 }
 0x636   : > { %v2301_v41 = vsub.f32 1.0, %v2300_v7  ;;  %vm2321_vm3 = vmor %vm2319_vm15, %vm2320_vm10 }
 0x637   : > { %v2316_v12 = vsub.f32 1.0, %v2315_v62 }
 0x638   : > { %v2302_v26 = vmul.f32 %v2607_v35, %v2301_v41 }
 0x639   : > { %v2317_v22 = vmul.f32 %v2609_v53, %v2316_v12 }
 0x63a   : > { %v2303_v49 = vadd.f32 %v2607_v35, %v2302_v26 }
 0x63b   : > { %v2318_v15 = vadd.f32 %v2609_v53, %v2317_v22 }
 0x63c   : > { %v2307_v17 = vsel %vm2306_vm9, %v2607_v35, %v2303_v49 }
 0x63d   : > { %v2322_v28 = vsel %vm2321_vm3, %v2609_v53, %v2318_v15  ;;  %v2312_v31 = vsel %vm2309_vm11, %v2311_v20, %v2307_v17 }
 0x63e   : > { %v2327_v39 = vsel %vm2324_vm1, %v2326_v21, %v2322_v28  ;;  %v2334_v48 = vmul.f32 %v2330_v29, %v2312_v31 }
 0x63f   : > { %v2335_v1 = vmul.f32 %v2331_v24, %v2327_v39 }
 0x641   : > { %v2338_v38 = vrot.slane %v2335_v1, 4 }
 0x643   : > { %v2339_v2 = vsel %vm4163_vm0, %v2334_v48, %v2338_v38 }
 0x644   : > { %2341 = vst [vmem:[%s379_s21] sm:$0xff] %v2339_v2 }
 0x645   : > { %2639 = shalt.err (!%p2636_p3)
}
 0x646   : > { %2526 = dma.vmem_to_hbm [thread:$0]  (%p2792_p5), %s2357_s13, 128, %s2359_s29, %s2343_s25  }
 0x647 PF: > { %p2532_p4 = scmp.ge.s32.totalorder %s2674_s20, 2  ;;  %s2370_s0 = sand.u32 1, %s2662_s17  }
 0x648   : > { %s2371_s21 = scalar_lea.sflag [#allocation3], %s2370_s0 }
 0x649   : > { %p2529_p7 = pnand %p2532_p4, %p2796_p6 }
 0x64b   : > { %p2530_p8 = pneg %p2529_p7 }
 0x64d   : > { %2657 = dma.done.wait (%p2530_p8), %s2371_s21, 128  }
 0x64e   : > { %2659 = vsyncadd (%p2530_p8), %s2371_s21, 4294967168  ;;  %p21_p9 = scmp.ge.s32.totalorder %s2779_s23, 4   ;;  %s4164_s17 = smov %s2666_s18 }
 0x64f   : > { %s4165_s18 = smov %s2670_s19  ;;  %s4166_s19 = smov %s2790_s26 }
 0x650   : > { %s4167_s20 = smov %s2779_s23  ;;  %23 = sbr.rel (!%p21_p9) target bundleno = 5 (0x5), region = 115 }
 0x655   :  { %2377 = vsyncpa [#allocation3], 1 }
 0x656   :  { %2379 = vsyncpa [#allocation3 + $0x1], 1 }

</bundles_post_ra>
